<compile_context>
chip_gen: v5e
topology: v5e:2x2
jax: 0.10.0
libtpu: 0.0.40
codegen_flags: <defaults>
</compile_context>

<pallas_src>
import functools

import jax
import jax.numpy as jnp
from jax.experimental import pallas as pl
from jax.experimental.pallas import tpu as pltpu

LEAKY_SLOPE = 0.01
BN_EPS = 1e-5
STATS_FLOOR = 1e-10

# (context_size K, dilation) for frame1..frame9 of ETDNN.
LAYER_CONFIGS = (
    (5, 1),  # frame1
    (1, 1),  # frame2
    (3, 2),  # frame3
    (1, 1),  # frame4
    (3, 3),  # frame5
    (1, 1),  # frame6
    (3, 4),  # frame7
    (1, 1),  # frame8
    (1, 1),  # frame9 (output = 3 * hidden)
)


# ----------------------------------------------------------------------------
# One TDNN layer on an in-VMEM value: dilated conv (im2col matmul) + bias
# + LeakyReLU + training-mode BatchNorm1d.  Pure jnp on values — used inside
# the single fused kernel body, so nothing here touches HBM.
# ----------------------------------------------------------------------------
def _tdnn_block(x, w2d, b, gamma, beta, *, context, dilation):
    B, T_in, Cin = x.shape
    Cout = w2d.shape[1]
    T_out = T_in - (context - 1) * dilation

    if context == 1:
        xc = x                                              # (B, T_in, Cin)
    else:
        taps = [
            jax.lax.slice_in_dim(x, k * dilation, k * dilation + T_out, axis=1)
            for k in range(context)
        ]
        xc = jnp.concatenate(taps, axis=-1)                 # (B, T_out, K*Cin)

    y = jnp.dot(xc.reshape(B * T_out, context * Cin), w2d,
                preferred_element_type=jnp.float32)         # (B*T_out, Cout)
    y = y + b                                               # (1, Cout) broadcast

    # LeakyReLU; Dropout(p=0) is the identity.
    y = jnp.where(y >= 0, y, LEAKY_SLOPE * y)

    # BatchNorm1d (training mode): per-channel batch stats over (B, T_out),
    # biased variance.
    n = B * T_out
    mean = jnp.sum(y, axis=0, keepdims=True) / n
    cen = y - mean
    var = jnp.sum(cen * cen, axis=0, keepdims=True) / n
    y = cen * jax.lax.rsqrt(var + BN_EPS)
    y = y * gamma + beta

    return y.reshape(B, T_out, Cout)


# ----------------------------------------------------------------------------
# Fused kernel: frame1..frame9 + StatsPool + fc_embed in a single pallas_call.
# refs = (x_ref, [w, b, gamma, beta] * 9, w_mean, w_std, fc_b, o_ref)
# ----------------------------------------------------------------------------
def etdnn_fused_kernel(*refs, configs):
    x_ref = refs[0]
    o_ref = refs[-1]
    prefs = refs[1:-1]

    x = x_ref[...]                                          # (B, T, F0) f32
    i = 0
    for (K, dil) in configs:
        w2d = prefs[i][...]
        b = prefs[i + 1][...]
        gamma = prefs[i + 2][...]
        beta = prefs[i + 3][...]
        i += 4
        x = _tdnn_block(x, w2d, b, gamma, beta, context=K, dilation=dil)

    # StatsPool
    B, T, F = x.shape
    means = jnp.sum(x, axis=1) / T                          # (B, F)
    resid = x - means[:, None, :]
    numer = jnp.sum(resid * resid, axis=1)                  # (B, F)
    stds = jnp.sqrt(jnp.maximum(numer, STATS_FLOOR) / T)

    # fc_embed on concat([means, stds]) == means @ W_mean + stds @ W_std + b
    wm = prefs[i][...]
    ws = prefs[i + 1][...]
    fb = prefs[i + 2][...]
    out = (jnp.dot(means, wm, preferred_element_type=jnp.float32)
           + jnp.dot(stds, ws, preferred_element_type=jnp.float32)
           + fb)
    o_ref[...] = out


def etdnn_forward(x, params):
    flat_inputs = [x]
    for lp in params["layers"]:
        flat_inputs += [lp["w"], lp["b"], lp["gamma"], lp["beta"]]
    flat_inputs += [params["fc"]["w_mean"], params["fc"]["w_std"],
                    params["fc"]["b"]]

    B = x.shape[0]
    E = params["fc"]["w_mean"].shape[1]

    def full_spec(a):
        nd = a.ndim
        return pl.BlockSpec(a.shape, lambda i, nd=nd: (0,) * nd)

    kernel = functools.partial(etdnn_fused_kernel, configs=LAYER_CONFIGS)
    return pl.pallas_call(
        kernel,
        out_shape=jax.ShapeDtypeStruct((B, E), jnp.float32),
        grid=(1,),
        in_specs=[full_spec(a) for a in flat_inputs],
        out_specs=pl.BlockSpec((B, E), lambda i: (0, 0)),
        compiler_params=pltpu.CompilerParams(
            dimension_semantics=("arbitrary",),
            vmem_limit_bytes=32 * 1024 * 1024,
        ),
    )(*flat_inputs)


# ----------------------------------------------------------------------------
# Deterministic synthetic parameters.  Conv weights are stored pre-reshaped
# as (K*Cin, Cout) with rows ordered (tap k, input channel) to match the
# in-kernel im2col concat order.
# ----------------------------------------------------------------------------
def init_params(key, *, features_per_frame, hidden, embed):
    keys = jax.random.split(key, len(LAYER_CONFIGS) + 1)
    layers = []
    cin = features_per_frame
    for li, (K, _) in enumerate(LAYER_CONFIGS):
        cout = hidden * 3 if li == len(LAYER_CONFIGS) - 1 else hidden
        kw, kb = jax.random.split(keys[li])
        scale = 1.0 / jnp.sqrt(jnp.float32(K * cin))
        layers.append({
            "w": jax.random.normal(kw, (K * cin, cout), jnp.float32) * scale,
            "b": jax.random.normal(kb, (1, cout), jnp.float32) * scale,
            "gamma": jnp.ones((1, cout), jnp.float32),
            "beta": jnp.zeros((1, cout), jnp.float32),
        })
        cin = cout

    F = cin                                # hidden * 3 (StatsPool feature dim)
    kw1, kw2, kb = jax.random.split(keys[-1], 3)
    scale = 1.0 / jnp.sqrt(jnp.float32(2 * F))
    fc = {
        "w_mean": jax.random.normal(kw1, (F, embed), jnp.float32) * scale,
        "w_std": jax.random.normal(kw2, (F, embed), jnp.float32) * scale,
        "b": jax.random.normal(kb, (1, embed), jnp.float32) * scale,
    }
    return {"layers": layers, "fc": fc}


if __name__ == "__main__":
    key = jax.random.PRNGKey(0)
    k_x, k_p = jax.random.split(key)

    # Small, lane-aligned shapes consistent with the module's constructor
    # arguments (features_per_frame / hidden_features / embed_features).
    B, T = 2, 30                     # total receptive-field shrink = 22 -> T_out = 8
    FEAT, HID, EMB = 128, 128, 128   # frame9 output = 3*HID = 384, fc input = 768

    x = jax.random.normal(k_x, (B, T, FEAT), jnp.float32)
    params = init_params(k_p, features_per_frame=FEAT, hidden=HID, embed=EMB)

    out = etdnn_forward(x, params)
    out = jax.block_until_ready(out)

    assert out.shape == (B, EMB), out.shape
    assert bool(jnp.all(jnp.isfinite(out)))
    print("KERNEL_OK")
</pallas_src>

<mosaic_0001>
module attributes {stable_mosaic.version = 11 : i64} {
  func.func @etdnn_fused_kernel(%arg0: i32, %arg1: memref<2x30x128xf32, #tpu.memory_space<vmem>>, %arg2: memref<640x128xf32, #tpu.memory_space<vmem>>, %arg3: memref<1x128xf32, #tpu.memory_space<vmem>>, %arg4: memref<1x128xf32, #tpu.memory_space<vmem>>, %arg5: memref<1x128xf32, #tpu.memory_space<vmem>>, %arg6: memref<128x128xf32, #tpu.memory_space<vmem>>, %arg7: memref<1x128xf32, #tpu.memory_space<vmem>>, %arg8: memref<1x128xf32, #tpu.memory_space<vmem>>, %arg9: memref<1x128xf32, #tpu.memory_space<vmem>>, %arg10: memref<384x128xf32, #tpu.memory_space<vmem>>, %arg11: memref<1x128xf32, #tpu.memory_space<vmem>>, %arg12: memref<1x128xf32, #tpu.memory_space<vmem>>, %arg13: memref<1x128xf32, #tpu.memory_space<vmem>>, %arg14: memref<128x128xf32, #tpu.memory_space<vmem>>, %arg15: memref<1x128xf32, #tpu.memory_space<vmem>>, %arg16: memref<1x128xf32, #tpu.memory_space<vmem>>, %arg17: memref<1x128xf32, #tpu.memory_space<vmem>>, %arg18: memref<384x128xf32, #tpu.memory_space<vmem>>, %arg19: memref<1x128xf32, #tpu.memory_space<vmem>>, %arg20: memref<1x128xf32, #tpu.memory_space<vmem>>, %arg21: memref<1x128xf32, #tpu.memory_space<vmem>>, %arg22: memref<128x128xf32, #tpu.memory_space<vmem>>, %arg23: memref<1x128xf32, #tpu.memory_space<vmem>>, %arg24: memref<1x128xf32, #tpu.memory_space<vmem>>, %arg25: memref<1x128xf32, #tpu.memory_space<vmem>>, %arg26: memref<384x128xf32, #tpu.memory_space<vmem>>, %arg27: memref<1x128xf32, #tpu.memory_space<vmem>>, %arg28: memref<1x128xf32, #tpu.memory_space<vmem>>, %arg29: memref<1x128xf32, #tpu.memory_space<vmem>>, %arg30: memref<128x128xf32, #tpu.memory_space<vmem>>, %arg31: memref<1x128xf32, #tpu.memory_space<vmem>>, %arg32: memref<1x128xf32, #tpu.memory_space<vmem>>, %arg33: memref<1x128xf32, #tpu.memory_space<vmem>>, %arg34: memref<128x384xf32, #tpu.memory_space<vmem>>, %arg35: memref<1x384xf32, #tpu.memory_space<vmem>>, %arg36: memref<1x384xf32, #tpu.memory_space<vmem>>, %arg37: memref<1x384xf32, #tpu.memory_space<vmem>>, %arg38: memref<384x128xf32, #tpu.memory_space<vmem>>, %arg39: memref<384x128xf32, #tpu.memory_space<vmem>>, %arg40: memref<1x128xf32, #tpu.memory_space<vmem>>, %arg41: memref<2x128xf32, #tpu.memory_space<vmem>>) attributes {dimension_semantics = [#tpu.dimension_semantics<arbitrary>], iteration_bounds = array<i64: 1>, scalar_prefetch = 0 : i64, scratch_operands = 0 : i64, tpu.core_type = #tpu.core_type<tc>, window_params = [{pipeline_mode = #tpu.pipeline_mode<synchronous>, transform_indices = @transform_0, window_bounds = array<i64: 2, 30, 128>}, {pipeline_mode = #tpu.pipeline_mode<synchronous>, transform_indices = @transform_1, window_bounds = array<i64: 640, 128>}, {pipeline_mode = #tpu.pipeline_mode<synchronous>, transform_indices = @transform_2, window_bounds = array<i64: 1, 128>}, {pipeline_mode = #tpu.pipeline_mode<synchronous>, transform_indices = @transform_3, window_bounds = array<i64: 1, 128>}, {pipeline_mode = #tpu.pipeline_mode<synchronous>, transform_indices = @transform_4, window_bounds = array<i64: 1, 128>}, {pipeline_mode = #tpu.pipeline_mode<synchronous>, transform_indices = @transform_5, window_bounds = array<i64: 128, 128>}, {pipeline_mode = #tpu.pipeline_mode<synchronous>, transform_indices = @transform_6, window_bounds = array<i64: 1, 128>}, {pipeline_mode = #tpu.pipeline_mode<synchronous>, transform_indices = @transform_7, window_bounds = array<i64: 1, 128>}, {pipeline_mode = #tpu.pipeline_mode<synchronous>, transform_indices = @transform_8, window_bounds = array<i64: 1, 128>}, {pipeline_mode = #tpu.pipeline_mode<synchronous>, transform_indices = @transform_9, window_bounds = array<i64: 384, 128>}, {pipeline_mode = #tpu.pipeline_mode<synchronous>, transform_indices = @transform_10, window_bounds = array<i64: 1, 128>}, {pipeline_mode = #tpu.pipeline_mode<synchronous>, transform_indices = @transform_11, window_bounds = array<i64: 1, 128>}, {pipeline_mode = #tpu.pipeline_mode<synchronous>, transform_indices = @transform_12, window_bounds = array<i64: 1, 128>}, {pipeline_mode = #tpu.pipeline_mode<synchronous>, transform_indices = @transform_13, window_bounds = array<i64: 128, 128>}, {pipeline_mode = #tpu.pipeline_mode<synchronous>, transform_indices = @transform_14, window_bounds = array<i64: 1, 128>}, {pipeline_mode = #tpu.pipeline_mode<synchronous>, transform_indices = @transform_15, window_bounds = array<i64: 1, 128>}, {pipeline_mode = #tpu.pipeline_mode<synchronous>, transform_indices = @transform_16, window_bounds = array<i64: 1, 128>}, {pipeline_mode = #tpu.pipeline_mode<synchronous>, transform_indices = @transform_17, window_bounds = array<i64: 384, 128>}, {pipeline_mode = #tpu.pipeline_mode<synchronous>, transform_indices = @transform_18, window_bounds = array<i64: 1, 128>}, {pipeline_mode = #tpu.pipeline_mode<synchronous>, transform_indices = @transform_19, window_bounds = array<i64: 1, 128>}, {pipeline_mode = #tpu.pipeline_mode<synchronous>, transform_indices = @transform_20, window_bounds = array<i64: 1, 128>}, {pipeline_mode = #tpu.pipeline_mode<synchronous>, transform_indices = @transform_21, window_bounds = array<i64: 128, 128>}, {pipeline_mode = #tpu.pipeline_mode<synchronous>, transform_indices = @transform_22, window_bounds = array<i64: 1, 128>}, {pipeline_mode = #tpu.pipeline_mode<synchronous>, transform_indices = @transform_23, window_bounds = array<i64: 1, 128>}, {pipeline_mode = #tpu.pipeline_mode<synchronous>, transform_indices = @transform_24, window_bounds = array<i64: 1, 128>}, {pipeline_mode = #tpu.pipeline_mode<synchronous>, transform_indices = @transform_25, window_bounds = array<i64: 384, 128>}, {pipeline_mode = #tpu.pipeline_mode<synchronous>, transform_indices = @transform_26, window_bounds = array<i64: 1, 128>}, {pipeline_mode = #tpu.pipeline_mode<synchronous>, transform_indices = @transform_27, window_bounds = array<i64: 1, 128>}, {pipeline_mode = #tpu.pipeline_mode<synchronous>, transform_indices = @transform_28, window_bounds = array<i64: 1, 128>}, {pipeline_mode = #tpu.pipeline_mode<synchronous>, transform_indices = @transform_29, window_bounds = array<i64: 128, 128>}, {pipeline_mode = #tpu.pipeline_mode<synchronous>, transform_indices = @transform_30, window_bounds = array<i64: 1, 128>}, {pipeline_mode = #tpu.pipeline_mode<synchronous>, transform_indices = @transform_31, window_bounds = array<i64: 1, 128>}, {pipeline_mode = #tpu.pipeline_mode<synchronous>, transform_indices = @transform_32, window_bounds = array<i64: 1, 128>}, {pipeline_mode = #tpu.pipeline_mode<synchronous>, transform_indices = @transform_33, window_bounds = array<i64: 128, 384>}, {pipeline_mode = #tpu.pipeline_mode<synchronous>, transform_indices = @transform_34, window_bounds = array<i64: 1, 384>}, {pipeline_mode = #tpu.pipeline_mode<synchronous>, transform_indices = @transform_35, window_bounds = array<i64: 1, 384>}, {pipeline_mode = #tpu.pipeline_mode<synchronous>, transform_indices = @transform_36, window_bounds = array<i64: 1, 384>}, {pipeline_mode = #tpu.pipeline_mode<synchronous>, transform_indices = @transform_37, window_bounds = array<i64: 384, 128>}, {pipeline_mode = #tpu.pipeline_mode<synchronous>, transform_indices = @transform_38, window_bounds = array<i64: 384, 128>}, {pipeline_mode = #tpu.pipeline_mode<synchronous>, transform_indices = @transform_39, window_bounds = array<i64: 1, 128>}, {pipeline_mode = #tpu.pipeline_mode<synchronous>, transform_indices = @transform_40, window_bounds = array<i64: 2, 128>}]} {
    %c0 = arith.constant 0 : index
    %c0_0 = arith.constant 0 : index
    %c0_1 = arith.constant 0 : index
    %0 = vector.load %arg1[%c0, %c0_0, %c0_1] : memref<2x30x128xf32, #tpu.memory_space<vmem>>, vector<2x30x128xf32>
    %c0_2 = arith.constant 0 : index
    %c0_3 = arith.constant 0 : index
    %1 = vector.load %arg2[%c0_2, %c0_3] : memref<640x128xf32, #tpu.memory_space<vmem>>, vector<640x128xf32>
    %c0_4 = arith.constant 0 : index
    %c0_5 = arith.constant 0 : index
    %2 = vector.load %arg3[%c0_4, %c0_5] : memref<1x128xf32, #tpu.memory_space<vmem>>, vector<1x128xf32>
    %c0_6 = arith.constant 0 : index
    %c0_7 = arith.constant 0 : index
    %3 = vector.load %arg4[%c0_6, %c0_7] : memref<1x128xf32, #tpu.memory_space<vmem>>, vector<1x128xf32>
    %c0_8 = arith.constant 0 : index
    %c0_9 = arith.constant 0 : index
    %4 = vector.load %arg5[%c0_8, %c0_9] : memref<1x128xf32, #tpu.memory_space<vmem>>, vector<1x128xf32>
    %5 = vector.extract_strided_slice %0 {offsets = [0, 0, 0], sizes = [2, 26, 128], strides = [1, 1, 1]} : vector<2x30x128xf32> to vector<2x26x128xf32>
    %6 = vector.extract_strided_slice %0 {offsets = [0, 1, 0], sizes = [2, 26, 128], strides = [1, 1, 1]} : vector<2x30x128xf32> to vector<2x26x128xf32>
    %7 = vector.extract_strided_slice %0 {offsets = [0, 2, 0], sizes = [2, 26, 128], strides = [1, 1, 1]} : vector<2x30x128xf32> to vector<2x26x128xf32>
    %8 = vector.extract_strided_slice %0 {offsets = [0, 3, 0], sizes = [2, 26, 128], strides = [1, 1, 1]} : vector<2x30x128xf32> to vector<2x26x128xf32>
    %9 = vector.extract_strided_slice %0 {offsets = [0, 4, 0], sizes = [2, 26, 128], strides = [1, 1, 1]} : vector<2x30x128xf32> to vector<2x26x128xf32>
    %10 = tpu.concatenate %5, %6, %7, %8, %9 in 2 : vector<2x26x128xf32>, vector<2x26x128xf32>, vector<2x26x128xf32>, vector<2x26x128xf32>, vector<2x26x128xf32> -> vector<2x26x640xf32>
    %11 = vector.shape_cast %10 : vector<2x26x640xf32> to vector<52x640xf32>
    %cst = arith.constant dense<0.000000e+00> : vector<52x128xf32>
    %12 = tpu.matmul %11, %1, %cst {dimension_numbers = #tpu.dot_dimension_numbers<[1], [0], [0], [1], [0, 0, 1, 1], [], []>} : vector<52x640xf32>, vector<640x128xf32>, vector<52x128xf32> -> vector<52x128xf32>
    %13 = vector.broadcast %2 : vector<1x128xf32> to vector<52x128xf32>
    %14 = arith.addf %12, %13 : vector<52x128xf32>
    %cst_10 = arith.constant 0.000000e+00 : f32
    %15 = vector.broadcast %cst_10 : f32 to vector<52x128xf32>
    %16 = arith.cmpf oge, %14, %15 : vector<52x128xf32>
    %cst_11 = arith.constant 0.00999999977 : f32
    %17 = vector.broadcast %cst_11 : f32 to vector<52x128xf32>
    %18 = arith.mulf %17, %14 : vector<52x128xf32>
    %19 = arith.select %16, %14, %18 : vector<52x128xi1>, vector<52x128xf32>
    %cst_12 = arith.constant dense<0.000000e+00> : vector<128xf32>
    %20 = vector.multi_reduction <add>, %19, %cst_12 [0] : vector<52x128xf32> to vector<128xf32>
    %21 = vector.shape_cast %20 : vector<128xf32> to vector<1x128xf32>
    %cst_13 = arith.constant 5.200000e+01 : f32
    %22 = vector.broadcast %cst_13 : f32 to vector<1x128xf32>
    %23 = arith.divf %21, %22 : vector<1x128xf32>
    %24 = vector.broadcast %23 : vector<1x128xf32> to vector<52x128xf32>
    %25 = arith.subf %19, %24 : vector<52x128xf32>
    %26 = arith.mulf %25, %25 : vector<52x128xf32>
    %cst_14 = arith.constant dense<0.000000e+00> : vector<128xf32>
    %27 = vector.multi_reduction <add>, %26, %cst_14 [0] : vector<52x128xf32> to vector<128xf32>
    %28 = vector.shape_cast %27 : vector<128xf32> to vector<1x128xf32>
    %cst_15 = arith.constant 5.200000e+01 : f32
    %29 = vector.broadcast %cst_15 : f32 to vector<1x128xf32>
    %30 = arith.divf %28, %29 : vector<1x128xf32>
    %cst_16 = arith.constant 9.99999974E-6 : f32
    %31 = vector.broadcast %cst_16 : f32 to vector<1x128xf32>
    %32 = arith.addf %30, %31 : vector<1x128xf32>
    %33 = math.rsqrt %32 : vector<1x128xf32>
    %34 = vector.broadcast %33 : vector<1x128xf32> to vector<52x128xf32>
    %35 = arith.mulf %25, %34 : vector<52x128xf32>
    %36 = vector.broadcast %3 : vector<1x128xf32> to vector<52x128xf32>
    %37 = arith.mulf %35, %36 : vector<52x128xf32>
    %38 = vector.broadcast %4 : vector<1x128xf32> to vector<52x128xf32>
    %39 = arith.addf %37, %38 : vector<52x128xf32>
    %40 = vector.shape_cast %39 : vector<52x128xf32> to vector<2x26x128xf32>
    %c0_17 = arith.constant 0 : index
    %c0_18 = arith.constant 0 : index
    %41 = vector.load %arg6[%c0_17, %c0_18] : memref<128x128xf32, #tpu.memory_space<vmem>>, vector<128x128xf32>
    %c0_19 = arith.constant 0 : index
    %c0_20 = arith.constant 0 : index
    %42 = vector.load %arg7[%c0_19, %c0_20] : memref<1x128xf32, #tpu.memory_space<vmem>>, vector<1x128xf32>
    %c0_21 = arith.constant 0 : index
    %c0_22 = arith.constant 0 : index
    %43 = vector.load %arg8[%c0_21, %c0_22] : memref<1x128xf32, #tpu.memory_space<vmem>>, vector<1x128xf32>
    %c0_23 = arith.constant 0 : index
    %c0_24 = arith.constant 0 : index
    %44 = vector.load %arg9[%c0_23, %c0_24] : memref<1x128xf32, #tpu.memory_space<vmem>>, vector<1x128xf32>
    %45 = vector.shape_cast %40 : vector<2x26x128xf32> to vector<52x128xf32>
    %cst_25 = arith.constant dense<0.000000e+00> : vector<52x128xf32>
    %46 = tpu.matmul %45, %41, %cst_25 {dimension_numbers = #tpu.dot_dimension_numbers<[1], [0], [0], [1], [0, 0, 1, 1], [], []>} : vector<52x128xf32>, vector<128x128xf32>, vector<52x128xf32> -> vector<52x128xf32>
    %47 = vector.broadcast %42 : vector<1x128xf32> to vector<52x128xf32>
    %48 = arith.addf %46, %47 : vector<52x128xf32>
    %cst_26 = arith.constant 0.000000e+00 : f32
    %49 = vector.broadcast %cst_26 : f32 to vector<52x128xf32>
    %50 = arith.cmpf oge, %48, %49 : vector<52x128xf32>
    %cst_27 = arith.constant 0.00999999977 : f32
    %51 = vector.broadcast %cst_27 : f32 to vector<52x128xf32>
    %52 = arith.mulf %51, %48 : vector<52x128xf32>
    %53 = arith.select %50, %48, %52 : vector<52x128xi1>, vector<52x128xf32>
    %cst_28 = arith.constant dense<0.000000e+00> : vector<128xf32>
    %54 = vector.multi_reduction <add>, %53, %cst_28 [0] : vector<52x128xf32> to vector<128xf32>
    %55 = vector.shape_cast %54 : vector<128xf32> to vector<1x128xf32>
    %cst_29 = arith.constant 5.200000e+01 : f32
    %56 = vector.broadcast %cst_29 : f32 to vector<1x128xf32>
    %57 = arith.divf %55, %56 : vector<1x128xf32>
    %58 = vector.broadcast %57 : vector<1x128xf32> to vector<52x128xf32>
    %59 = arith.subf %53, %58 : vector<52x128xf32>
    %60 = arith.mulf %59, %59 : vector<52x128xf32>
    %cst_30 = arith.constant dense<0.000000e+00> : vector<128xf32>
    %61 = vector.multi_reduction <add>, %60, %cst_30 [0] : vector<52x128xf32> to vector<128xf32>
    %62 = vector.shape_cast %61 : vector<128xf32> to vector<1x128xf32>
    %cst_31 = arith.constant 5.200000e+01 : f32
    %63 = vector.broadcast %cst_31 : f32 to vector<1x128xf32>
    %64 = arith.divf %62, %63 : vector<1x128xf32>
    %cst_32 = arith.constant 9.99999974E-6 : f32
    %65 = vector.broadcast %cst_32 : f32 to vector<1x128xf32>
    %66 = arith.addf %64, %65 : vector<1x128xf32>
    %67 = math.rsqrt %66 : vector<1x128xf32>
    %68 = vector.broadcast %67 : vector<1x128xf32> to vector<52x128xf32>
    %69 = arith.mulf %59, %68 : vector<52x128xf32>
    %70 = vector.broadcast %43 : vector<1x128xf32> to vector<52x128xf32>
    %71 = arith.mulf %69, %70 : vector<52x128xf32>
    %72 = vector.broadcast %44 : vector<1x128xf32> to vector<52x128xf32>
    %73 = arith.addf %71, %72 : vector<52x128xf32>
    %74 = vector.shape_cast %73 : vector<52x128xf32> to vector<2x26x128xf32>
    %c0_33 = arith.constant 0 : index
    %c0_34 = arith.constant 0 : index
    %75 = vector.load %arg10[%c0_33, %c0_34] : memref<384x128xf32, #tpu.memory_space<vmem>>, vector<384x128xf32>
    %c0_35 = arith.constant 0 : index
    %c0_36 = arith.constant 0 : index
    %76 = vector.load %arg11[%c0_35, %c0_36] : memref<1x128xf32, #tpu.memory_space<vmem>>, vector<1x128xf32>
    %c0_37 = arith.constant 0 : index
    %c0_38 = arith.constant 0 : index
    %77 = vector.load %arg12[%c0_37, %c0_38] : memref<1x128xf32, #tpu.memory_space<vmem>>, vector<1x128xf32>
    %c0_39 = arith.constant 0 : index
    %c0_40 = arith.constant 0 : index
    %78 = vector.load %arg13[%c0_39, %c0_40] : memref<1x128xf32, #tpu.memory_space<vmem>>, vector<1x128xf32>
    %79 = vector.extract_strided_slice %74 {offsets = [0, 0, 0], sizes = [2, 22, 128], strides = [1, 1, 1]} : vector<2x26x128xf32> to vector<2x22x128xf32>
    %80 = vector.extract_strided_slice %74 {offsets = [0, 2, 0], sizes = [2, 22, 128], strides = [1, 1, 1]} : vector<2x26x128xf32> to vector<2x22x128xf32>
    %81 = vector.extract_strided_slice %74 {offsets = [0, 4, 0], sizes = [2, 22, 128], strides = [1, 1, 1]} : vector<2x26x128xf32> to vector<2x22x128xf32>
    %82 = tpu.concatenate %79, %80, %81 in 2 : vector<2x22x128xf32>, vector<2x22x128xf32>, vector<2x22x128xf32> -> vector<2x22x384xf32>
    %83 = vector.shape_cast %82 : vector<2x22x384xf32> to vector<44x384xf32>
    %cst_41 = arith.constant dense<0.000000e+00> : vector<44x128xf32>
    %84 = tpu.matmul %83, %75, %cst_41 {dimension_numbers = #tpu.dot_dimension_numbers<[1], [0], [0], [1], [0, 0, 1, 1], [], []>} : vector<44x384xf32>, vector<384x128xf32>, vector<44x128xf32> -> vector<44x128xf32>
    %85 = vector.broadcast %76 : vector<1x128xf32> to vector<44x128xf32>
    %86 = arith.addf %84, %85 : vector<44x128xf32>
    %cst_42 = arith.constant 0.000000e+00 : f32
    %87 = vector.broadcast %cst_42 : f32 to vector<44x128xf32>
    %88 = arith.cmpf oge, %86, %87 : vector<44x128xf32>
    %cst_43 = arith.constant 0.00999999977 : f32
    %89 = vector.broadcast %cst_43 : f32 to vector<44x128xf32>
    %90 = arith.mulf %89, %86 : vector<44x128xf32>
    %91 = arith.select %88, %86, %90 : vector<44x128xi1>, vector<44x128xf32>
    %cst_44 = arith.constant dense<0.000000e+00> : vector<128xf32>
    %92 = vector.multi_reduction <add>, %91, %cst_44 [0] : vector<44x128xf32> to vector<128xf32>
    %93 = vector.shape_cast %92 : vector<128xf32> to vector<1x128xf32>
    %cst_45 = arith.constant 4.400000e+01 : f32
    %94 = vector.broadcast %cst_45 : f32 to vector<1x128xf32>
    %95 = arith.divf %93, %94 : vector<1x128xf32>
    %96 = vector.broadcast %95 : vector<1x128xf32> to vector<44x128xf32>
    %97 = arith.subf %91, %96 : vector<44x128xf32>
    %98 = arith.mulf %97, %97 : vector<44x128xf32>
    %cst_46 = arith.constant dense<0.000000e+00> : vector<128xf32>
    %99 = vector.multi_reduction <add>, %98, %cst_46 [0] : vector<44x128xf32> to vector<128xf32>
    %100 = vector.shape_cast %99 : vector<128xf32> to vector<1x128xf32>
    %cst_47 = arith.constant 4.400000e+01 : f32
    %101 = vector.broadcast %cst_47 : f32 to vector<1x128xf32>
    %102 = arith.divf %100, %101 : vector<1x128xf32>
    %cst_48 = arith.constant 9.99999974E-6 : f32
    %103 = vector.broadcast %cst_48 : f32 to vector<1x128xf32>
    %104 = arith.addf %102, %103 : vector<1x128xf32>
    %105 = math.rsqrt %104 : vector<1x128xf32>
    %106 = vector.broadcast %105 : vector<1x128xf32> to vector<44x128xf32>
    %107 = arith.mulf %97, %106 : vector<44x128xf32>
    %108 = vector.broadcast %77 : vector<1x128xf32> to vector<44x128xf32>
    %109 = arith.mulf %107, %108 : vector<44x128xf32>
    %110 = vector.broadcast %78 : vector<1x128xf32> to vector<44x128xf32>
    %111 = arith.addf %109, %110 : vector<44x128xf32>
    %112 = vector.shape_cast %111 : vector<44x128xf32> to vector<2x22x128xf32>
    %c0_49 = arith.constant 0 : index
    %c0_50 = arith.constant 0 : index
    %113 = vector.load %arg14[%c0_49, %c0_50] : memref<128x128xf32, #tpu.memory_space<vmem>>, vector<128x128xf32>
    %c0_51 = arith.constant 0 : index
    %c0_52 = arith.constant 0 : index
    %114 = vector.load %arg15[%c0_51, %c0_52] : memref<1x128xf32, #tpu.memory_space<vmem>>, vector<1x128xf32>
    %c0_53 = arith.constant 0 : index
    %c0_54 = arith.constant 0 : index
    %115 = vector.load %arg16[%c0_53, %c0_54] : memref<1x128xf32, #tpu.memory_space<vmem>>, vector<1x128xf32>
    %c0_55 = arith.constant 0 : index
    %c0_56 = arith.constant 0 : index
    %116 = vector.load %arg17[%c0_55, %c0_56] : memref<1x128xf32, #tpu.memory_space<vmem>>, vector<1x128xf32>
    %117 = vector.shape_cast %112 : vector<2x22x128xf32> to vector<44x128xf32>
    %cst_57 = arith.constant dense<0.000000e+00> : vector<44x128xf32>
    %118 = tpu.matmul %117, %113, %cst_57 {dimension_numbers = #tpu.dot_dimension_numbers<[1], [0], [0], [1], [0, 0, 1, 1], [], []>} : vector<44x128xf32>, vector<128x128xf32>, vector<44x128xf32> -> vector<44x128xf32>
    %119 = vector.broadcast %114 : vector<1x128xf32> to vector<44x128xf32>
    %120 = arith.addf %118, %119 : vector<44x128xf32>
    %cst_58 = arith.constant 0.000000e+00 : f32
    %121 = vector.broadcast %cst_58 : f32 to vector<44x128xf32>
    %122 = arith.cmpf oge, %120, %121 : vector<44x128xf32>
    %cst_59 = arith.constant 0.00999999977 : f32
    %123 = vector.broadcast %cst_59 : f32 to vector<44x128xf32>
    %124 = arith.mulf %123, %120 : vector<44x128xf32>
    %125 = arith.select %122, %120, %124 : vector<44x128xi1>, vector<44x128xf32>
    %cst_60 = arith.constant dense<0.000000e+00> : vector<128xf32>
    %126 = vector.multi_reduction <add>, %125, %cst_60 [0] : vector<44x128xf32> to vector<128xf32>
    %127 = vector.shape_cast %126 : vector<128xf32> to vector<1x128xf32>
    %cst_61 = arith.constant 4.400000e+01 : f32
    %128 = vector.broadcast %cst_61 : f32 to vector<1x128xf32>
    %129 = arith.divf %127, %128 : vector<1x128xf32>
    %130 = vector.broadcast %129 : vector<1x128xf32> to vector<44x128xf32>
    %131 = arith.subf %125, %130 : vector<44x128xf32>
    %132 = arith.mulf %131, %131 : vector<44x128xf32>
    %cst_62 = arith.constant dense<0.000000e+00> : vector<128xf32>
    %133 = vector.multi_reduction <add>, %132, %cst_62 [0] : vector<44x128xf32> to vector<128xf32>
    %134 = vector.shape_cast %133 : vector<128xf32> to vector<1x128xf32>
    %cst_63 = arith.constant 4.400000e+01 : f32
    %135 = vector.broadcast %cst_63 : f32 to vector<1x128xf32>
    %136 = arith.divf %134, %135 : vector<1x128xf32>
    %cst_64 = arith.constant 9.99999974E-6 : f32
    %137 = vector.broadcast %cst_64 : f32 to vector<1x128xf32>
    %138 = arith.addf %136, %137 : vector<1x128xf32>
    %139 = math.rsqrt %138 : vector<1x128xf32>
    %140 = vector.broadcast %139 : vector<1x128xf32> to vector<44x128xf32>
    %141 = arith.mulf %131, %140 : vector<44x128xf32>
    %142 = vector.broadcast %115 : vector<1x128xf32> to vector<44x128xf32>
    %143 = arith.mulf %141, %142 : vector<44x128xf32>
    %144 = vector.broadcast %116 : vector<1x128xf32> to vector<44x128xf32>
    %145 = arith.addf %143, %144 : vector<44x128xf32>
    %146 = vector.shape_cast %145 : vector<44x128xf32> to vector<2x22x128xf32>
    %c0_65 = arith.constant 0 : index
    %c0_66 = arith.constant 0 : index
    %147 = vector.load %arg18[%c0_65, %c0_66] : memref<384x128xf32, #tpu.memory_space<vmem>>, vector<384x128xf32>
    %c0_67 = arith.constant 0 : index
    %c0_68 = arith.constant 0 : index
    %148 = vector.load %arg19[%c0_67, %c0_68] : memref<1x128xf32, #tpu.memory_space<vmem>>, vector<1x128xf32>
    %c0_69 = arith.constant 0 : index
    %c0_70 = arith.constant 0 : index
    %149 = vector.load %arg20[%c0_69, %c0_70] : memref<1x128xf32, #tpu.memory_space<vmem>>, vector<1x128xf32>
    %c0_71 = arith.constant 0 : index
    %c0_72 = arith.constant 0 : index
    %150 = vector.load %arg21[%c0_71, %c0_72] : memref<1x128xf32, #tpu.memory_space<vmem>>, vector<1x128xf32>
    %151 = vector.extract_strided_slice %146 {offsets = [0, 0, 0], sizes = [2, 16, 128], strides = [1, 1, 1]} : vector<2x22x128xf32> to vector<2x16x128xf32>
    %152 = vector.extract_strided_slice %146 {offsets = [0, 3, 0], sizes = [2, 16, 128], strides = [1, 1, 1]} : vector<2x22x128xf32> to vector<2x16x128xf32>
    %153 = vector.extract_strided_slice %146 {offsets = [0, 6, 0], sizes = [2, 16, 128], strides = [1, 1, 1]} : vector<2x22x128xf32> to vector<2x16x128xf32>
    %154 = tpu.concatenate %151, %152, %153 in 2 : vector<2x16x128xf32>, vector<2x16x128xf32>, vector<2x16x128xf32> -> vector<2x16x384xf32>
    %155 = vector.shape_cast %154 : vector<2x16x384xf32> to vector<32x384xf32>
    %cst_73 = arith.constant dense<0.000000e+00> : vector<32x128xf32>
    %156 = tpu.matmul %155, %147, %cst_73 {dimension_numbers = #tpu.dot_dimension_numbers<[1], [0], [0], [1], [0, 0, 1, 1], [], []>} : vector<32x384xf32>, vector<384x128xf32>, vector<32x128xf32> -> vector<32x128xf32>
    %157 = vector.broadcast %148 : vector<1x128xf32> to vector<32x128xf32>
    %158 = arith.addf %156, %157 : vector<32x128xf32>
    %cst_74 = arith.constant 0.000000e+00 : f32
    %159 = vector.broadcast %cst_74 : f32 to vector<32x128xf32>
    %160 = arith.cmpf oge, %158, %159 : vector<32x128xf32>
    %cst_75 = arith.constant 0.00999999977 : f32
    %161 = vector.broadcast %cst_75 : f32 to vector<32x128xf32>
    %162 = arith.mulf %161, %158 : vector<32x128xf32>
    %163 = arith.select %160, %158, %162 : vector<32x128xi1>, vector<32x128xf32>
    %cst_76 = arith.constant dense<0.000000e+00> : vector<128xf32>
    %164 = vector.multi_reduction <add>, %163, %cst_76 [0] : vector<32x128xf32> to vector<128xf32>
    %165 = vector.shape_cast %164 : vector<128xf32> to vector<1x128xf32>
    %cst_77 = arith.constant 3.200000e+01 : f32
    %166 = vector.broadcast %cst_77 : f32 to vector<1x128xf32>
    %167 = arith.divf %165, %166 : vector<1x128xf32>
    %168 = vector.broadcast %167 : vector<1x128xf32> to vector<32x128xf32>
    %169 = arith.subf %163, %168 : vector<32x128xf32>
    %170 = arith.mulf %169, %169 : vector<32x128xf32>
    %cst_78 = arith.constant dense<0.000000e+00> : vector<128xf32>
    %171 = vector.multi_reduction <add>, %170, %cst_78 [0] : vector<32x128xf32> to vector<128xf32>
    %172 = vector.shape_cast %171 : vector<128xf32> to vector<1x128xf32>
    %cst_79 = arith.constant 3.200000e+01 : f32
    %173 = vector.broadcast %cst_79 : f32 to vector<1x128xf32>
    %174 = arith.divf %172, %173 : vector<1x128xf32>
    %cst_80 = arith.constant 9.99999974E-6 : f32
    %175 = vector.broadcast %cst_80 : f32 to vector<1x128xf32>
    %176 = arith.addf %174, %175 : vector<1x128xf32>
    %177 = math.rsqrt %176 : vector<1x128xf32>
    %178 = vector.broadcast %177 : vector<1x128xf32> to vector<32x128xf32>
    %179 = arith.mulf %169, %178 : vector<32x128xf32>
    %180 = vector.broadcast %149 : vector<1x128xf32> to vector<32x128xf32>
    %181 = arith.mulf %179, %180 : vector<32x128xf32>
    %182 = vector.broadcast %150 : vector<1x128xf32> to vector<32x128xf32>
    %183 = arith.addf %181, %182 : vector<32x128xf32>
    %184 = vector.shape_cast %183 : vector<32x128xf32> to vector<2x16x128xf32>
    %c0_81 = arith.constant 0 : index
    %c0_82 = arith.constant 0 : index
    %185 = vector.load %arg22[%c0_81, %c0_82] : memref<128x128xf32, #tpu.memory_space<vmem>>, vector<128x128xf32>
    %c0_83 = arith.constant 0 : index
    %c0_84 = arith.constant 0 : index
    %186 = vector.load %arg23[%c0_83, %c0_84] : memref<1x128xf32, #tpu.memory_space<vmem>>, vector<1x128xf32>
    %c0_85 = arith.constant 0 : index
    %c0_86 = arith.constant 0 : index
    %187 = vector.load %arg24[%c0_85, %c0_86] : memref<1x128xf32, #tpu.memory_space<vmem>>, vector<1x128xf32>
    %c0_87 = arith.constant 0 : index
    %c0_88 = arith.constant 0 : index
    %188 = vector.load %arg25[%c0_87, %c0_88] : memref<1x128xf32, #tpu.memory_space<vmem>>, vector<1x128xf32>
    %189 = vector.shape_cast %184 : vector<2x16x128xf32> to vector<32x128xf32>
    %cst_89 = arith.constant dense<0.000000e+00> : vector<32x128xf32>
    %190 = tpu.matmul %189, %185, %cst_89 {dimension_numbers = #tpu.dot_dimension_numbers<[1], [0], [0], [1], [0, 0, 1, 1], [], []>} : vector<32x128xf32>, vector<128x128xf32>, vector<32x128xf32> -> vector<32x128xf32>
    %191 = vector.broadcast %186 : vector<1x128xf32> to vector<32x128xf32>
    %192 = arith.addf %190, %191 : vector<32x128xf32>
    %cst_90 = arith.constant 0.000000e+00 : f32
    %193 = vector.broadcast %cst_90 : f32 to vector<32x128xf32>
    %194 = arith.cmpf oge, %192, %193 : vector<32x128xf32>
    %cst_91 = arith.constant 0.00999999977 : f32
    %195 = vector.broadcast %cst_91 : f32 to vector<32x128xf32>
    %196 = arith.mulf %195, %192 : vector<32x128xf32>
    %197 = arith.select %194, %192, %196 : vector<32x128xi1>, vector<32x128xf32>
    %cst_92 = arith.constant dense<0.000000e+00> : vector<128xf32>
    %198 = vector.multi_reduction <add>, %197, %cst_92 [0] : vector<32x128xf32> to vector<128xf32>
    %199 = vector.shape_cast %198 : vector<128xf32> to vector<1x128xf32>
    %cst_93 = arith.constant 3.200000e+01 : f32
    %200 = vector.broadcast %cst_93 : f32 to vector<1x128xf32>
    %201 = arith.divf %199, %200 : vector<1x128xf32>
    %202 = vector.broadcast %201 : vector<1x128xf32> to vector<32x128xf32>
    %203 = arith.subf %197, %202 : vector<32x128xf32>
    %204 = arith.mulf %203, %203 : vector<32x128xf32>
    %cst_94 = arith.constant dense<0.000000e+00> : vector<128xf32>
    %205 = vector.multi_reduction <add>, %204, %cst_94 [0] : vector<32x128xf32> to vector<128xf32>
    %206 = vector.shape_cast %205 : vector<128xf32> to vector<1x128xf32>
    %cst_95 = arith.constant 3.200000e+01 : f32
    %207 = vector.broadcast %cst_95 : f32 to vector<1x128xf32>
    %208 = arith.divf %206, %207 : vector<1x128xf32>
    %cst_96 = arith.constant 9.99999974E-6 : f32
    %209 = vector.broadcast %cst_96 : f32 to vector<1x128xf32>
    %210 = arith.addf %208, %209 : vector<1x128xf32>
    %211 = math.rsqrt %210 : vector<1x128xf32>
    %212 = vector.broadcast %211 : vector<1x128xf32> to vector<32x128xf32>
    %213 = arith.mulf %203, %212 : vector<32x128xf32>
    %214 = vector.broadcast %187 : vector<1x128xf32> to vector<32x128xf32>
    %215 = arith.mulf %213, %214 : vector<32x128xf32>
    %216 = vector.broadcast %188 : vector<1x128xf32> to vector<32x128xf32>
    %217 = arith.addf %215, %216 : vector<32x128xf32>
    %218 = vector.shape_cast %217 : vector<32x128xf32> to vector<2x16x128xf32>
    %c0_97 = arith.constant 0 : index
    %c0_98 = arith.constant 0 : index
    %219 = vector.load %arg26[%c0_97, %c0_98] : memref<384x128xf32, #tpu.memory_space<vmem>>, vector<384x128xf32>
    %c0_99 = arith.constant 0 : index
    %c0_100 = arith.constant 0 : index
    %220 = vector.load %arg27[%c0_99, %c0_100] : memref<1x128xf32, #tpu.memory_space<vmem>>, vector<1x128xf32>
    %c0_101 = arith.constant 0 : index
    %c0_102 = arith.constant 0 : index
    %221 = vector.load %arg28[%c0_101, %c0_102] : memref<1x128xf32, #tpu.memory_space<vmem>>, vector<1x128xf32>
    %c0_103 = arith.constant 0 : index
    %c0_104 = arith.constant 0 : index
    %222 = vector.load %arg29[%c0_103, %c0_104] : memref<1x128xf32, #tpu.memory_space<vmem>>, vector<1x128xf32>
    %223 = vector.extract_strided_slice %218 {offsets = [0, 0, 0], sizes = [2, 8, 128], strides = [1, 1, 1]} : vector<2x16x128xf32> to vector<2x8x128xf32>
    %224 = vector.extract_strided_slice %218 {offsets = [0, 4, 0], sizes = [2, 8, 128], strides = [1, 1, 1]} : vector<2x16x128xf32> to vector<2x8x128xf32>
    %225 = vector.extract_strided_slice %218 {offsets = [0, 8, 0], sizes = [2, 8, 128], strides = [1, 1, 1]} : vector<2x16x128xf32> to vector<2x8x128xf32>
    %226 = tpu.concatenate %223, %224, %225 in 2 : vector<2x8x128xf32>, vector<2x8x128xf32>, vector<2x8x128xf32> -> vector<2x8x384xf32>
    %227 = vector.shape_cast %226 : vector<2x8x384xf32> to vector<16x384xf32>
    %cst_105 = arith.constant dense<0.000000e+00> : vector<16x128xf32>
    %228 = tpu.matmul %227, %219, %cst_105 {dimension_numbers = #tpu.dot_dimension_numbers<[1], [0], [0], [1], [0, 0, 1, 1], [], []>} : vector<16x384xf32>, vector<384x128xf32>, vector<16x128xf32> -> vector<16x128xf32>
    %229 = vector.broadcast %220 : vector<1x128xf32> to vector<16x128xf32>
    %230 = arith.addf %228, %229 : vector<16x128xf32>
    %cst_106 = arith.constant 0.000000e+00 : f32
    %231 = vector.broadcast %cst_106 : f32 to vector<16x128xf32>
    %232 = arith.cmpf oge, %230, %231 : vector<16x128xf32>
    %cst_107 = arith.constant 0.00999999977 : f32
    %233 = vector.broadcast %cst_107 : f32 to vector<16x128xf32>
    %234 = arith.mulf %233, %230 : vector<16x128xf32>
    %235 = arith.select %232, %230, %234 : vector<16x128xi1>, vector<16x128xf32>
    %cst_108 = arith.constant dense<0.000000e+00> : vector<128xf32>
    %236 = vector.multi_reduction <add>, %235, %cst_108 [0] : vector<16x128xf32> to vector<128xf32>
    %237 = vector.shape_cast %236 : vector<128xf32> to vector<1x128xf32>
    %cst_109 = arith.constant 1.600000e+01 : f32
    %238 = vector.broadcast %cst_109 : f32 to vector<1x128xf32>
    %239 = arith.divf %237, %238 : vector<1x128xf32>
    %240 = vector.broadcast %239 : vector<1x128xf32> to vector<16x128xf32>
    %241 = arith.subf %235, %240 : vector<16x128xf32>
    %242 = arith.mulf %241, %241 : vector<16x128xf32>
    %cst_110 = arith.constant dense<0.000000e+00> : vector<128xf32>
    %243 = vector.multi_reduction <add>, %242, %cst_110 [0] : vector<16x128xf32> to vector<128xf32>
    %244 = vector.shape_cast %243 : vector<128xf32> to vector<1x128xf32>
    %cst_111 = arith.constant 1.600000e+01 : f32
    %245 = vector.broadcast %cst_111 : f32 to vector<1x128xf32>
    %246 = arith.divf %244, %245 : vector<1x128xf32>
    %cst_112 = arith.constant 9.99999974E-6 : f32
    %247 = vector.broadcast %cst_112 : f32 to vector<1x128xf32>
    %248 = arith.addf %246, %247 : vector<1x128xf32>
    %249 = math.rsqrt %248 : vector<1x128xf32>
    %250 = vector.broadcast %249 : vector<1x128xf32> to vector<16x128xf32>
    %251 = arith.mulf %241, %250 : vector<16x128xf32>
    %252 = vector.broadcast %221 : vector<1x128xf32> to vector<16x128xf32>
    %253 = arith.mulf %251, %252 : vector<16x128xf32>
    %254 = vector.broadcast %222 : vector<1x128xf32> to vector<16x128xf32>
    %255 = arith.addf %253, %254 : vector<16x128xf32>
    %256 = vector.shape_cast %255 : vector<16x128xf32> to vector<2x8x128xf32>
    %c0_113 = arith.constant 0 : index
    %c0_114 = arith.constant 0 : index
    %257 = vector.load %arg30[%c0_113, %c0_114] : memref<128x128xf32, #tpu.memory_space<vmem>>, vector<128x128xf32>
    %c0_115 = arith.constant 0 : index
    %c0_116 = arith.constant 0 : index
    %258 = vector.load %arg31[%c0_115, %c0_116] : memref<1x128xf32, #tpu.memory_space<vmem>>, vector<1x128xf32>
    %c0_117 = arith.constant 0 : index
    %c0_118 = arith.constant 0 : index
    %259 = vector.load %arg32[%c0_117, %c0_118] : memref<1x128xf32, #tpu.memory_space<vmem>>, vector<1x128xf32>
    %c0_119 = arith.constant 0 : index
    %c0_120 = arith.constant 0 : index
    %260 = vector.load %arg33[%c0_119, %c0_120] : memref<1x128xf32, #tpu.memory_space<vmem>>, vector<1x128xf32>
    %261 = vector.shape_cast %256 : vector<2x8x128xf32> to vector<16x128xf32>
    %cst_121 = arith.constant dense<0.000000e+00> : vector<16x128xf32>
    %262 = tpu.matmul %261, %257, %cst_121 {dimension_numbers = #tpu.dot_dimension_numbers<[1], [0], [0], [1], [0, 0, 1, 1], [], []>} : vector<16x128xf32>, vector<128x128xf32>, vector<16x128xf32> -> vector<16x128xf32>
    %263 = vector.broadcast %258 : vector<1x128xf32> to vector<16x128xf32>
    %264 = arith.addf %262, %263 : vector<16x128xf32>
    %cst_122 = arith.constant 0.000000e+00 : f32
    %265 = vector.broadcast %cst_122 : f32 to vector<16x128xf32>
    %266 = arith.cmpf oge, %264, %265 : vector<16x128xf32>
    %cst_123 = arith.constant 0.00999999977 : f32
    %267 = vector.broadcast %cst_123 : f32 to vector<16x128xf32>
    %268 = arith.mulf %267, %264 : vector<16x128xf32>
    %269 = arith.select %266, %264, %268 : vector<16x128xi1>, vector<16x128xf32>
    %cst_124 = arith.constant dense<0.000000e+00> : vector<128xf32>
    %270 = vector.multi_reduction <add>, %269, %cst_124 [0] : vector<16x128xf32> to vector<128xf32>
    %271 = vector.shape_cast %270 : vector<128xf32> to vector<1x128xf32>
    %cst_125 = arith.constant 1.600000e+01 : f32
    %272 = vector.broadcast %cst_125 : f32 to vector<1x128xf32>
    %273 = arith.divf %271, %272 : vector<1x128xf32>
    %274 = vector.broadcast %273 : vector<1x128xf32> to vector<16x128xf32>
    %275 = arith.subf %269, %274 : vector<16x128xf32>
    %276 = arith.mulf %275, %275 : vector<16x128xf32>
    %cst_126 = arith.constant dense<0.000000e+00> : vector<128xf32>
    %277 = vector.multi_reduction <add>, %276, %cst_126 [0] : vector<16x128xf32> to vector<128xf32>
    %278 = vector.shape_cast %277 : vector<128xf32> to vector<1x128xf32>
    %cst_127 = arith.constant 1.600000e+01 : f32
    %279 = vector.broadcast %cst_127 : f32 to vector<1x128xf32>
    %280 = arith.divf %278, %279 : vector<1x128xf32>
    %cst_128 = arith.constant 9.99999974E-6 : f32
    %281 = vector.broadcast %cst_128 : f32 to vector<1x128xf32>
    %282 = arith.addf %280, %281 : vector<1x128xf32>
    %283 = math.rsqrt %282 : vector<1x128xf32>
    %284 = vector.broadcast %283 : vector<1x128xf32> to vector<16x128xf32>
    %285 = arith.mulf %275, %284 : vector<16x128xf32>
    %286 = vector.broadcast %259 : vector<1x128xf32> to vector<16x128xf32>
    %287 = arith.mulf %285, %286 : vector<16x128xf32>
    %288 = vector.broadcast %260 : vector<1x128xf32> to vector<16x128xf32>
    %289 = arith.addf %287, %288 : vector<16x128xf32>
    %290 = vector.shape_cast %289 : vector<16x128xf32> to vector<2x8x128xf32>
    %c0_129 = arith.constant 0 : index
    %c0_130 = arith.constant 0 : index
    %291 = vector.load %arg34[%c0_129, %c0_130] : memref<128x384xf32, #tpu.memory_space<vmem>>, vector<128x384xf32>
    %c0_131 = arith.constant 0 : index
    %c0_132 = arith.constant 0 : index
    %292 = vector.load %arg35[%c0_131, %c0_132] : memref<1x384xf32, #tpu.memory_space<vmem>>, vector<1x384xf32>
    %c0_133 = arith.constant 0 : index
    %c0_134 = arith.constant 0 : index
    %293 = vector.load %arg36[%c0_133, %c0_134] : memref<1x384xf32, #tpu.memory_space<vmem>>, vector<1x384xf32>
    %c0_135 = arith.constant 0 : index
    %c0_136 = arith.constant 0 : index
    %294 = vector.load %arg37[%c0_135, %c0_136] : memref<1x384xf32, #tpu.memory_space<vmem>>, vector<1x384xf32>
    %295 = vector.shape_cast %290 : vector<2x8x128xf32> to vector<16x128xf32>
    %cst_137 = arith.constant dense<0.000000e+00> : vector<16x384xf32>
    %296 = tpu.matmul %295, %291, %cst_137 {dimension_numbers = #tpu.dot_dimension_numbers<[1], [0], [0], [1], [0, 0, 1, 1], [], []>} : vector<16x128xf32>, vector<128x384xf32>, vector<16x384xf32> -> vector<16x384xf32>
    %297 = vector.broadcast %292 : vector<1x384xf32> to vector<16x384xf32>
    %298 = arith.addf %296, %297 : vector<16x384xf32>
    %cst_138 = arith.constant 0.000000e+00 : f32
    %299 = vector.broadcast %cst_138 : f32 to vector<16x384xf32>
    %300 = arith.cmpf oge, %298, %299 : vector<16x384xf32>
    %cst_139 = arith.constant 0.00999999977 : f32
    %301 = vector.broadcast %cst_139 : f32 to vector<16x384xf32>
    %302 = arith.mulf %301, %298 : vector<16x384xf32>
    %303 = arith.select %300, %298, %302 : vector<16x384xi1>, vector<16x384xf32>
    %cst_140 = arith.constant dense<0.000000e+00> : vector<384xf32>
    %304 = vector.multi_reduction <add>, %303, %cst_140 [0] : vector<16x384xf32> to vector<384xf32>
    %305 = vector.shape_cast %304 : vector<384xf32> to vector<1x384xf32>
    %cst_141 = arith.constant 1.600000e+01 : f32
    %306 = vector.broadcast %cst_141 : f32 to vector<1x384xf32>
    %307 = arith.divf %305, %306 : vector<1x384xf32>
    %308 = vector.broadcast %307 : vector<1x384xf32> to vector<16x384xf32>
    %309 = arith.subf %303, %308 : vector<16x384xf32>
    %310 = arith.mulf %309, %309 : vector<16x384xf32>
    %cst_142 = arith.constant dense<0.000000e+00> : vector<384xf32>
    %311 = vector.multi_reduction <add>, %310, %cst_142 [0] : vector<16x384xf32> to vector<384xf32>
    %312 = vector.shape_cast %311 : vector<384xf32> to vector<1x384xf32>
    %cst_143 = arith.constant 1.600000e+01 : f32
    %313 = vector.broadcast %cst_143 : f32 to vector<1x384xf32>
    %314 = arith.divf %312, %313 : vector<1x384xf32>
    %cst_144 = arith.constant 9.99999974E-6 : f32
    %315 = vector.broadcast %cst_144 : f32 to vector<1x384xf32>
    %316 = arith.addf %314, %315 : vector<1x384xf32>
    %317 = math.rsqrt %316 : vector<1x384xf32>
    %318 = vector.broadcast %317 : vector<1x384xf32> to vector<16x384xf32>
    %319 = arith.mulf %309, %318 : vector<16x384xf32>
    %320 = vector.broadcast %293 : vector<1x384xf32> to vector<16x384xf32>
    %321 = arith.mulf %319, %320 : vector<16x384xf32>
    %322 = vector.broadcast %294 : vector<1x384xf32> to vector<16x384xf32>
    %323 = arith.addf %321, %322 : vector<16x384xf32>
    %324 = vector.shape_cast %323 : vector<16x384xf32> to vector<2x8x384xf32>
    %cst_145 = arith.constant dense<0.000000e+00> : vector<2x384xf32>
    %325 = vector.multi_reduction <add>, %324, %cst_145 [1] : vector<2x8x384xf32> to vector<2x384xf32>
    %cst_146 = arith.constant 8.000000e+00 : f32
    %326 = vector.broadcast %cst_146 : f32 to vector<2x384xf32>
    %327 = arith.divf %325, %326 : vector<2x384xf32>
    %328 = vector.shape_cast %327 : vector<2x384xf32> to vector<2x1x384xf32>
    %329 = vector.broadcast %328 : vector<2x1x384xf32> to vector<2x8x384xf32>
    %330 = arith.subf %324, %329 : vector<2x8x384xf32>
    %331 = arith.mulf %330, %330 : vector<2x8x384xf32>
    %cst_147 = arith.constant dense<0.000000e+00> : vector<2x384xf32>
    %332 = vector.multi_reduction <add>, %331, %cst_147 [1] : vector<2x8x384xf32> to vector<2x384xf32>
    %cst_148 = arith.constant 1.000000e-10 : f32
    %333 = vector.broadcast %cst_148 : f32 to vector<2x384xf32>
    %334 = arith.maximumf %332, %333 : vector<2x384xf32>
    %cst_149 = arith.constant 8.000000e+00 : f32
    %335 = vector.broadcast %cst_149 : f32 to vector<2x384xf32>
    %336 = arith.divf %334, %335 : vector<2x384xf32>
    %337 = math.sqrt %336 : vector<2x384xf32>
    %c0_150 = arith.constant 0 : index
    %c0_151 = arith.constant 0 : index
    %338 = vector.load %arg38[%c0_150, %c0_151] : memref<384x128xf32, #tpu.memory_space<vmem>>, vector<384x128xf32>
    %c0_152 = arith.constant 0 : index
    %c0_153 = arith.constant 0 : index
    %339 = vector.load %arg39[%c0_152, %c0_153] : memref<384x128xf32, #tpu.memory_space<vmem>>, vector<384x128xf32>
    %c0_154 = arith.constant 0 : index
    %c0_155 = arith.constant 0 : index
    %340 = vector.load %arg40[%c0_154, %c0_155] : memref<1x128xf32, #tpu.memory_space<vmem>>, vector<1x128xf32>
    %cst_156 = arith.constant dense<0.000000e+00> : vector<2x128xf32>
    %341 = tpu.matmul %327, %338, %cst_156 {dimension_numbers = #tpu.dot_dimension_numbers<[1], [0], [0], [1], [0, 0, 1, 1], [], []>} : vector<2x384xf32>, vector<384x128xf32>, vector<2x128xf32> -> vector<2x128xf32>
    %cst_157 = arith.constant dense<0.000000e+00> : vector<2x128xf32>
    %342 = tpu.matmul %337, %339, %cst_157 {dimension_numbers = #tpu.dot_dimension_numbers<[1], [0], [0], [1], [0, 0, 1, 1], [], []>} : vector<2x384xf32>, vector<384x128xf32>, vector<2x128xf32> -> vector<2x128xf32>
    %343 = arith.addf %341, %342 : vector<2x128xf32>
    %344 = vector.broadcast %340 : vector<1x128xf32> to vector<2x128xf32>
    %345 = arith.addf %343, %344 : vector<2x128xf32>
    %c0_158 = arith.constant 0 : index
    %c0_159 = arith.constant 0 : index
    %346 = vector.load %arg41[%c0_158, %c0_159] : memref<2x128xf32, #tpu.memory_space<vmem>>, vector<2x128xf32>
    tpu.vector_store %arg41[%c0_158, %c0_159], %345 {strides = array<i32>} : memref<2x128xf32, #tpu.memory_space<vmem>>, vector<2x128xf32>,
    return
  }
  func.func @transform_0(%arg0: i32) -> (i32, i32, i32) {
    %c0_i32 = arith.constant 0 : i32
    %c0_i32_0 = arith.constant 0 : i32
    %c0_i32_1 = arith.constant 0 : i32
    %c0_i32_2 = arith.constant 0 : i32
    return %c0_i32, %c0_i32_0, %c0_i32_1 : i32, i32, i32
  }
  func.func @transform_1(%arg0: i32) -> (i32, i32) {
    %c0_i32 = arith.constant 0 : i32
    %c0_i32_0 = arith.constant 0 : i32
    %c0_i32_1 = arith.constant 0 : i32
    return %c0_i32, %c0_i32_0 : i32, i32
  }
  func.func @transform_2(%arg0: i32) -> (i32, i32) {
    %c0_i32 = arith.constant 0 : i32
    %c0_i32_0 = arith.constant 0 : i32
    %c0_i32_1 = arith.constant 0 : i32
    return %c0_i32, %c0_i32_0 : i32, i32
  }
  func.func @transform_3(%arg0: i32) -> (i32, i32) {
    %c0_i32 = arith.constant 0 : i32
    %c0_i32_0 = arith.constant 0 : i32
    %c0_i32_1 = arith.constant 0 : i32
    return %c0_i32, %c0_i32_0 : i32, i32
  }
  func.func @transform_4(%arg0: i32) -> (i32, i32) {
    %c0_i32 = arith.constant 0 : i32
    %c0_i32_0 = arith.constant 0 : i32
    %c0_i32_1 = arith.constant 0 : i32
    return %c0_i32, %c0_i32_0 : i32, i32
  }
  func.func @transform_5(%arg0: i32) -> (i32, i32) {
    %c0_i32 = arith.constant 0 : i32
    %c0_i32_0 = arith.constant 0 : i32
    %c0_i32_1 = arith.constant 0 : i32
    return %c0_i32, %c0_i32_0 : i32, i32
  }
  func.func @transform_6(%arg0: i32) -> (i32, i32) {
    %c0_i32 = arith.constant 0 : i32
    %c0_i32_0 = arith.constant 0 : i32
    %c0_i32_1 = arith.constant 0 : i32
    return %c0_i32, %c0_i32_0 : i32, i32
  }
  func.func @transform_7(%arg0: i32) -> (i32, i32) {
    %c0_i32 = arith.constant 0 : i32
    %c0_i32_0 = arith.constant 0 : i32
    %c0_i32_1 = arith.constant 0 : i32
    return %c0_i32, %c0_i32_0 : i32, i32
  }
  func.func @transform_8(%arg0: i32) -> (i32, i32) {
    %c0_i32 = arith.constant 0 : i32
    %c0_i32_0 = arith.constant 0 : i32
    %c0_i32_1 = arith.constant 0 : i32
    return %c0_i32, %c0_i32_0 : i32, i32
  }
  func.func @transform_9(%arg0: i32) -> (i32, i32) {
    %c0_i32 = arith.constant 0 : i32
    %c0_i32_0 = arith.constant 0 : i32
    %c0_i32_1 = arith.constant 0 : i32
    return %c0_i32, %c0_i32_0 : i32, i32
  }
  func.func @transform_10(%arg0: i32) -> (i32, i32) {
    %c0_i32 = arith.constant 0 : i32
    %c0_i32_0 = arith.constant 0 : i32
    %c0_i32_1 = arith.constant 0 : i32
    return %c0_i32, %c0_i32_0 : i32, i32
  }
  func.func @transform_11(%arg0: i32) -> (i32, i32) {
    %c0_i32 = arith.constant 0 : i32
    %c0_i32_0 = arith.constant 0 : i32
    %c0_i32_1 = arith.constant 0 : i32
    return %c0_i32, %c0_i32_0 : i32, i32
  }
  func.func @transform_12(%arg0: i32) -> (i32, i32) {
    %c0_i32 = arith.constant 0 : i32
    %c0_i32_0 = arith.constant 0 : i32
    %c0_i32_1 = arith.constant 0 : i32
    return %c0_i32, %c0_i32_0 : i32, i32
  }
  func.func @transform_13(%arg0: i32) -> (i32, i32) {
    %c0_i32 = arith.constant 0 : i32
    %c0_i32_0 = arith.constant 0 : i32
    %c0_i32_1 = arith.constant 0 : i32
    return %c0_i32, %c0_i32_0 : i32, i32
  }
  func.func @transform_14(%arg0: i32) -> (i32, i32) {
    %c0_i32 = arith.constant 0 : i32
    %c0_i32_0 = arith.constant 0 : i32
    %c0_i32_1 = arith.constant 0 : i32
    return %c0_i32, %c0_i32_0 : i32, i32
  }
  func.func @transform_15(%arg0: i32) -> (i32, i32) {
    %c0_i32 = arith.constant 0 : i32
    %c0_i32_0 = arith.constant 0 : i32
    %c0_i32_1 = arith.constant 0 : i32
    return %c0_i32, %c0_i32_0 : i32, i32
  }
  func.func @transform_16(%arg0: i32) -> (i32, i32) {
    %c0_i32 = arith.constant 0 : i32
    %c0_i32_0 = arith.constant 0 : i32
    %c0_i32_1 = arith.constant 0 : i32
    return %c0_i32, %c0_i32_0 : i32, i32
  }
  func.func @transform_17(%arg0: i32) -> (i32, i32) {
    %c0_i32 = arith.constant 0 : i32
    %c0_i32_0 = arith.constant 0 : i32
    %c0_i32_1 = arith.constant 0 : i32
    return %c0_i32, %c0_i32_0 : i32, i32
  }
  func.func @transform_18(%arg0: i32) -> (i32, i32) {
    %c0_i32 = arith.constant 0 : i32
    %c0_i32_0 = arith.constant 0 : i32
    %c0_i32_1 = arith.constant 0 : i32
    return %c0_i32, %c0_i32_0 : i32, i32
  }
  func.func @transform_19(%arg0: i32) -> (i32, i32) {
    %c0_i32 = arith.constant 0 : i32
    %c0_i32_0 = arith.constant 0 : i32
    %c0_i32_1 = arith.constant 0 : i32
    return %c0_i32, %c0_i32_0 : i32, i32
  }
  func.func @transform_20(%arg0: i32) -> (i32, i32) {
    %c0_i32 = arith.constant 0 : i32
    %c0_i32_0 = arith.constant 0 : i32
    %c0_i32_1 = arith.constant 0 : i32
    return %c0_i32, %c0_i32_0 : i32, i32
  }
  func.func @transform_21(%arg0: i32) -> (i32, i32) {
    %c0_i32 = arith.constant 0 : i32
    %c0_i32_0 = arith.constant 0 : i32
    %c0_i32_1 = arith.constant 0 : i32
    return %c0_i32, %c0_i32_0 : i32, i32
  }
  func.func @transform_22(%arg0: i32) -> (i32, i32) {
    %c0_i32 = arith.constant 0 : i32
    %c0_i32_0 = arith.constant 0 : i32
    %c0_i32_1 = arith.constant 0 : i32
    return %c0_i32, %c0_i32_0 : i32, i32
  }
  func.func @transform_23(%arg0: i32) -> (i32, i32) {
    %c0_i32 = arith.constant 0 : i32
    %c0_i32_0 = arith.constant 0 : i32
    %c0_i32_1 = arith.constant 0 : i32
    return %c0_i32, %c0_i32_0 : i32, i32
  }
  func.func @transform_24(%arg0: i32) -> (i32, i32) {
    %c0_i32 = arith.constant 0 : i32
    %c0_i32_0 = arith.constant 0 : i32
    %c0_i32_1 = arith.constant 0 : i32
    return %c0_i32, %c0_i32_0 : i32, i32
  }
  func.func @transform_25(%arg0: i32) -> (i32, i32) {
    %c0_i32 = arith.constant 0 : i32
    %c0_i32_0 = arith.constant 0 : i32
    %c0_i32_1 = arith.constant 0 : i32
    return %c0_i32, %c0_i32_0 : i32, i32
  }
  func.func @transform_26(%arg0: i32) -> (i32, i32) {
    %c0_i32 = arith.constant 0 : i32
    %c0_i32_0 = arith.constant 0 : i32
    %c0_i32_1 = arith.constant 0 : i32
    return %c0_i32, %c0_i32_0 : i32, i32
  }
  func.func @transform_27(%arg0: i32) -> (i32, i32) {
    %c0_i32 = arith.constant 0 : i32
    %c0_i32_0 = arith.constant 0 : i32
    %c0_i32_1 = arith.constant 0 : i32
    return %c0_i32, %c0_i32_0 : i32, i32
  }
  func.func @transform_28(%arg0: i32) -> (i32, i32) {
    %c0_i32 = arith.constant 0 : i32
    %c0_i32_0 = arith.constant 0 : i32
    %c0_i32_1 = arith.constant 0 : i32
    return %c0_i32, %c0_i32_0 : i32, i32
  }
  func.func @transform_29(%arg0: i32) -> (i32, i32) {
    %c0_i32 = arith.constant 0 : i32
    %c0_i32_0 = arith.constant 0 : i32
    %c0_i32_1 = arith.constant 0 : i32
    return %c0_i32, %c0_i32_0 : i32, i32
  }
  func.func @transform_30(%arg0: i32) -> (i32, i32) {
    %c0_i32 = arith.constant 0 : i32
    %c0_i32_0 = arith.constant 0 : i32
    %c0_i32_1 = arith.constant 0 : i32
    return %c0_i32, %c0_i32_0 : i32, i32
  }
  func.func @transform_31(%arg0: i32) -> (i32, i32) {
    %c0_i32 = arith.constant 0 : i32
    %c0_i32_0 = arith.constant 0 : i32
    %c0_i32_1 = arith.constant 0 : i32
    return %c0_i32, %c0_i32_0 : i32, i32
  }
  func.func @transform_32(%arg0: i32) -> (i32, i32) {
    %c0_i32 = arith.constant 0 : i32
    %c0_i32_0 = arith.constant 0 : i32
    %c0_i32_1 = arith.constant 0 : i32
    return %c0_i32, %c0_i32_0 : i32, i32
  }
  func.func @transform_33(%arg0: i32) -> (i32, i32) {
    %c0_i32 = arith.constant 0 : i32
    %c0_i32_0 = arith.constant 0 : i32
    %c0_i32_1 = arith.constant 0 : i32
    return %c0_i32, %c0_i32_0 : i32, i32
  }
  func.func @transform_34(%arg0: i32) -> (i32, i32) {
    %c0_i32 = arith.constant 0 : i32
    %c0_i32_0 = arith.constant 0 : i32
    %c0_i32_1 = arith.constant 0 : i32
    return %c0_i32, %c0_i32_0 : i32, i32
  }
  func.func @transform_35(%arg0: i32) -> (i32, i32) {
    %c0_i32 = arith.constant 0 : i32
    %c0_i32_0 = arith.constant 0 : i32
    %c0_i32_1 = arith.constant 0 : i32
    return %c0_i32, %c0_i32_0 : i32, i32
  }
  func.func @transform_36(%arg0: i32) -> (i32, i32) {
    %c0_i32 = arith.constant 0 : i32
    %c0_i32_0 = arith.constant 0 : i32
    %c0_i32_1 = arith.constant 0 : i32
    return %c0_i32, %c0_i32_0 : i32, i32
  }
  func.func @transform_37(%arg0: i32) -> (i32, i32) {
    %c0_i32 = arith.constant 0 : i32
    %c0_i32_0 = arith.constant 0 : i32
    %c0_i32_1 = arith.constant 0 : i32
    return %c0_i32, %c0_i32_0 : i32, i32
  }
  func.func @transform_38(%arg0: i32) -> (i32, i32) {
    %c0_i32 = arith.constant 0 : i32
    %c0_i32_0 = arith.constant 0 : i32
    %c0_i32_1 = arith.constant 0 : i32
    return %c0_i32, %c0_i32_0 : i32, i32
  }
  func.func @transform_39(%arg0: i32) -> (i32, i32) {
    %c0_i32 = arith.constant 0 : i32
    %c0_i32_0 = arith.constant 0 : i32
    %c0_i32_1 = arith.constant 0 : i32
    return %c0_i32, %c0_i32_0 : i32, i32
  }
  func.func @transform_40(%arg0: i32) -> (i32, i32) {
    %c0_i32 = arith.constant 0 : i32
    %c0_i32_0 = arith.constant 0 : i32
    %c0_i32_1 = arith.constant 0 : i32
    return %c0_i32, %c0_i32_0 : i32, i32
  }
}

</mosaic_0001>

<bundles_post_ra>
// kernel: tpu_custom_call.1
= control target key start
LH: loop header
LB: loop body
LE: loop exit
PB: predicated region body
PF: predicated region fallthrough
CT: control target
= control target key end

     0   :  { %s4244_s6 = smov 1   ;;  %s4245_s10 = smov 2   ;;  %s5628_s0 = inlined_call_operand.smem [shape: u32[41], index: -1, kind: input, shape index: {}] }
   0x1   :  { %s4323_s5 = sld [smem:[%s5628_s0]]   ;;  %s4246_s14 = smov 3  }
   0x2   :  { %s4328_s9 = sld [smem:[%s5628_s0 + %s4244_s6]]   ;;  %s4247_s18 = smov 4  }
   0x3   :  { %s4333_s13 = sld [smem:[%s5628_s0 + %s4245_s10]]   ;;  %s4248_s22 = smov 5  }
   0x4   :  { %s4338_s17 = sld [smem:[%s5628_s0 + %s4246_s14]]   ;;  %s4249_s26 = smov 6  }
   0x5   :  { %s4343_s21 = sld [smem:[%s5628_s0 + %s4247_s18]]   ;;  %s4250_s30 = smov 7  }
   0x6   :  { %s4348_s25 = sld [smem:[%s5628_s0 + %s4248_s22]]   ;;  %s4251_s4 = smov 8  }
   0x7   :  { %5636 = sst [smem:[#allocation48_spill]] %s4323_s5  ;;  %s4252_s10 = smov 9  }
   0x8   :  { %s4353_s29 = sld [smem:[%s5628_s0 + %s4249_s26]]   ;;  %s4253_s15 = smov 10  }
   0x9   :  { %s4358_s3 = sld [smem:[%s5628_s0 + %s4250_s30]]   ;;  %s4254_s20 = smov 11  }
   0xa   :  { %s4363_s8 = sld [smem:[%s5628_s0 + %s4251_s4]]   ;;  %s4255_s26 = smov 12  }
   0xb   :  { %s4368_s14 = sld [smem:[%s5628_s0 + %s4252_s10]]   ;;  %s4256_s1 = smov 13  }
   0xc   :  { %5637 = sst [smem:[#allocation49_spill]] %s4348_s25  ;;  %s4257_s7 = smov 14  }
   0xd   :  { %s4373_s19 = sld [smem:[%s5628_s0 + %s4253_s15]]   ;;  %s4258_s15 = smov 15  }
   0xe   :  { %s4378_s24 = sld [smem:[%s5628_s0 + %s4254_s20]]   ;;  %s4259_s22 = smov 16  }
   0xf   :  { %s4383_s30 = sld [smem:[%s5628_s0 + %s4255_s26]]   ;;  %s4260_s28 = smov 17  }
  0x10   :  { %s4388_s6 = sld [smem:[%s5628_s0 + %s4256_s1]]  }
  0x11   :  { %s4393_s12 = sld [smem:[%s5628_s0 + %s4257_s7]]   ;;  %s4261_s7 = smov 18  }
  0x12   :  { %s4398_s20 = sld [smem:[%s5628_s0 + %s4258_s15]]   ;;  %s4262_s15 = smov 19  }
  0x13   :  { %s4403_s27 = sld [smem:[%s5628_s0 + %s4259_s22]]   ;;  %s4263_s22 = smov 20  }
  0x14   :  { %s4408_s4 = sld [smem:[%s5628_s0 + %s4260_s28]]   ;;  %s4264_s28 = smov 21  }
  0x15   :  { %5638 = sst [smem:[#allocation50_spill]] %s4383_s30 }
  0x16   :  { %s4413_s25 = sld [smem:[%s5628_s0 + %s4261_s7]]   ;;  %s4265_s7 = smov 22  }
  0x17   :  { %5639 = sst [smem:[#allocation51_spill]] %s4393_s12 }
  0x18   :  { %s4418_s5 = sld [smem:[%s5628_s0 + %s4262_s15]]   ;;  %s4266_s15 = smov 23  }
  0x19   :  { %5640 = sst [smem:[#allocation52_spill]] %s4403_s27 }
  0x1a   :  { %5641 = sst [smem:[#allocation53_spill]] %s4408_s4 }
  0x1b   :  { %s4423_s27 = sld [smem:[%s5628_s0 + %s4263_s22]]   ;;  %s4267_s22 = smov 24  }
  0x1c   :  { %5642 = sst [smem:[#allocation54_spill]] %s4413_s25 }
  0x1d   :  { %s4428_s4 = sld [smem:[%s5628_s0 + %s4264_s28]]   ;;  %s4268_s28 = smov 25  }
  0x1e   :  { %5643 = sst [smem:[#allocation55_spill]] %s4418_s5 }
  0x1f   :  { %s4433_s25 = sld [smem:[%s5628_s0 + %s4265_s7]]   ;;  %s4269_s7 = smov 26  }
  0x20   :  { %s4438_s5 = sld [smem:[%s5628_s0 + %s4266_s15]]   ;;  %s4270_s15 = smov 27  }
  0x21   :  { %5644 = sst [smem:[#allocation56_spill]] %s4423_s27 }
  0x22   :  { %s4443_s27 = sld [smem:[%s5628_s0 + %s4267_s22]]   ;;  %s4271_s22 = smov 28  }
  0x23   :  { %s4448_s12 = sld [smem:[%s5628_s0 + %s4268_s28]]   ;;  %s4272_s28 = smov 29  }
  0x25   :  { %5645 = sst [smem:[#allocation57_spill]] %s4433_s25 }
  0x26   :  { %5646 = sst [smem:[#allocation58_spill]] %s4438_s5 }
  0x27   :  { %s4453_s25 = sld [smem:[%s5628_s0 + %s4269_s7]]   ;;  %s4273_s7 = smov 30  }
  0x28   :  { %5647 = sst [smem:[#allocation59_spill]] %s4443_s27 }
  0x29   :  { %5648 = sst [smem:[#allocation60_spill]] %s4448_s12 }
  0x2a   :  { %s4458_s5 = sld [smem:[%s5628_s0 + %s4270_s15]]   ;;  %s4274_s15 = smov 31  }
  0x2b   :  { %s4463_s27 = sld [smem:[%s5628_s0 + %s4271_s22]]   ;;  %s4275_s22 = smov 32  }
  0x2c   :  { %s4468_s12 = sld [smem:[%s5628_s0 + %s4272_s28]]   ;;  %s4276_s28 = smov 33  }
  0x2d   :  { %5649 = sst [smem:[#allocation61_spill]] %s4453_s25 }
  0x2e   :  { %s4473_s25 = sld [smem:[%s5628_s0 + %s4273_s7]]   ;;  %s4277_s7 = smov 34  }
  0x2f   :  { %s4488_s30 = sld [smem:[%s5628_s0 + %s4276_s28]]   ;;  %s4280_s28 = smov 37  }
  0x30   :  { %5650 = sst [smem:[#allocation62_spill]] %s4458_s5 }
  0x31   :  { %5651 = sst [smem:[#allocation63_spill]] %s4463_s27 }
  0x32   :  { %s4478_s5 = sld [smem:[%s5628_s0 + %s4274_s15]]   ;;  %s4278_s15 = smov 35  }
  0x33   :  { %s4483_s27 = sld [smem:[%s5628_s0 + %s4275_s22]]   ;;  %s4279_s22 = smov 36  }
  0x34   :  { %5652 = sst [smem:[#allocation64_spill]] %s4473_s25 }
  0x35   :  { %5655 = sst [smem:[#allocation67_spill]] %s4488_s30 }
  0x36   :  { %s4493_s25 = sld [smem:[%s5628_s0 + %s4277_s7]]   ;;  %s4281_s7 = smov 38  }
  0x37   :  { %s4508_s30 = sld [smem:[%s5628_s0 + %s4280_s28]]  }
  0x38   :  { %5653 = sst [smem:[#allocation65_spill]] %s4478_s5 }
  0x39   :  { %5654 = sst [smem:[#allocation66_spill]] %s4483_s27 }
  0x3a   :  { %s4498_s5 = sld [smem:[%s5628_s0 + %s4278_s15]]   ;;  %s4282_s15 = smov 39  }
  0x3b   :  { %s4503_s27 = sld [smem:[%s5628_s0 + %s4279_s22]]   ;;  %s4283_s22 = smov 40  }
  0x3c   :  { %5656 = sst [smem:[#allocation68_spill]] %s4493_s25 }
  0x3d   :  { %s4513_s25 = sld [smem:[%s5628_s0 + %s4281_s7]]  }
  0x40   :  { %5657 = sst [smem:[#allocation69_spill]] %s4498_s5 }
  0x41   :  { %5658 = sst [smem:[#allocation70_spill]] %s4503_s27 }
  0x42   :  { %s4518_s5 = sld [smem:[%s5628_s0 + %s4282_s15]]  }
  0x43   :  { %s4523_s27 = sld [smem:[%s5628_s0 + %s4283_s22]]  }
  0x44   :  { %86 = vsyncpa [#allocation3], 0 }
  0x45   :  { %87 = vsyncpa [#allocation6], 0 }
  0x46   :  { %88 = vsyncpa [#allocation9], 0 }
  0x47   :  { %89 = vsyncpa [#allocation12], 0 }
  0x48   :  { %90 = vsyncpa [#allocation15], 0 }
  0x49   :  { %91 = vsyncpa [#allocation18], 0 }
  0x4a   :  { %92 = vsyncpa [#allocation21], 0 }
  0x4b   :  { %93 = vsyncpa [#allocation24], 0 }
  0x4c   :  { %94 = vsyncpa [#allocation27], 0 }
  0x4d   :  { %95 = vsyncpa [#allocation30], 0 }
  0x4e   :  { %96 = vsyncpa [#allocation33], 0  ;;  %s118_s28 = sshll.u32 %s4333_s13, 4  ;;  %s119_s28 = int_to_ptr.hbm [resolvable:$true] %s118_s28 }
  0x4f   :  { %97 = vsyncpa [#allocation4], 0  ;;  %s4284_s0 = smov [#allocation5]   ;;  %s140_s2 = sshll.u32 %s4343_s21, 4  ;;  %s141_s2 = int_to_ptr.hbm [resolvable:$true] %s140_s2 }
  0x50   :  { %s120_s1 = sshll.u32 %s4284_s0, 4  ;;  %s3692_s7 = sshra.s32 %s119_s28, 4  ;;  %s121_s1 = int_to_ptr.vmem [resolvable:$true] %s120_s1  ;;  %s3693_s7 = int_to_ptr.hbm [resolvable:$true] %s3692_s7 }
  0x51   :  { %s3694_s10 = scalar_lea.hbm %s3693_s7, 1  ;;  %s3696_s11 = scalar_lea.hbm %s4333_s13, 1 }
  0x52   :  { %p3695_p0 = scmp.ne.s32.totalorder %s3693_s7, %s3694_s10  ;;  %p3697_p1 = scmp.lt.s32.totalorder %s3693_s7, %s4333_s13 }
  0x53   :  { %p3698_p2 = scmp.lt.s32.totalorder %s3696_s11, %s3694_s10 }
  0x55   :  { %p3699_p3 = por %p3698_p2, %p3697_p1 }
  0x57   :  { %p3700_p4 = pnand %p3699_p3, %p3695_p0 }
  0x59   :  { %3703 = shalt.err (!%p3700_p4)
}
  0x5a   :  { %123 = dma.hbm_to_vmem [thread:$0]  %s119_s28, 16, %s121_s1, [#allocation6]  }
  0x5b   :  { %s4285_s15 = smov [#allocation8]   ;;  %s164_s18 = sshll.u32 %s4358_s3, 4  ;;  %s165_s18 = int_to_ptr.hbm [resolvable:$true] %s164_s18 }
  0x5c   :  { %s142_s16 = sshll.u32 %s4285_s15, 4  ;;  %s3716_s22 = sshra.s32 %s141_s2, 4  ;;  %s143_s16 = int_to_ptr.vmem [resolvable:$true] %s142_s16  ;;  %s3717_s22 = int_to_ptr.hbm [resolvable:$true] %s3716_s22 }
  0x5d   :  { %s3718_s23 = scalar_lea.hbm %s3717_s22, 1  ;;  %s3720_s26 = scalar_lea.hbm %s4343_s21, 1 }
  0x5e   :  { %p3719_p5 = scmp.ne.s32.totalorder %s3717_s22, %s3718_s23  ;;  %p3721_p6 = scmp.lt.s32.totalorder %s3717_s22, %s4343_s21 }
  0x5f   :  { %p3722_p7 = scmp.lt.s32.totalorder %s3720_s26, %s3718_s23 }
  0x61   :  { %p3723_p8 = por %p3722_p7, %p3721_p6 }
  0x63   :  { %p3724_p9 = pnand %p3723_p8, %p3719_p5 }
  0x65   :  { %3727 = shalt.err (!%p3724_p9)
}
  0x66   :  { %145 = dma.hbm_to_vmem [thread:$0]  %s141_s2, 16, %s143_s16, [#allocation9]  }
  0x67   :  { %s4286_s13 = smov [#allocation11]   ;;  %s185_s0 = sshll.u32 %s4368_s14, 4  ;;  %s186_s0 = int_to_ptr.hbm [resolvable:$true] %s185_s0 }
  0x68   :  { %s166_s28 = sshll.u32 %s4286_s13, 4  ;;  %s3740_s1 = sshra.s32 %s165_s18, 4  ;;  %s167_s28 = int_to_ptr.vmem [resolvable:$true] %s166_s28  ;;  %s3741_s1 = int_to_ptr.hbm [resolvable:$true] %s3740_s1 }
  0x69   :  { %s3742_s7 = scalar_lea.hbm %s3741_s1, 1  ;;  %s3744_s10 = scalar_lea.hbm %s4358_s3, 1 }
  0x6a   :  { %p3743_p10 = scmp.ne.s32.totalorder %s3741_s1, %s3742_s7  ;;  %p3745_p11 = scmp.lt.s32.totalorder %s3741_s1, %s4358_s3 }
  0x6b   :  { %p3746_p12 = scmp.lt.s32.totalorder %s3744_s10, %s3742_s7 }
  0x6d   :  { %p3747_p13 = por %p3746_p12, %p3745_p11 }
  0x6f   :  { %p3748_p0 = pnand %p3747_p13, %p3743_p10 }
  0x71   :  { %3751 = shalt.err (!%p3748_p0)
}
  0x72   :  { %169 = dma.hbm_to_vmem [thread:$0]  %s165_s18, 16, %s167_s28, [#allocation12]  }
  0x73   :  { %s4287_s21 = smov [#allocation14]   ;;  %s210_s11 = sshll.u32 %s4378_s24, 4  ;;  %s4536_s11 = int_to_ptr.hbm [resolvable:$true] %s210_s11 }
  0x74   :  { %s187_s2 = sshll.u32 %s4287_s21, 4  ;;  %s3764_s15 = sshra.s32 %s186_s0, 4  ;;  %s188_s2 = int_to_ptr.vmem [resolvable:$true] %s187_s2  ;;  %s3765_s15 = int_to_ptr.hbm [resolvable:$true] %s3764_s15 }
  0x75   :  { %s3766_s16 = scalar_lea.hbm %s3765_s15, 384  ;;  %s3768_s3 = scalar_lea.hbm %s4368_s14, 384 }
  0x76   :  { %p3767_p1 = scmp.ne.s32.totalorder %s3765_s15, %s3766_s16  ;;  %p3769_p2 = scmp.lt.s32.totalorder %s3765_s15, %s4368_s14 }
  0x77   :  { %p3770_p3 = scmp.lt.s32.totalorder %s3768_s3, %s3766_s16 }
  0x79   :  { %p3771_p4 = por %p3770_p3, %p3769_p2 }
  0x7b   :  { %p3772_p5 = pnand %p3771_p4, %p3767_p1 }
  0x7d   :  { %3775 = shalt.err (!%p3772_p5)
}
  0x7e   :  { %s4288_s18 = smov 128   ;;  %s4289_s22 = smov 8  }
  0x7f   :  { %193 = dma.hbm_to_vmem [thread:$0]  %s186_s0, 6144, %s188_s2, [#allocation15], %s4288_s18, %s4288_s18, %s4289_s22  }
  0x80   :  { %s231_s23 = sshll.u32 %s4388_s6, 4  ;;  %s4290_s26 = smov [#allocation17]   ;;  %s4544_s23 = int_to_ptr.hbm [resolvable:$true] %s231_s23 }
  0x81   :  { %s212_s13 = sshll.u32 %s4290_s26, 4  ;;  %s3788_s14 = sshra.s32 %s4536_s11, 4  ;;  %s213_s13 = int_to_ptr.vmem [resolvable:$true] %s212_s13  ;;  %s3789_s14 = int_to_ptr.hbm [resolvable:$true] %s3788_s14 }
  0x82   :  { %s3790_s28 = scalar_lea.hbm %s3789_s14, 1  ;;  %s3792_s1 = scalar_lea.hbm %s4378_s24, 1 }
  0x83   :  { %p3791_p6 = scmp.ne.s32.totalorder %s3789_s14, %s3790_s28  ;;  %p3793_p7 = scmp.lt.s32.totalorder %s3789_s14, %s4378_s24 }
  0x84   :  { %p3794_p8 = scmp.lt.s32.totalorder %s3792_s1, %s3790_s28 }
  0x86   :  { %p3795_p9 = por %p3794_p8, %p3793_p7 }
  0x88   :  { %p3796_p10 = pnand %p3795_p9, %p3791_p6 }
  0x8a   :  { %3799 = shalt.err (!%p3796_p10)
}
  0x8b   :  { %215 = dma.hbm_to_vmem [thread:$0]  %s4536_s11, 16, %s213_s13, [#allocation18]  }
  0x8c   :  { %s4291_s0 = smov [#allocation20]   ;;  %s256_s10 = sshll.u32 %s4398_s20, 4  ;;  %s257_s10 = int_to_ptr.hbm [resolvable:$true] %s256_s10 }
  0x8d   :  { %s233_s7 = sshll.u32 %s4291_s0, 4  ;;  %s3812_s21 = sshra.s32 %s4544_s23, 4  ;;  %s234_s7 = int_to_ptr.vmem [resolvable:$true] %s233_s7  ;;  %s3813_s21 = int_to_ptr.hbm [resolvable:$true] %s3812_s21 }
  0x8e   :  { %s3814_s2 = scalar_lea.hbm %s3813_s21, 128  ;;  %s3816_s24 = scalar_lea.hbm %s4388_s6, 128 }
  0x8f   :  { %p3815_p11 = scmp.ne.s32.totalorder %s3813_s21, %s3814_s2  ;;  %p3817_p12 = scmp.lt.s32.totalorder %s3813_s21, %s4388_s6 }
  0x90   :  { %p3818_p13 = scmp.lt.s32.totalorder %s3816_s24, %s3814_s2 }
  0x92   :  { %p3819_p0 = por %p3818_p13, %p3817_p12 }
  0x94   :  { %p3820_p1 = pnand %p3819_p0, %p3815_p11 }
  0x96   :  { %3823 = shalt.err (!%p3820_p1)
}
  0x97   :  { %239 = dma.hbm_to_vmem [thread:$0]  %s4544_s23, 2048, %s234_s7, [#allocation21], %s4288_s18, %s4288_s18, %s4289_s22  }
  0x98   :  { %s287_s11 = sshll.u32 %s4428_s4, 4  ;;  %s4292_s15 = smov [#allocation23]   ;;  %s4559_s11 = int_to_ptr.hbm [resolvable:$true] %s287_s11 }
  0x99   :  { %s258_s16 = sshll.u32 %s4292_s15, 4  ;;  %s3836_s3 = sshra.s32 %s257_s10, 4  ;;  %s259_s16 = int_to_ptr.vmem [resolvable:$true] %s258_s16  ;;  %s3837_s3 = int_to_ptr.hbm [resolvable:$true] %s3836_s3 }
  0x9a   :  { %s3838_s6 = scalar_lea.hbm %s3837_s3, 1  ;;  %s3840_s26 = scalar_lea.hbm %s4398_s20, 1 }
  0x9b   :  { %p3839_p2 = scmp.ne.s32.totalorder %s3837_s3, %s3838_s6  ;;  %p3841_p3 = scmp.lt.s32.totalorder %s3837_s3, %s4398_s20 }
  0x9c   :  { %p3842_p4 = scmp.lt.s32.totalorder %s3840_s26, %s3838_s6 }
  0x9e   :  { %p3843_p5 = por %p3842_p4, %p3841_p3 }
  0xa0   :  { %p3844_p6 = pnand %p3843_p5, %p3839_p2 }
  0xa2   :  { %3847 = shalt.err (!%p3844_p6)
}
  0xa3   :  { %261 = dma.hbm_to_vmem [thread:$0]  %s257_s10, 16, %s259_s16, [#allocation24]  }
  0xa4   :  { %s4293_s23 = smov [#allocation26]   ;;  %s325_s14 = sshll.u32 %s4468_s12, 4  ;;  %s4564_s14 = int_to_ptr.hbm [resolvable:$true] %s325_s14 }
  0xa5   :  { %s289_s13 = sshll.u32 %s4293_s23, 4  ;;  %s3860_s28 = sshra.s32 %s4559_s11, 4  ;;  %s290_s13 = int_to_ptr.vmem [resolvable:$true] %s289_s13  ;;  %s3861_s28 = int_to_ptr.hbm [resolvable:$true] %s3860_s28 }
  0xa6   :  { %s3862_s1 = scalar_lea.hbm %s3861_s28, 128  ;;  %s3864_s20 = scalar_lea.hbm %s4428_s4, 128 }
  0xa7   :  { %p3863_p7 = scmp.ne.s32.totalorder %s3861_s28, %s3862_s1  ;;  %p3865_p8 = scmp.lt.s32.totalorder %s3861_s28, %s4428_s4 }
  0xa8   :  { %p3866_p9 = scmp.lt.s32.totalorder %s3864_s20, %s3862_s1 }
  0xaa   :  { %p3867_p10 = por %p3866_p9, %p3865_p8 }
  0xac   :  { %p3868_p11 = pnand %p3867_p10, %p3863_p7 }
  0xae   :  { %3871 = shalt.err (!%p3868_p11)
}
  0xaf   :  { %295 = dma.hbm_to_vmem [thread:$0]  %s4559_s11, 2048, %s290_s13, [#allocation27], %s4288_s18, %s4288_s18, %s4289_s22  }
  0xb0   :  { %s363_s0 = sshll.u32 %s4508_s30, 4  ;;  %s4294_s7 = smov [#allocation29]   ;;  %s4574_s0 = int_to_ptr.hbm [resolvable:$true] %s363_s0 }
  0xb1   :  { %s327_s10 = sshll.u32 %s4294_s7, 4  ;;  %s3884_s4 = sshra.s32 %s4564_s14, 4  ;;  %s328_s10 = int_to_ptr.vmem [resolvable:$true] %s327_s10  ;;  %s3885_s4 = int_to_ptr.hbm [resolvable:$true] %s3884_s4 }
  0xb2   :  { %s3886_s21 = scalar_lea.hbm %s3885_s4, 128  ;;  %s3888_s2 = scalar_lea.hbm %s4468_s12, 128 }
  0xb3   :  { %p3887_p12 = scmp.ne.s32.totalorder %s3885_s4, %s3886_s21  ;;  %p3889_p13 = scmp.lt.s32.totalorder %s3885_s4, %s4468_s12 }
  0xb4   :  { %p3890_p0 = scmp.lt.s32.totalorder %s3888_s2, %s3886_s21 }
  0xb6   :  { %p3891_p1 = por %p3890_p0, %p3889_p13 }
  0xb8   :  { %p3892_p2 = pnand %p3891_p1, %p3887_p12 }
  0xba   :  { %3895 = shalt.err (!%p3892_p2)
}
  0xbb   :  { %333 = dma.hbm_to_vmem [thread:$0]  %s4564_s14, 2048, %s328_s10, [#allocation30], %s4288_s18, %s4288_s18, %s4289_s22  }
  0xbc   :  { %s4295_s24 = smov [#allocation32]   ;;  %s104_s15 = sshll.u32 %s4328_s9, 4  ;;  %s4584_s15 = int_to_ptr.hbm [resolvable:$true] %s104_s15 }
  0xbd   :  { %s365_s11 = sshll.u32 %s4295_s24, 4  ;;  %s3908_s12 = sshra.s32 %s4574_s0, 4  ;;  %s366_s11 = int_to_ptr.vmem [resolvable:$true] %s365_s11  ;;  %s3909_s12 = int_to_ptr.hbm [resolvable:$true] %s3908_s12 }
  0xbe   :  { %s3910_s16 = scalar_lea.hbm %s3909_s12, 384  ;;  %s3912_s3 = scalar_lea.hbm %s4508_s30, 384 }
  0xbf   :  { %p3911_p3 = scmp.ne.s32.totalorder %s3909_s12, %s3910_s16  ;;  %p3913_p4 = scmp.lt.s32.totalorder %s3909_s12, %s4508_s30 }
  0xc0   :  { %p3914_p5 = scmp.lt.s32.totalorder %s3912_s3, %s3910_s16 }
  0xc2   :  { %p3915_p6 = por %p3914_p5, %p3913_p4 }
  0xc4   :  { %p3916_p7 = pnand %p3915_p6, %p3911_p3 }
  0xc6   :  { %3919 = shalt.err (!%p3916_p7)
}
  0xc7   :  { %371 = dma.hbm_to_vmem [thread:$0]  %s4574_s0, 6144, %s366_s11, [#allocation33], %s4288_s18, %s4288_s18, %s4289_s22  }
  0xc8   :  { %s129_s6 = sshll.u32 %s4338_s17, 4  ;;  %s4296_s26 = smov [#allocation2]   ;;  %s130_s6 = int_to_ptr.hbm [resolvable:$true] %s129_s6 }
  0xc9   :  { %s106_s23 = sshll.u32 %s4296_s26, 4  ;;  %s3932_s13 = sshra.s32 %s4584_s15, 4  ;;  %s107_s23 = int_to_ptr.vmem [resolvable:$true] %s106_s23  ;;  %s3933_s13 = int_to_ptr.hbm [resolvable:$true] %s3932_s13 }
  0xca   :  { %s3934_s30 = scalar_lea.hbm %s3933_s13, 640  ;;  %s3936_s14 = scalar_lea.hbm %s4328_s9, 640 }
  0xcb   :  { %p3935_p8 = scmp.ne.s32.totalorder %s3933_s13, %s3934_s30  ;;  %p3937_p9 = scmp.lt.s32.totalorder %s3933_s13, %s4328_s9 }
  0xcc   :  { %p3938_p10 = scmp.lt.s32.totalorder %s3936_s14, %s3934_s30 }
  0xce   :  { %p3939_p11 = por %p3938_p10, %p3937_p9 }
  0xd0   :  { %p3940_p12 = pnand %p3939_p11, %p3935_p8 }
  0xd2   :  { %3943 = shalt.err (!%p3940_p12)
}
  0xd3   :  { %112 = dma.hbm_to_vmem [thread:$0]  %s4584_s15, 10240, %s107_s23, [#allocation3], %s4288_s18, %s4288_s18, %s4289_s22  }
  0xd4   :  { %s4297_s28 = smov [#allocation7]   ;;  %s153_s20 = sshll.u32 %s4353_s29, 4  ;;  %s154_s20 = int_to_ptr.hbm [resolvable:$true] %s153_s20 }
  0xd5   :  { %s131_s1 = sshll.u32 %s4297_s28, 4  ;;  %s3956_s0 = sshra.s32 %s130_s6, 4  ;;  %s132_s1 = int_to_ptr.vmem [resolvable:$true] %s131_s1  ;;  %s3957_s0 = int_to_ptr.hbm [resolvable:$true] %s3956_s0 }
  0xd6   :  { %s3958_s9 = scalar_lea.hbm %s3957_s0, 1  ;;  %s3960_s7 = scalar_lea.hbm %s4338_s17, 1 }
  0xd7   :  { %p3959_p13 = scmp.ne.s32.totalorder %s3957_s0, %s3958_s9  ;;  %p3961_p0 = scmp.lt.s32.totalorder %s3957_s0, %s4338_s17 }
  0xd8   :  { %p3962_p1 = scmp.lt.s32.totalorder %s3960_s7, %s3958_s9 }
  0xda   :  { %p3963_p2 = por %p3962_p1, %p3961_p0 }
  0xdc   :  { %p3964_p3 = pnand %p3963_p2, %p3959_p13 }
  0xde   :  { %3967 = shalt.err (!%p3964_p3)
}
  0xdf   :  { %134 = dma.hbm_to_vmem [thread:$0]  %s130_s6, 16, %s132_s1, [#allocation6]  }
  0xe0   :  { %s175_s10 = sshll.u32 %s4363_s8, 4  ;;  %s4298_s4 = smov [#allocation10]   ;;  %s176_s10 = int_to_ptr.hbm [resolvable:$true] %s175_s10 }
  0xe1   :  { %s155_s21 = sshll.u32 %s4298_s4, 4  ;;  %s3980_s2 = sshra.s32 %s154_s20, 4  ;;  %s156_s21 = int_to_ptr.vmem [resolvable:$true] %s155_s21  ;;  %s3981_s2 = int_to_ptr.hbm [resolvable:$true] %s3980_s2 }
  0xe2   :  { %s3982_s24 = scalar_lea.hbm %s3981_s2, 1  ;;  %s3984_s11 = scalar_lea.hbm %s4353_s29, 1 }
  0xe3   :  { %p3983_p4 = scmp.ne.s32.totalorder %s3981_s2, %s3982_s24  ;;  %p3985_p5 = scmp.lt.s32.totalorder %s3981_s2, %s4353_s29 }
  0xe4   :  { %p3986_p6 = scmp.lt.s32.totalorder %s3984_s11, %s3982_s24 }
  0xe6   :  { %p3987_p7 = por %p3986_p6, %p3985_p5 }
  0xe8   :  { %p3988_p8 = pnand %p3987_p7, %p3983_p4 }
  0xea   :  { %3991 = shalt.err (!%p3988_p8)
}
  0xeb   :  { %158 = dma.hbm_to_vmem [thread:$0]  %s154_s20, 16, %s156_s21, [#allocation9]  }
  0xec   :  { %s4299_s17 = smov [#allocation13]   ;;  %s199_s12 = sshll.u32 %s4373_s19, 4  ;;  %s200_s12 = int_to_ptr.hbm [resolvable:$true] %s199_s12 }
  0xed   :  { %s177_s15 = sshll.u32 %s4299_s17, 4  ;;  %s4004_s16 = sshra.s32 %s176_s10, 4  ;;  %s178_s15 = int_to_ptr.vmem [resolvable:$true] %s177_s15  ;;  %s4005_s16 = int_to_ptr.hbm [resolvable:$true] %s4004_s16 }
  0xee   :  { %s4006_s3 = scalar_lea.hbm %s4005_s16, 1  ;;  %s4008_s6 = scalar_lea.hbm %s4363_s8, 1 }
  0xef   :  { %p4007_p9 = scmp.ne.s32.totalorder %s4005_s16, %s4006_s3  ;;  %p4009_p10 = scmp.lt.s32.totalorder %s4005_s16, %s4363_s8 }
  0xf0   :  { %p4010_p11 = scmp.lt.s32.totalorder %s4008_s6, %s4006_s3 }
  0xf2   :  { %p4011_p12 = por %p4010_p11, %p4009_p10 }
  0xf4   :  { %p4012_p13 = pnand %p4011_p12, %p4007_p9 }
  0xf6   :  { %4015 = shalt.err (!%p4012_p13)
}
  0xf7   :  { %180 = dma.hbm_to_vmem [thread:$0]  %s176_s10, 16, %s178_s15, [#allocation12]  }
  0xf8   :  { %s5659_s29 = sld [smem:[#allocation50_spill]]  ;;  %s4300_s23 = smov [#allocation16]  }
  0xf9   :  { %s201_s13 = sshll.u32 %s4300_s23, 4  ;;  %s4028_s30 = sshra.s32 %s200_s12, 4  ;;  %s202_s13 = int_to_ptr.vmem [resolvable:$true] %s201_s13  ;;  %s4029_s30 = int_to_ptr.hbm [resolvable:$true] %s4028_s30 }
  0xfa   :  { %s4030_s14 = scalar_lea.hbm %s4029_s30, 1  ;;  %s4032_s28 = scalar_lea.hbm %s4373_s19, 1 }
  0xfb   :  { %p4031_p0 = scmp.ne.s32.totalorder %s4029_s30, %s4030_s14  ;;  %p4033_p1 = scmp.lt.s32.totalorder %s4029_s30, %s4373_s19 }
  0xfc   :  { %p4034_p2 = scmp.lt.s32.totalorder %s4032_s28, %s4030_s14 }
  0xfe   :  { %s221_s26 = sshll.u32 %s5659_s29, 4  ;;  %p4035_p3 = por %p4034_p2, %p4033_p1  ;;  %s222_s26 = int_to_ptr.hbm [resolvable:$true] %s221_s26 }
 0x100   :  { %p4036_p4 = pnand %p4035_p3, %p4031_p0 }
 0x102   :  { %4039 = shalt.err (!%p4036_p4)
}
 0x103   :  { %204 = dma.hbm_to_vmem [thread:$0]  %s200_s12, 16, %s202_s13, [#allocation15]  }
 0x104   :  { %s5660_s8 = sld [smem:[#allocation51_spill]]  ;;  %s4301_s1 = smov [#allocation19]  }
 0x105   :  { %s223_s20 = sshll.u32 %s4301_s1, 4  ;;  %s4052_s9 = sshra.s32 %s222_s26, 4  ;;  %s224_s20 = int_to_ptr.vmem [resolvable:$true] %s223_s20  ;;  %s4053_s9 = int_to_ptr.hbm [resolvable:$true] %s4052_s9 }
 0x106   :  { %s4054_s7 = scalar_lea.hbm %s4053_s9, 1  ;;  %s4056_s10 = scalar_lea.hbm %s5659_s29, 1 }
 0x107   :  { %p4055_p5 = scmp.ne.s32.totalorder %s4053_s9, %s4054_s7  ;;  %p4057_p6 = scmp.lt.s32.totalorder %s4053_s9, %s5659_s29 }
 0x108   :  { %p4058_p7 = scmp.lt.s32.totalorder %s4056_s10, %s4054_s7 }
 0x10a   :  { %s245_s0 = sshll.u32 %s5660_s8, 4  ;;  %p4059_p8 = por %p4058_p7, %p4057_p6  ;;  %s246_s0 = int_to_ptr.hbm [resolvable:$true] %s245_s0 }
 0x10c   :  { %p4060_p9 = pnand %p4059_p8, %p4055_p5 }
 0x10e   :  { %4063 = shalt.err (!%p4060_p9)
}
 0x10f   :  { %226 = dma.hbm_to_vmem [thread:$0]  %s222_s26, 16, %s224_s20, [#allocation18]  }
 0x110   :  { %s5661_s19 = sld [smem:[#allocation53_spill]]  ;;  %s4302_s21 = smov [#allocation22]  }
 0x111   :  { %s247_s2 = sshll.u32 %s4302_s21, 4  ;;  %s4076_s24 = sshra.s32 %s246_s0, 4  ;;  %s248_s2 = int_to_ptr.vmem [resolvable:$true] %s247_s2  ;;  %s4077_s24 = int_to_ptr.hbm [resolvable:$true] %s4076_s24 }
 0x112   :  { %s4078_s11 = scalar_lea.hbm %s4077_s24, 1  ;;  %s4080_s17 = scalar_lea.hbm %s5660_s8, 1 }
 0x113   :  { %p4079_p10 = scmp.ne.s32.totalorder %s4077_s24, %s4078_s11  ;;  %p4081_p11 = scmp.lt.s32.totalorder %s4077_s24, %s5660_s8 }
 0x114   :  { %p4082_p12 = scmp.lt.s32.totalorder %s4080_s17, %s4078_s11 }
 0x116   :  { %s268_s4 = sshll.u32 %s5661_s19, 4  ;;  %p4083_p13 = por %p4082_p12, %p4081_p11  ;;  %s4617_s4 = int_to_ptr.hbm [resolvable:$true] %s268_s4 }
 0x118   :  { %p4084_p0 = pnand %p4083_p13, %p4079_p10 }
 0x11a   :  { %4087 = shalt.err (!%p4084_p0)
}
 0x11b   :  { %250 = dma.hbm_to_vmem [thread:$0]  %s246_s0, 16, %s248_s2, [#allocation21]  }
 0x11c   :  { %s5662_s15 = sld [smem:[#allocation60_spill]]  ;;  %s4303_s12 = smov [#allocation25]  }
 0x11d   :  { %s270_s16 = sshll.u32 %s4303_s12, 4  ;;  %s4100_s6 = sshra.s32 %s4617_s4, 4  ;;  %s271_s16 = int_to_ptr.vmem [resolvable:$true] %s270_s16  ;;  %s4101_s6 = int_to_ptr.hbm [resolvable:$true] %s4100_s6 }
 0x11e   :  { %s4102_s29 = scalar_lea.hbm %s4101_s6, 384  ;;  %s4104_s26 = scalar_lea.hbm %s5661_s19, 384 }
 0x11f   :  { %p4103_p1 = scmp.ne.s32.totalorder %s4101_s6, %s4102_s29  ;;  %p4105_p2 = scmp.lt.s32.totalorder %s4101_s6, %s5661_s19 }
 0x120   :  { %p4106_p3 = scmp.lt.s32.totalorder %s4104_s26, %s4102_s29 }
 0x122   :  { %s306_s3 = sshll.u32 %s5662_s15, 4  ;;  %p4107_p4 = por %p4106_p3, %p4105_p2  ;;  %s4622_s3 = int_to_ptr.hbm [resolvable:$true] %s306_s3 }
 0x124   :  { %p4108_p5 = pnand %p4107_p4, %p4103_p1 }
 0x126   :  { %4111 = shalt.err (!%p4108_p5)
}
 0x127   :  { %s5663_s23 = sld [smem:[#allocation67_spill]]  ;;  %s4304_s30 = smov [#allocation28]  }
 0x128   :  { %276 = dma.hbm_to_vmem [thread:$0]  %s4617_s4, 6144, %s271_s16, [#allocation24], %s4288_s18, %s4288_s18, %s4289_s22  }
 0x129   :  { %s308_s14 = sshll.u32 %s4304_s30, 4  ;;  %s4124_s28 = sshra.s32 %s4622_s3, 4  ;;  %s309_s14 = int_to_ptr.vmem [resolvable:$true] %s308_s14  ;;  %s4125_s28 = int_to_ptr.hbm [resolvable:$true] %s4124_s28 }
 0x12a   :  { %s4126_s8 = scalar_lea.hbm %s4125_s28, 384  ;;  %s4128_s1 = scalar_lea.hbm %s5662_s15, 384 }
 0x12b   :  { %p4127_p6 = scmp.ne.s32.totalorder %s4125_s28, %s4126_s8  ;;  %p4129_p7 = scmp.lt.s32.totalorder %s4125_s28, %s5662_s15 }
 0x12c   :  { %p4130_p8 = scmp.lt.s32.totalorder %s4128_s1, %s4126_s8 }
 0x12d   :  { %s344_s13 = sshll.u32 %s5663_s23, 4  ;;  %s4632_s13 = int_to_ptr.hbm [resolvable:$true] %s344_s13 }
 0x12e   :  { %p4131_p9 = por %p4130_p8, %p4129_p7 }
 0x130   :  { %p4132_p10 = pnand %p4131_p9, %p4127_p6 }
 0x132   :  { %4135 = shalt.err (!%p4132_p10)
}
 0x133   :  { %314 = dma.hbm_to_vmem [thread:$0]  %s4622_s3, 6144, %s309_s14, [#allocation27], %s4288_s18, %s4288_s18, %s4289_s22  }
 0x134   :  { %s4305_s20 = smov [#allocation31]   ;;  %s4148_s9 = sshra.s32 %s4632_s13, 4  ;;  %s4149_s9 = int_to_ptr.hbm [resolvable:$true] %s4148_s9 }
 0x135   :  { %s346_s0 = sshll.u32 %s4305_s20, 4  ;;  %s4150_s7 = scalar_lea.hbm %s4149_s9, 384  ;;  %s347_s0 = int_to_ptr.vmem [resolvable:$true] %s346_s0 }
 0x136   :  { %p4151_p11 = scmp.ne.s32.totalorder %s4149_s9, %s4150_s7  ;;  %s4152_s10 = scalar_lea.hbm %s5663_s23, 384 }
 0x137   :  { %p4153_p12 = scmp.lt.s32.totalorder %s4149_s9, %s5663_s23  ;;  %p4154_p13 = scmp.lt.s32.totalorder %s4152_s10, %s4150_s7 }
 0x139   :  { %p4155_p0 = por %p4154_p13, %p4153_p12 }
 0x13b   :  { %p4156_p1 = pnand %p4155_p0, %p4151_p11 }
 0x13d   :  { %4159 = shalt.err (!%p4156_p1)
}
 0x13e   :  { %s4306_s19 = smov 384   ;;  %s4307_s4 = smov 24  }
 0x13f   :  { %352 = dma.hbm_to_vmem [thread:$0]  %s4632_s13, 6144, %s347_s0, [#allocation30], %s4306_s19, %s4306_s19, %s4307_s4  }
 0x140   :  { %s376_s21 = sshll.u32 %s4513_s25, 4  ;;  %s4308_s2 = smov [#allocation34]   ;;  %s377_s21 = int_to_ptr.hbm [resolvable:$true] %s376_s21 }
 0x141   :  { %s378_s24 = sshll.u32 %s4308_s2, 4  ;;  %s4172_s11 = sshra.s32 %s377_s21, 4  ;;  %s379_s24 = int_to_ptr.vmem [resolvable:$true] %s378_s24  ;;  %s4173_s11 = int_to_ptr.hbm [resolvable:$true] %s4172_s11 }
 0x142   :  { %s4174_s17 = scalar_lea.hbm %s4173_s11, 384  ;;  %s4176_s15 = scalar_lea.hbm %s4513_s25, 384 }
 0x143   :  { %p4175_p2 = scmp.ne.s32.totalorder %s4173_s11, %s4174_s17  ;;  %p4177_p3 = scmp.lt.s32.totalorder %s4173_s11, %s4513_s25 }
 0x144   :  { %p4178_p4 = scmp.lt.s32.totalorder %s4176_s15, %s4174_s17 }
 0x146   :  { %p4179_p5 = por %p4178_p4, %p4177_p3 }
 0x148   :  { %p4180_p6 = pnand %p4179_p5, %p4175_p2 }
 0x14a   :  { %4183 = shalt.err (!%p4180_p6)
}
 0x14b   :  { %384 = dma.hbm_to_vmem [thread:$0]  %s377_s21, 6144, %s379_s24, [#allocation33], %s4288_s18, %s4288_s18, %s4289_s22  }
 0x14c   :  { %4220 = dma.done.wait [#allocation3], 10240  }
 0x14d   :  { %4221 = vsyncadd [#allocation3], 4294957056 }
 0x14e   :  { %4222 = dma.done.wait [#allocation6], 32  }
 0x14f   :  { %4223 = vsyncadd [#allocation6], 4294967264 }
 0x150   :  { %4224 = dma.done.wait [#allocation9], 32  }
 0x151   :  { %4225 = vsyncadd [#allocation9], 4294967264 }
 0x152   :  { %4226 = dma.done.wait [#allocation12], 32  }
 0x153   :  { %4227 = vsyncadd [#allocation12], 4294967264 }
 0x154   :  { %4228 = dma.done.wait [#allocation15], 6160  }
 0x155   :  { %4229 = vsyncadd [#allocation15], 4294961136 }
 0x156   :  { %4230 = dma.done.wait [#allocation18], 32  }
 0x157   :  { %4231 = vsyncadd [#allocation18], 4294967264 }
 0x158   :  { %4232 = dma.done.wait [#allocation21], 2064  }
 0x159   :  { %4233 = vsyncadd [#allocation21], 4294965232 }
 0x15a   :  { %4234 = dma.done.wait [#allocation24], 6160  }
 0x15b   :  { %4235 = vsyncadd [#allocation24], 4294961136 }
 0x15c   :  { %4236 = dma.done.wait [#allocation27], 8192  }
 0x15d   :  { %4237 = vsyncadd [#allocation27], 4294959104 }
 0x15e   :  { %4238 = dma.done.wait [#allocation30], 8192  }
 0x15f   :  { %4239 = vsyncadd [#allocation30], 4294959104 }
 0x160   :  { %4240 = dma.done.wait [#allocation33], 12288  }
 0x161   :  { %4241 = vsyncadd [#allocation33], 4294955008  ;;  %v494_v0 = vld [vmem:[#allocation2 + $0x78] sm:$0xff]  ;;  %v493_v2 = vld [vmem:[#allocation2 + $0x70] sm:$0xff]  ;;  %s5664_s25 = sld [smem:[#allocation48_spill]]  ;;  %vm570_vm0 = vcmask 1046528  }
 0x162   :  { %v526_v1 = vld [vmem:[#allocation2 + $0x178] sm:$0xff]  ;;  %904 = vmatpush.msra.mxu0 %v494_v0  ;;  %v525_v4 = vld [vmem:[#allocation2 + $0x170] sm:$0xff]  ;;  %v492_v6 = vld [vmem:[#allocation2 + $0x68] sm:$0xff]  ;;  %vm585_vm1 = vcmask 1045504   ;;  %vm600_vm2 = vcmask 1044480   ;;  %vm654_vm3 = vcmask 1041408  }
 0x163   :  { %980 = vmatpush.msra.mxu2 %v526_v1  ;;  %v510_v3 = vld [vmem:[#allocation2 + $0xf8] sm:$0xff]  ;;  %v509_v7 = vld [vmem:[#allocation2 + $0xf0] sm:$0xff]  ;;  %v524_v8 = vld [vmem:[#allocation2 + $0x168] sm:$0xff]  ;;  %vm656_vm4 = vcmask 1045508   ;;  %vm615_vm5 = vcmask 1043456   ;;  %vm659_vm6 = vcmask 1043458  }
 0x164   :  { %v542_v5 = vld [vmem:[#allocation2 + $0x1f8] sm:$0xff]  ;;  %942 = vmatpush.msra.mxu1 %v510_v3  ;;  %905 = vmatpush.msra.mxu0 %v493_v2  ;;  %v541_v9 = vld [vmem:[#allocation2 + $0x1f0] sm:$0xff]  ;;  %v508_v10 = vld [vmem:[#allocation2 + $0xe8] sm:$0xff]  ;;  %vm662_vm7 = vcmask 1045506   ;;  %s5665_s18 = sld [smem:[#allocation49_spill]]  ;;  %s4314_s9 = smov [#allocation35]  }
 0x165   :  { %1018 = vmatpush.msra.mxu3 %v542_v5  ;;  %981 = vmatpush.msra.mxu2 %v525_v4  ;;  %v491_v11 = vld [vmem:[#allocation2 + $0x60] sm:$0xff]  ;;  %v540_v13 = vld [vmem:[#allocation2 + $0x1e8] sm:$0xff]  ;;  %v490_v16 = vld [vmem:[#allocation2 + $0x58] sm:$0xff]  ;;  %s5666_s22 = sld [smem:[#allocation52_spill]]  ;;  %s3490_s7 = sshll.u32 %s4314_s9, 4  ;;  %s3491_s7 = int_to_ptr.vmem [resolvable:$true] %s3490_s7 }
 0x166   :  { %943 = vmatpush.msra.mxu1 %v509_v7  ;;  %v523_v12 = vld [vmem:[#allocation2 + $0x160] sm:$0xff]  ;;  %906 = vmatpush.msra.mxu0 %v492_v6  ;;  %v522_v17 = vld [vmem:[#allocation2 + $0x158] sm:$0xff]  ;;  %v489_v20 = vld [vmem:[#allocation2 + $0x50] sm:$0xff]  ;;  %s5667_s12 = sld [smem:[#allocation54_spill]]  ;;  %s3492_s10 = sshll.u32 %s4523_s27, 4  ;;  %s3493_s10 = int_to_ptr.hbm [resolvable:$true] %s3492_s10 }
 0x167   :  { %1019 = vmatpush.msra.mxu3 %v541_v9  ;;  %982 = vmatpush.msra.mxu2 %v524_v8  ;;  %v507_v14 = vld [vmem:[#allocation2 + $0xe0] sm:$0xff]  ;;  %v506_v18 = vld [vmem:[#allocation2 + $0xd8] sm:$0xff]  ;;  %v521_v21 = vld [vmem:[#allocation2 + $0x150] sm:$0xff]  ;;  %s5668_s16 = sld [smem:[#allocation55_spill]]  ;;  %s4208_s19 = sshra.s32 %s3493_s10, 4  ;;  %s4209_s19 = int_to_ptr.hbm [resolvable:$true] %s4208_s19 }
 0x168   :  { %v539_v15 = vld [vmem:[#allocation2 + $0x1e0] sm:$0xff]  ;;  %944 = vmatpush.msra.mxu1 %v508_v10  ;;  %907 = vmatpush.msra.mxu0 %v491_v11  ;;  %v538_v19 = vld [vmem:[#allocation2 + $0x1d8] sm:$0xff]  ;;  %v505_v22 = vld [vmem:[#allocation2 + $0xd0] sm:$0xff]  ;;  %s5669_s3 = sld [smem:[#allocation56_spill]]  ;;  %s4210_s4 = scalar_lea.hbm %s4209_s19, 2 }
 0x169   :  { %1020 = vmatpush.msra.mxu3 %v540_v13  ;;  %983 = vmatpush.msra.mxu2 %v523_v12  ;;  %v537_v23 = vld [vmem:[#allocation2 + $0x1d0] sm:$0xff]  ;;  %v488_v24 = vld [vmem:[#allocation2 + $0x48] sm:$0xff]  ;;  %v487_v28 = vld [vmem:[#allocation2 + $0x40] sm:$0xff]  ;;  %s5670_s6 = sld [smem:[#allocation57_spill]]  ;;  %p4211_p7 = scmp.ne.s32.totalorder %s4209_s19, %s4210_s4 }
 0x16a   :  { %945 = vmatpush.msra.mxu1 %v507_v14  ;;  %908 = vmatpush.msra.mxu0 %v490_v16  ;;  %v520_v25 = vld [vmem:[#allocation2 + $0x148] sm:$0xff]  ;;  %v519_v29 = vld [vmem:[#allocation2 + $0x140] sm:$0xff]  ;;  %v486_v32 = vld [vmem:[#allocation2 + $0x38] sm:$0xff]  ;;  %s5671_s29 = sld [smem:[#allocation58_spill]]  ;;  %s4212_s21 = scalar_lea.hbm %s4523_s27, 2 }
 0x16b   :  { %1021 = vmatpush.msra.mxu3 %v539_v15  ;;  %984 = vmatpush.msra.mxu2 %v522_v17  ;;  %v504_v26 = vld [vmem:[#allocation2 + $0xc8] sm:$0xff]  ;;  %v503_v30 = vld [vmem:[#allocation2 + $0xc0] sm:$0xff]  ;;  %v518_v33 = vld [vmem:[#allocation2 + $0x138] sm:$0xff]  ;;  %s5672_s26 = sld [smem:[#allocation59_spill]]  ;;  %p4213_p8 = scmp.lt.s32.totalorder %s4209_s19, %s4523_s27 }
 0x16c   :  { %946 = vmatpush.msra.mxu1 %v506_v18  ;;  %909 = vmatpush.msra.mxu0 %v489_v20  ;;  %v536_v27 = vld [vmem:[#allocation2 + $0x1c8] sm:$0xff]  ;;  %v535_v31 = vld [vmem:[#allocation2 + $0x1c0] sm:$0xff]  ;;  %v502_v34 = vld [vmem:[#allocation2 + $0xb8] sm:$0xff]  ;;  %s5673_s23 = sld [smem:[#allocation61_spill]]  ;;  %p4214_p9 = scmp.lt.s32.totalorder %s4212_s21, %s4210_s4 }
 0x16d   :  { %1022 = vmatpush.msra.mxu3 %v538_v19  ;;  %985 = vmatpush.msra.mxu2 %v521_v21  ;;  %v534_v35 = vld [vmem:[#allocation2 + $0x1b8] sm:$0xff]  ;;  %v485_v36 = vld [vmem:[#allocation2 + $0x30] sm:$0xff]  ;;  %v484_v40 = vld [vmem:[#allocation2 + $0x28] sm:$0xff]  ;;  %s5674_s13 = sld [smem:[#allocation62_spill]] }
 0x16e   :  { %947 = vmatpush.msra.mxu1 %v505_v22  ;;  %910 = vmatpush.msra.mxu0 %v488_v24  ;;  %v517_v37 = vld [vmem:[#allocation2 + $0x130] sm:$0xff]  ;;  %v516_v41 = vld [vmem:[#allocation2 + $0x128] sm:$0xff]  ;;  %v483_v42 = vld [vmem:[#allocation2 + $0x20] sm:$0xff]  ;;  %s5675_s30 = sld [smem:[#allocation63_spill]]  ;;  %p4215_p10 = por %p4214_p9, %p4213_p8 }
 0x16f   :  { %1023 = vmatpush.msra.mxu3 %v537_v23  ;;  %986 = vmatpush.msra.mxu2 %v520_v25  ;;  %v501_v38 = vld [vmem:[#allocation2 + $0xb0] sm:$0xff]  ;;  %v500_v43 = vld [vmem:[#allocation2 + $0xa8] sm:$0xff]  ;;  %v515_v45 = vld [vmem:[#allocation2 + $0x120] sm:$0xff]  ;;  %s5676_s14 = sld [smem:[#allocation64_spill]] }
 0x170   :  { %948 = vmatpush.msra.mxu1 %v504_v26  ;;  %911 = vmatpush.msra.mxu0 %v487_v28  ;;  %v533_v39 = vld [vmem:[#allocation2 + $0x1b0] sm:$0xff]  ;;  %v532_v44 = vld [vmem:[#allocation2 + $0x1a8] sm:$0xff]  ;;  %v482_v46 = vld [vmem:[#allocation2 + $0x18] sm:$0xff]  ;;  %s5677_s28 = sld [smem:[#allocation65_spill]]  ;;  %p4216_p11 = pnand %p4215_p10, %p4211_p7 }
 0x171   :  { %1024 = vmatpush.msra.mxu3 %v536_v27  ;;  %987 = vmatpush.msra.mxu2 %v519_v29  ;;  %v4652_v47 = vld [vmem:[%s5664_s25] sm:$0xff]  ;;  %v499_v48 = vld [vmem:[#allocation2 + $0xa0] sm:$0xff]  ;;  %v481_v55 = vld [vmem:[#allocation2 + $0x10] sm:$0xff]  ;;  %s5678_s8 = sld [smem:[#allocation66_spill]] }
 0x172   :  { %949 = vmatpush.msra.mxu1 %v503_v30  ;;  %912 = vmatpush.msra.mxu0 %v486_v32  ;;  %v531_v49 = vld [vmem:[#allocation2 + $0x1a0] sm:$0xff]  ;;  %v571_v51 = vrot.slane %v4652_v47, 1  ;;  %v586_v52 = vrot.slane %v4652_v47, 2  ;;  %v601_v53 = vrot.slane %v4652_v47, 3  ;;  %v514_v54 = vld [vmem:[#allocation2 + $0x118] sm:$0xff]  ;;  %v513_v60 = vld [vmem:[#allocation2 + $0x110] sm:$0xff] }
 0x173   :  { %1025 = vmatpush.msra.mxu3 %v535_v31  ;;  %988 = vmatpush.msra.mxu2 %v518_v33  ;;  %v4655_v50 = vld [vmem:[%s5664_s25 + $0x8] sm:$0xff]  ;;  %v498_v56 = vld [vmem:[#allocation2 + $0x98] sm:$0xff]  ;;  %v4664_v62 = vld [vmem:[%s5664_s25 + $0x10] sm:$0xff]  ;;  %s5679_s1 = sld [smem:[#allocation68_spill]] }
 0x174   :  { %950 = vmatpush.msra.mxu1 %v502_v34  ;;  %913 = vmatpush.msra.mxu0 %v485_v36  ;;  %v572_v57 = vrot.slane %v4655_v50, 1  ;;  %v587_v58 = vrot.slane %v4655_v50, 2  ;;  %v602_v59 = vrot.slane %v4655_v50, 3  ;;  %v530_v61 = vld [vmem:[#allocation2 + $0x198] sm:$0xff]  ;;  %v480_v63 = vld [vmem:[#allocation2 + $0x8] sm:$0xff]  ;;  %v497_v0 = vld [vmem:[#allocation2 + $0x90] sm:$0xff] }
 0x175   :  { %1026 = vmatpush.msra.mxu3 %v534_v35  ;;  %989 = vmatpush.msra.mxu2 %v517_v37  ;;  %v574_v4 = vrot.slane %v4664_v62, 1  ;;  %v4675_v5 = vld [vmem:[%s5664_s25 + $0x18] sm:$0x3f]  ;;  %v512_v6 = vld [vmem:[#allocation2 + $0x108] sm:$0xff]  ;;  %v479_v12 = vld [vmem:[#allocation2] sm:$0xff]  ;;  %v589_v16 = vrot.slane %v4664_v62, 2 }
 0x176   :  { %951 = vmatpush.msra.mxu1 %v501_v38  ;;  %914 = vmatpush.msra.mxu0 %v484_v40  ;;  %v573_v1 = vsel %vm570_vm0, %v571_v51, %v572_v57  ;;  %v588_v2 = vsel %vm585_vm1, %v586_v52, %v587_v58  ;;  %v603_v3 = vsel %vm600_vm2, %v601_v53, %v602_v59  ;;  %v529_v7 = vld [vmem:[#allocation2 + $0x190] sm:$0xff]  ;;  %v496_v8 = vld [vmem:[#allocation2 + $0x88] sm:$0xff]  ;;  %v511_v13 = vld [vmem:[#allocation2 + $0x100] sm:$0xff]  ;;  %v604_v17 = vrot.slane %v4664_v62, 3  ;;  %s5680_s20 = sld [smem:[#allocation69_spill]] }
 0x177   :  { %1027 = vmatpush.msra.mxu3 %v533_v39  ;;  %990 = vmatpush.msra.mxu2 %v516_v41  ;;  %v630_v9 = vrot.slane %v573_v1, 6  ;;  %v631_v10 = vrot.slane %v588_v2, 4  ;;  %v632_v11 = vrot.slane %v603_v3, 2  ;;  %v528_v14 = vld [vmem:[#allocation2 + $0x188] sm:$0xff]  ;;  %v575_v15 = vsel %vm570_vm0, %v572_v57, %v574_v4  ;;  %v558_v22 = vld [vmem:[#allocation2 + $0x278] sm:$0xff]  ;;  %v495_v23 = vld [vmem:[#allocation2 + $0x80] sm:$0xff] }
 0x178   :  { %952 = vmatpush.msra.mxu1 %v500_v43  ;;  %915 = vmatpush.msra.mxu0 %v483_v42  ;;  %v576_v18 = vrot.slane %v4675_v5, 1  ;;  %v591_v24 = vrot.slane %v4675_v5, 2  ;;  %v527_v28 = vld [vmem:[#allocation2 + $0x180] sm:$0xff]  ;;  %v633_v29 = vrot.slane %v575_v15, 6  ;;  %v557_v36 = vld [vmem:[#allocation2 + $0x270] sm:$0xff]  ;;  %v590_v37 = vsel %vm585_vm1, %v587_v58, %v589_v16  ;;  %v4738_v3 = vld [vmem:[%s5664_s25 + $0x20] sm:$0xff] }
 0x179   :  { %1028 = vmatpush.msra.mxu3 %v532_v44  ;;  %991 = vmatpush.msra.mxu2 %v515_v45  ;;  %v655_v19 = vsel %vm654_vm3, %v4652_v47, %v630_v9  ;;  %v657_v20 = vsel %vm656_vm4, %v631_v10, %v632_v11  ;;  %v660_v21 = vsel %vm659_vm6, %v4652_v47, %v630_v9  ;;  %v634_v41 = vrot.slane %v590_v37, 4  ;;  %v556_v45 = vld [vmem:[#allocation2 + $0x268] sm:$0xff]  ;;  %s5681_s0 = sld [smem:[#allocation70_spill]] }
 0x17a   :  { %953 = vmatpush.msra.mxu1 %v499_v48  ;;  %916 = vmatpush.msra.mxu0 %v482_v46  ;;  %v658_v25 = vsel %vm615_vm5, %v655_v19, %v657_v20  ;;  %v661_v26 = vsel %vm585_vm1, %v632_v11, %v631_v10  ;;  %v666_v27 = vsel %vm656_vm4, %v4652_v47, %v630_v9  ;;  %v578_v19 = vrot.slane %v4738_v3, 1 }
 0x17b   :  { %1029 = vmatpush.msra.mxu3 %v531_v49  ;;  %992 = vmatpush.msra.mxu2 %v514_v54  ;;  %v663_v30 = vsel %vm662_vm7, %v660_v21, %v661_v26  ;;  %v667_v31 = vsel %vm654_vm3, %v631_v10, %v632_v11  ;;  %v671_v32 = vsel %vm585_vm1, %v630_v9, %v4652_v47  ;;  %v606_v49 = vrot.slane %v4675_v5, 3  ;;  %v553_v9 = vld [vmem:[#allocation2 + $0x250] sm:$0xff] }
 0x17c   :  { %954 = vmatpush.msra.mxu1 %v498_v56  ;;  %917 = vmatpush.msra.mxu0 %v481_v55  ;;  %775 = vst [vmem:[#allocation1] ss:$4 sm:$0xff] %v658_v25  ;;  %v664_v33 = vrot.slane %v663_v30, 2  ;;  %v668_v34 = vsel %vm615_vm5, %v667_v31, %v666_v27  ;;  %v672_v35 = vsel %vm659_vm6, %v631_v10, %v632_v11  ;;  %v555_v55 = vld [vmem:[#allocation2 + $0x260] sm:$0xff]  ;;  %v608_v27 = vrot.slane %v4738_v3, 3 }
 0x17d   :  { %1030 = vmatpush.msra.mxu3 %v530_v61  ;;  %993 = vmatpush.msra.mxu2 %v513_v60  ;;  %v669_v38 = vrot.slane %v668_v34, 4  ;;  %v673_v39 = vsel %vm662_vm7, %v672_v35, %v671_v32  ;;  %v605_v40 = vsel %vm600_vm2, %v602_v59, %v604_v17  ;;  %v679_v44 = vsel %vm659_vm6, %v4655_v50, %v633_v29  ;;  %v4741_v10 = vld [vmem:[%s5664_s25 + $0x28] sm:$0xff]  ;;  %v550_v32 = vld [vmem:[#allocation2 + $0x238] sm:$0xff] }
 0x17e   :  { %955 = vmatpush.msra.mxu1 %v497_v0  ;;  %918 = vmatpush.msra.mxu0 %v480_v63  ;;  %v674_v42 = vrot.slane %v673_v39, 6  ;;  %777 = vst [vmem:[#allocation1 + $0x1] ss:$4 sm:$0xff] %v664_v33  ;;  %v635_v43 = vrot.slane %v605_v40, 2  ;;  %v684_v46 = vsel %vm656_vm4, %v4655_v50, %v633_v29  ;;  %v689_v48 = vsel %vm585_vm1, %v633_v29, %v4655_v50  ;;  %v554_v63 = vld [vmem:[#allocation2 + $0x258] sm:$0xff]  ;;  %v551_v31 = vld [vmem:[#allocation2 + $0x240] sm:$0xff] }
 0x17f   :  { %1031 = vmatpush.msra.mxu3 %v529_v7  ;;  %994 = vmatpush.msra.mxu2 %v512_v6  ;;  %779 = vst [vmem:[#allocation1 + $0x2] ss:$4 sm:$0xff] %v669_v38  ;;  %v577_v56 = vsel %vm570_vm0, %v574_v4, %v576_v18  ;;  %v592_v59 = vsel %vm585_vm1, %v589_v16, %v591_v24  ;;  %v579_v21 = vrot.slane %v4741_v10, 1 }
 0x180   :  { %956 = vmatpush.msra.mxu1 %v496_v8  ;;  %919 = vmatpush.msra.mxu0 %v479_v12  ;;  %781 = vst [vmem:[#allocation1 + $0x3] ss:$4 sm:$0xff] %v674_v42  ;;  %v680_v51 = vsel %vm585_vm1, %v635_v43, %v634_v41  ;;  %v685_v52 = vsel %vm654_vm3, %v634_v41, %v635_v43  ;;  %v636_v2 = vrot.slane %v577_v56, 6  ;;  %v637_v7 = vrot.slane %v592_v59, 4 }
 0x181   :  { %1032 = vmatpush.msra.mxu3 %v528_v14  ;;  %995 = vmatpush.msra.mxu2 %v511_v13  ;;  %v681_v53 = vsel %vm662_vm7, %v679_v44, %v680_v51  ;;  %v690_v54 = vsel %vm659_vm6, %v634_v41, %v635_v43  ;;  %v686_v57 = vsel %vm615_vm5, %v685_v52, %v684_v46  ;;  %v4772_v51 = vld [vmem:[%s5664_s25 + $0x30] sm:$0xff]  ;;  %v639_v56 = vrot.slane %v576_v18, 6 }
 0x182   :  { %1056 = vmatpush.msrb.mxu0 %v558_v22  ;;  %957 = vmatpush.msra.mxu1 %v495_v23  ;;  %v691_v58 = vsel %vm662_vm7, %v690_v54, %v689_v48  ;;  %v676_v60 = vsel %vm654_vm3, %v4655_v50, %v633_v29  ;;  %v677_v61 = vsel %vm656_vm4, %v634_v41, %v635_v43  ;;  %v682_v1 = vrot.slane %v681_v53, 2 }
 0x183   :  { %1033 = vmatpush.msra.mxu3 %v527_v28  ;;  %v607_v0 = vsel %vm600_vm2, %v604_v17, %v606_v49  ;;  %v687_v4 = vrot.slane %v686_v57, 4  ;;  %v692_v6 = vrot.slane %v691_v58, 6  ;;  %v678_v11 = vsel %vm615_vm5, %v676_v60, %v677_v61  ;;  %v552_v17 = vld [vmem:[#allocation2 + $0x248] sm:$0xff] }
 0x184   :  { %1057 = vmatpush.msrb.mxu0 %v557_v36  ;;  %v638_v8 = vrot.slane %v607_v0, 2  ;;  %v697_v16 = vsel %vm659_vm6, %v4664_v62, %v636_v2  ;;  %v702_v20 = vsel %vm656_vm4, %v4664_v62, %v636_v2  ;;  %v593_v22 = vrot.slane %v4738_v3, 2 }
 0x185   :  { %v594_v23 = vrot.slane %v4741_v10, 2  ;;  %v609_v28 = vrot.slane %v4741_v10, 3  ;;  %v707_v29 = vsel %vm585_vm1, %v636_v2, %v4664_v62  ;;  %v694_v33 = vsel %vm654_vm3, %v4664_v62, %v636_v2 }
 0x186   :  { %1058 = vmatpush.msrb.mxu0 %v556_v45  ;;  %v698_v25 = vsel %vm585_vm1, %v638_v8, %v637_v7  ;;  %v703_v26 = vsel %vm654_vm3, %v637_v7, %v638_v8  ;;  %v708_v30 = vsel %vm659_vm6, %v637_v7, %v638_v8  ;;  %v695_v34 = vsel %vm656_vm4, %v637_v7, %v638_v8  ;;  %v547_v7 = vld [vmem:[#allocation2 + $0x220] sm:$0xff] }
 0x187   :  { %v790_v12 = vld.sshfl [vmem:[#allocation1] sm:$0xff pattern:$0x73625140]  ;;  %v792_v13 = vld.sshfl [vmem:[#allocation1 + $0x10] sm:$0xff pattern:$0x73625140]  ;;  %v699_v35 = vsel %vm662_vm7, %v697_v16, %v698_v25  ;;  %v704_v36 = vsel %vm615_vm5, %v703_v26, %v702_v20  ;;  %v709_v37 = vsel %vm662_vm7, %v708_v30, %v707_v29  ;;  %v580_v38 = vsel %vm570_vm0, %v578_v19, %v579_v21 }
 0x188   :  { %1059 = vmatpush.msrb.mxu0 %v555_v55  ;;  %996 = vmatmul.f32.vlgmr.msra.gmra.mxu2 %v792_v13  ;;  %v791_v14 = vld.sshfl [vmem:[#allocation1 + $0x8] sm:$0xff pattern:$0x73625140]  ;;  %v793_v15 = vld.sshfl [vmem:[#allocation1 + $0x18] sm:$0xff pattern:$0x73625140]  ;;  %v595_v39 = vsel %vm585_vm1, %v593_v22, %v594_v23  ;;  %v610_v40 = vsel %vm600_vm2, %v608_v27, %v609_v28  ;;  %v696_v41 = vsel %vm615_vm5, %v694_v33, %v695_v34 }
 0x189   :  { %920 = vmatmul.f32.vlgmr.msra.gmra.mxu0 %v790_v12  ;;  %958 = vmatmul.f32.vlgmr.msra.gmra.mxu1 %v791_v14  ;;  %795 = vst [vmem:[#allocation1] ss:$4 sm:$0xff] %v678_v11  ;;  %v700_v42 = vrot.slane %v699_v35, 2  ;;  %v705_v43 = vrot.slane %v704_v36, 4  ;;  %v710_v44 = vrot.slane %v709_v37, 6  ;;  %v642_v45 = vrot.slane %v580_v38, 6 }
 0x18a   :  { %1060 = vmatpush.msrb.mxu0 %v554_v63  ;;  %1034 = vmatmul.f32.vlgmr.msra.gmra.mxu3 %v793_v15  ;;  %796 = vst [vmem:[#allocation1 + $0x1] ss:$4 sm:$0xff] %v682_v1  ;;  %v643_v46 = vrot.slane %v595_v39, 4  ;;  %v644_v48 = vrot.slane %v610_v40, 2  ;;  %v640_v57 = vrot.slane %v591_v24, 4  ;;  %v641_v58 = vrot.slane %v606_v49, 2 }
 0x18b   :  { %797 = vst [vmem:[#allocation1 + $0x2] ss:$4 sm:$0xff] %v687_v4  ;;  %v581_v59 = vrot.slane %v4772_v51, 1  ;;  %v718_v60 = vsel %vm659_vm6, %v4738_v3, %v642_v45  ;;  %v596_v63 = vrot.slane %v4772_v51, 2  ;;  %v611_v0 = vrot.slane %v4772_v51, 3  ;;  %v549_v1 = vld [vmem:[#allocation2 + $0x230] sm:$0xff] }
 0x18c   :  { %1061 = vmatpush.msrb.mxu0 %v553_v9  ;;  %798 = vst [vmem:[#allocation1 + $0x3] ss:$4 sm:$0xff] %v692_v6  ;;  %v719_v61 = vsel %vm585_vm1, %v644_v48, %v643_v46  ;;  %v723_v18 = vsel %vm656_vm4, %v4738_v3, %v642_v45  ;;  %v724_v24 = vsel %vm654_vm3, %v643_v46, %v644_v48  ;;  %v548_v49 = vld [vmem:[#allocation2 + $0x228] sm:$0xff]  ;;  %v4804_v25 = vld [vmem:[%s5664_s25 + $0x38] sm:$0x3f]  ;;  %v546_v38 = vld [vmem:[#allocation2 + $0x218] sm:$0xff] }
 0x18d   :  { %v712_v2 = vsel %vm654_vm3, %v4675_v5, %v639_v56  ;;  %v713_v4 = vsel %vm656_vm4, %v640_v57, %v641_v58  ;;  %v720_v6 = vsel %vm662_vm7, %v718_v60, %v719_v61  ;;  %v725_v8 = vsel %vm615_vm5, %v724_v24, %v723_v18  ;;  %v545_v39 = vld [vmem:[#allocation2 + $0x210] sm:$0xff] }
 0x18e   :  { %1062 = vmatpush.msrb.mxu0 %v552_v17  ;;  %v582_v9 = vsel %vm570_vm0, %v579_v21, %v581_v59  ;;  %v597_v11 = vsel %vm585_vm1, %v594_v23, %v596_v63  ;;  %v612_v12 = vsel %vm600_vm2, %v609_v28, %v611_v0  ;;  %v715_v13 = vsel %vm654_vm3, %v4738_v3, %v642_v45 }
 0x18f   :  { %v716_v14 = vsel %vm656_vm4, %v643_v46, %v644_v48  ;;  %v714_v15 = vsel %vm615_vm5, %v712_v2, %v713_v4  ;;  %v721_v16 = vrot.slane %v720_v6, 2  ;;  %v726_v17 = vrot.slane %v725_v8, 4  ;;  %v543_v4 = vld [vmem:[#allocation2 + $0x200] sm:$0xff] }
 0x190   :  { %1063 = vmatpush.msrb.mxu0 %v551_v31  ;;  %v645_v19 = vrot.slane %v582_v9, 6  ;;  %v646_v20 = vrot.slane %v597_v11, 4  ;;  %v647_v22 = vrot.slane %v612_v12, 2  ;;  %v717_v26 = vsel %vm615_vm5, %v715_v13, %v716_v14 }
 0x191   :  { %v728_v29 = vsel %vm585_vm1, %v642_v45, %v4738_v3  ;;  %v729_v30 = vsel %vm659_vm6, %v643_v46, %v644_v48  ;;  %v583_v31 = vrot.slane %v4804_v25, 1  ;;  %v598_v34 = vrot.slane %v4804_v25, 2 }
 0x192   :  { %1064 = vmatpush.msrb.mxu0 %v550_v32  ;;  %v736_v32 = vsel %vm659_vm6, %v4741_v10, %v645_v19  ;;  %v737_v33 = vsel %vm585_vm1, %v647_v22, %v646_v20  ;;  %v613_v35 = vrot.slane %v4804_v25, 3  ;;  %v741_v36 = vsel %vm656_vm4, %v4741_v10, %v645_v19 }
 0x193   :  { %v803_v52 = vld.sshfl [vmem:[#allocation1] sm:$0xff pattern:$0x73625140]  ;;  %v805_v53 = vld.sshfl [vmem:[#allocation1 + $0x10] sm:$0xff pattern:$0x73625140]  ;;  %v742_v37 = vsel %vm654_vm3, %v646_v20, %v647_v22  ;;  %v730_v40 = vsel %vm662_vm7, %v729_v30, %v728_v29  ;;  %v733_v46 = vsel %vm654_vm3, %v4741_v10, %v645_v19  ;;  %v734_v48 = vsel %vm656_vm4, %v646_v20, %v647_v22 }
 0x194   :  { %923 = vmatmul.f32.gmra.mxu0 %v803_v52  ;;  %999 = vmatmul.f32.gmra.mxu2 %v805_v53  ;;  %v804_v54 = vld.sshfl [vmem:[#allocation1 + $0x8] sm:$0xff pattern:$0x73625140]  ;;  %v806_v55 = vld.sshfl [vmem:[#allocation1 + $0x18] sm:$0xff pattern:$0x73625140]  ;;  %v614_v45 = vsel %vm600_vm2, %v611_v0, %v613_v35 }
 0x195   :  { %961 = vmatmul.f32.gmra.mxu1 %v804_v54  ;;  %1037 = vmatmul.f32.gmra.mxu3 %v806_v55  ;;  %808 = vst [vmem:[#allocation1] ss:$4 sm:$0xff] %v696_v41  ;;  %v738_v41 = vsel %vm662_vm7, %v736_v32, %v737_v33  ;;  %v731_v52 = vrot.slane %v730_v40, 6  ;;  %v616_v54 = vrot.slane %v4652_v47, 4  ;;  %v617_v55 = vrot.slane %v4655_v50, 4  ;;  %v544_v47 = vld [vmem:[#allocation2 + $0x208] sm:$0xff] }
 0x196   :  { %809 = vst [vmem:[#allocation1 + $0x1] ss:$4 sm:$0xff] %v700_v42  ;;  %1065 = vmatpush.msrb.mxu0 %v549_v1  ;;  %v743_v42 = vsel %vm615_vm5, %v742_v37, %v741_v36  ;;  %v739_v53 = vrot.slane %v738_v41, 2  ;;  %v746_v1 = vsel %vm585_vm1, %v645_v19, %v4741_v10  ;;  %v651_v37 = vrot.slane %v583_v31, 6 }
 0x197   :  { %810 = vst [vmem:[#allocation1 + $0x2] ss:$4 sm:$0xff] %v705_v43  ;;  %v584_v43 = vsel %vm570_vm0, %v581_v59, %v583_v31  ;;  %v744_v56 = vrot.slane %v743_v42, 4  ;;  %v650_v59 = vrot.slane %v614_v45, 2  ;;  %v618_v0 = vsel %vm615_vm5, %v616_v54, %v617_v55 }
 0x198   :  { %811 = vst [vmem:[#allocation1 + $0x3] ss:$4 sm:$0xff] %v710_v44  ;;  %1066 = vmatpush.msrb.mxu0 %v548_v49  ;;  %v599_v44 = vsel %vm585_vm1, %v596_v63, %v598_v34  ;;  %v648_v57 = vrot.slane %v584_v43, 6  ;;  %v735_v63 = vsel %vm615_vm5, %v733_v46, %v734_v48  ;;  %v665_v50 = vrot.slane %v618_v0, 2 }
 0x199   :  { %v649_v58 = vrot.slane %v599_v44, 4  ;;  %v747_v49 = vsel %vm659_vm6, %v646_v20, %v647_v22  ;;  %v670_v6 = vrot.slane %v618_v0, 4  ;;  %v675_v11 = vrot.slane %v618_v0, 6  ;;  %783 = vst [vmem:[#allocation1 + $0x20] ss:$4 sm:$0xff] %v618_v0 }
 0x19a   :  { %1067 = vmatpush.msrb.mxu0 %v547_v7  ;;  %v754_v2 = vsel %vm659_vm6, %v4772_v51, %v648_v57  ;;  %v759_v8 = vsel %vm656_vm4, %v4772_v51, %v648_v57  ;;  %v748_v12 = vsel %vm662_vm7, %v747_v49, %v746_v1  ;;  %785 = vst [vmem:[#allocation1 + $0x21] ss:$4 sm:$0xff] %v665_v50  ;;  %v621_v42 = vrot.slane %v4675_v5, 4 }
 0x19b   :  { %v755_v7 = vsel %vm585_vm1, %v650_v59, %v649_v58  ;;  %v760_v9 = vsel %vm654_vm3, %v649_v58, %v650_v59  ;;  %787 = vst [vmem:[#allocation1 + $0x22] ss:$4 sm:$0xff] %v670_v6  ;;  %v749_v19 = vrot.slane %v748_v12, 6  ;;  %v764_v30 = vsel %vm585_vm1, %v648_v57, %v4772_v51 }
 0x19c   :  { %1068 = vmatpush.msrb.mxu0 %v546_v38  ;;  %v756_v13 = vsel %vm662_vm7, %v754_v2, %v755_v7  ;;  %v761_v14 = vsel %vm615_vm5, %v760_v9, %v759_v8  ;;  %789 = vst [vmem:[#allocation1 + $0x23] ss:$4 sm:$0xff] %v675_v11  ;;  %v765_v32 = vsel %vm659_vm6, %v649_v58, %v650_v59  ;;  %v652_v38 = vrot.slane %v598_v34, 4 }
 0x19d   :  { %v757_v20 = vrot.slane %v756_v13, 2  ;;  %v762_v22 = vrot.slane %v761_v14, 4  ;;  %v766_v41 = vsel %vm662_vm7, %v765_v32, %v764_v30  ;;  %v769_v43 = vsel %vm654_vm3, %v4804_v25, %v651_v37 }
 0x19e   :  { %1069 = vmatpush.msrb.mxu0 %v545_v39  ;;  %v653_v39 = vrot.slane %v613_v35, 2  ;;  %v767_v31 = vrot.slane %v766_v41, 6  ;;  %v628_v2 = vrot.slane %v4804_v25, 4 }
 0x19f   :  { %v816_v21 = vld.sshfl [vmem:[#allocation1] sm:$0xff pattern:$0x73625140]  ;;  %v818_v23 = vld.sshfl [vmem:[#allocation1 + $0x10] sm:$0xff pattern:$0x73625140] }
 0x1a0   :  { %926 = vmatmul.f32.gmra.mxu0 %v816_v21  ;;  %1002 = vmatmul.f32.gmra.mxu2 %v818_v23  ;;  %v817_v27 = vld.sshfl [vmem:[#allocation1 + $0x8] sm:$0xff pattern:$0x73625140]  ;;  %v819_v28 = vld.sshfl [vmem:[#allocation1 + $0x18] sm:$0xff pattern:$0x73625140]  ;;  %v770_v44 = vsel %vm656_vm4, %v652_v38, %v653_v39 }
 0x1a1   :  { %964 = vmatmul.f32.gmra.mxu1 %v817_v27  ;;  %1040 = vmatmul.f32.gmra.mxu3 %v819_v28  ;;  %821 = vst [vmem:[#allocation1] ss:$4 sm:$0xff] %v714_v15  ;;  %v619_v15 = vrot.slane %v4664_v62, 4  ;;  %v771_v35 = vsel %vm615_vm5, %v769_v43, %v770_v44 }
 0x1a2   :  { %822 = vst [vmem:[#allocation1 + $0x1] ss:$4 sm:$0xff] %v717_v26  ;;  %1070 = vmatpush.msrb.mxu0 %v544_v47 }
 0x1a3   :  { %823 = vst [vmem:[#allocation1 + $0x2] ss:$4 sm:$0xff] %v721_v16  ;;  %v751_v16 = vsel %vm654_vm3, %v4772_v51, %v648_v57  ;;  %v620_v27 = vsel %vm615_vm5, %v617_v55, %v619_v15  ;;  %v794_v33 = vld.sshfl [vmem:[#allocation1 + $0x20] sm:$0xff pattern:$0x73625140]  ;;  %v622_v34 = vsel %vm615_vm5, %v619_v15, %v621_v42  ;;  %v624_v57 = vrot.slane %v4741_v10, 4 }
 0x1a4   :  { %824 = vst [vmem:[#allocation1 + $0x3] ss:$4 sm:$0xff] %v726_v17  ;;  %1071 = vmatpush.msrb.mxu0 %v543_v4  ;;  %v752_v17 = vsel %vm656_vm4, %v649_v58, %v650_v59  ;;  %v683_v62 = vrot.slane %v620_v27, 2  ;;  %v688_v36 = vrot.slane %v620_v27, 4  ;;  %v693_v40 = vrot.slane %v620_v27, 6 }
 0x1a5   :  { %v753_v26 = vsel %vm615_vm5, %v751_v16, %v752_v17  ;;  %799 = vst [vmem:[#allocation1 + $0x20] ss:$4 sm:$0xff] %v620_v27  ;;  %v701_v5 = vrot.slane %v622_v34, 2  ;;  %v711_v55 = vrot.slane %v622_v34, 6 }
 0x1a6   :  { %800 = vst [vmem:[#allocation1 + $0x21] ss:$4 sm:$0xff] %v683_v62 }
 0x1a7   :  { %801 = vst [vmem:[#allocation1 + $0x22] ss:$4 sm:$0xff] %v688_v36 }
 0x1a8   :  { %802 = vst [vmem:[#allocation1 + $0x23] ss:$4 sm:$0xff] %v693_v40  ;;  %v3623_v40 = vld [vmem:[#allocation5] ss:$0 sm:$0xff] }
 0x1ab   :  { %v829_v60 = vld.sshfl [vmem:[#allocation1] sm:$0xff pattern:$0x73625140]  ;;  %v831_v61 = vld.sshfl [vmem:[#allocation1 + $0x10] sm:$0xff pattern:$0x73625140] }
 0x1ac   :  { %929 = vmatmul.f32.gmra.mxu0 %v829_v60  ;;  %1005 = vmatmul.f32.gmra.mxu2 %v831_v61  ;;  %v830_v18 = vld.sshfl [vmem:[#allocation1 + $0x8] sm:$0xff pattern:$0x73625140]  ;;  %v832_v24 = vld.sshfl [vmem:[#allocation1 + $0x18] sm:$0xff pattern:$0x73625140] }
 0x1ad   :  { %967 = vmatmul.f32.gmra.mxu1 %v830_v18  ;;  %1043 = vmatmul.f32.gmra.mxu3 %v832_v24  ;;  %834 = vst [vmem:[#allocation1] ss:$4 sm:$0xff] %v731_v52 }
 0x1ae   :  { %835 = vst [vmem:[#allocation1 + $0x1] ss:$4 sm:$0xff] %v735_v63 }
 0x1af   :  { %836 = vst [vmem:[#allocation1 + $0x2] ss:$4 sm:$0xff] %v739_v53  ;;  %v706_v53 = vrot.slane %v622_v34, 4  ;;  %v807_v54 = vld.sshfl [vmem:[#allocation1 + $0x20] sm:$0xff pattern:$0x73625140] }
 0x1b0   :  { %837 = vst [vmem:[#allocation1 + $0x3] ss:$4 sm:$0xff] %v744_v56  ;;  %v623_v56 = vrot.slane %v4738_v3, 4  ;;  %v626_v3 = vrot.slane %v4772_v51, 4 }
 0x1b1   :  { %812 = vst [vmem:[#allocation1 + $0x20] ss:$4 sm:$0xff] %v622_v34 }
 0x1b2   :  { %813 = vst [vmem:[#allocation1 + $0x21] ss:$4 sm:$0xff] %v701_v5  ;;  %v625_v63 = vsel %vm615_vm5, %v623_v56, %v624_v57  ;;  %v627_v10 = vsel %vm615_vm5, %v624_v57, %v626_v3  ;;  %v629_v4 = vsel %vm615_vm5, %v626_v3, %v628_v2 }
 0x1b3   :  { %814 = vst [vmem:[#allocation1 + $0x22] ss:$4 sm:$0xff] %v706_v53  ;;  %v722_v0 = vrot.slane %v625_v63, 2  ;;  %v727_v24 = vrot.slane %v625_v63, 4  ;;  %v732_v47 = vrot.slane %v625_v63, 6  ;;  %v740_v50 = vrot.slane %v627_v10, 2 }
 0x1b4   :  { %815 = vst [vmem:[#allocation1 + $0x23] ss:$4 sm:$0xff] %v711_v55  ;;  %v745_v49 = vrot.slane %v627_v10, 4  ;;  %v750_v6 = vrot.slane %v627_v10, 6  ;;  %v758_v51 = vrot.slane %v629_v4, 2  ;;  %v763_v8 = vrot.slane %v629_v4, 4 }
 0x1b5   :  { %v768_v9 = vrot.slane %v629_v4, 6 }
 0x1b7   :  { %v842_v21 = vld.sshfl [vmem:[#allocation1] sm:$0xff pattern:$0x73625140]  ;;  %v844_v23 = vld.sshfl [vmem:[#allocation1 + $0x10] sm:$0xff pattern:$0x73625140] }
 0x1b8   :  { %932 = vmatmul.f32.gmra.mxu0 %v842_v21  ;;  %1008 = vmatmul.f32.gmra.mxu2 %v844_v23  ;;  %v843_v28 = vld.sshfl [vmem:[#allocation1 + $0x8] sm:$0xff pattern:$0x73625140]  ;;  %v845_v29 = vld.sshfl [vmem:[#allocation1 + $0x18] sm:$0xff pattern:$0x73625140] }
 0x1b9   :  { %970 = vmatmul.f32.gmra.mxu1 %v843_v28  ;;  %1046 = vmatmul.f32.gmra.mxu3 %v845_v29  ;;  %847 = vst [vmem:[#allocation1] ss:$4 sm:$0xff] %v749_v19 }
 0x1ba   :  { %848 = vst [vmem:[#allocation1 + $0x1] ss:$4 sm:$0xff] %v753_v26 }
 0x1bb   :  { %849 = vst [vmem:[#allocation1 + $0x2] ss:$4 sm:$0xff] %v757_v20  ;;  %v820_v18 = vld.sshfl [vmem:[#allocation1 + $0x20] sm:$0xff pattern:$0x73625140] }
 0x1bc   :  { %850 = vst [vmem:[#allocation1 + $0x3] ss:$4 sm:$0xff] %v762_v22 }
 0x1bd   :  { %825 = vst [vmem:[#allocation1 + $0x20] ss:$4 sm:$0xff] %v621_v42 }
 0x1be   :  { %826 = vst [vmem:[#allocation1 + $0x21] ss:$4 sm:$0xff] %v625_v63 }
 0x1bf   :  { %827 = vst [vmem:[#allocation1 + $0x22] ss:$4 sm:$0xff] %v722_v0 }
 0x1c0   :  { %828 = vst [vmem:[#allocation1 + $0x23] ss:$4 sm:$0xff] %v727_v24 }
 0x1c3   :  { %v855_v45 = vld.sshfl [vmem:[#allocation1] sm:$0xff pattern:$0x73625140]  ;;  %v857_v46 = vld.sshfl [vmem:[#allocation1 + $0x10] sm:$0xff pattern:$0x73625140] }
 0x1c4   :  { %935 = vmatmul.f32.gmra.mxu0 %v855_v45  ;;  %1011 = vmatmul.f32.gmra.mxu2 %v857_v46  ;;  %v856_v48 = vld.sshfl [vmem:[#allocation1 + $0x8] sm:$0xff pattern:$0x73625140]  ;;  %v858_v52 = vld.sshfl [vmem:[#allocation1 + $0x18] sm:$0xff pattern:$0x73625140] }
 0x1c5   :  { %973 = vmatmul.f32.gmra.mxu1 %v856_v48  ;;  %1049 = vmatmul.f32.gmra.mxu3 %v858_v52  ;;  %860 = vst [vmem:[#allocation1] ss:$4 sm:$0xff] %v767_v31 }
 0x1c6   :  { %861 = vst [vmem:[#allocation1 + $0x1] ss:$4 sm:$0xff] %v771_v35 }
 0x1c7   :  { %v833_v1 = vld.sshfl [vmem:[#allocation1 + $0x20] sm:$0xff pattern:$0x73625140] }
 0x1c8   :  { %838 = vst [vmem:[#allocation1 + $0x20] ss:$4 sm:$0xff] %v732_v47 }
 0x1c9   :  { %839 = vst [vmem:[#allocation1 + $0x21] ss:$4 sm:$0xff] %v627_v10 }
 0x1ca   :  { %840 = vst [vmem:[#allocation1 + $0x22] ss:$4 sm:$0xff] %v740_v50 }
 0x1cb   :  { %841 = vst [vmem:[#allocation1 + $0x23] ss:$4 sm:$0xff] %v745_v49 }
 0x1cd   :  { %v864_v58 = vld.sshfl [vmem:[#allocation1] sm:$0xff pattern:$0x73625140]  ;;  %v866_v59 = vld.sshfl [vmem:[#allocation1 + $0x10] sm:$0xff pattern:$0x73625140] }
 0x1ce   :  { %938 = vmatmul.f32.gmra.mxu0 %v864_v58  ;;  %1014 = vmatmul.f32.gmra.mxu2 %v866_v59  ;;  %v865_v60 = vld.sshfl [vmem:[#allocation1 + $0x8] sm:$0xff pattern:$0x73625140]  ;;  %v867_v61 = vld.sshfl [vmem:[#allocation1 + $0x18] sm:$0xff pattern:$0x73625140] }
 0x1cf   :  { %976 = vmatmul.f32.gmra.mxu1 %v865_v60  ;;  %1052 = vmatmul.f32.gmra.mxu3 %v867_v61 }
 0x1d2   :  { %v846_v7 = vld.sshfl [vmem:[#allocation1 + $0x20] sm:$0xff pattern:$0x73625140] }
 0x1d3   :  { %851 = vst [vmem:[#allocation1 + $0x20] ss:$4 sm:$0xff] %v750_v6 }
 0x1d4   :  { %852 = vst [vmem:[#allocation1 + $0x21] ss:$4 sm:$0xff] %v629_v4 }
 0x1d5   :  { %853 = vst [vmem:[#allocation1 + $0x22] ss:$4 sm:$0xff] %v758_v51 }
 0x1d6   :  { %1072 = vmatmul.f32.vlgmr.msrb.gmra.mxu0 %v794_v33  ;;  %854 = vst [vmem:[#allocation1 + $0x23] ss:$4 sm:$0xff] %v763_v8 }
 0x1dd   :  { %v859_v11 = vld.sshfl [vmem:[#allocation1 + $0x20] sm:$0xff pattern:$0x73625140] }
 0x1de   :  { %1075 = vmatmul.f32.gmra.mxu0 %v807_v54  ;;  %863 = vst [vmem:[#allocation1 + $0x21] ss:$4 sm:$0xff] %v628_v2 }
 0x1df   :  { %862 = vst [vmem:[#allocation1 + $0x20] ss:$4 sm:$0xff] %v768_v9 }
 0x1e6   :  { %1078 = vmatmul.f32.gmra.mxu0 %v820_v18  ;;  %v868_v25 = vld.sshfl [vmem:[#allocation1 + $0x20] sm:$0xff pattern:$0x73625140] }
 0x1ee   :  { %1081 = vmatmul.f32.gmra.mxu0 %v833_v1 }
 0x1f6   :  { %1084 = vmatmul.f32.gmra.mxu0 %v846_v7 }
 0x1fe   :  { %1087 = vmatmul.f32.gmra.mxu0 %v859_v11 }
 0x206   :  { %1090 = vmatmul.f32.gmra.mxu0 %v868_v25  ;;  %v921_v12 = vpop.f32.mrf.mxu0  ;;  %v959_v17 = vpop.f32.mrf.mxu1 }
 0x207   :  { %v922_v43 = vadd.f32 %v3623_v40, %v921_v12 }
 0x209   :  { %v960_v35 = vadd.f32 %v959_v17, %v922_v43 }
 0x20b   :  { %v997_v19 = vpop.f32.mrf.mxu2 }
 0x20c   :  { %v998_v54 = vadd.f32 %v997_v19, %v960_v35  ;;  %v1212_v35 = vld [vmem:[%s5665_s18 + $0x50] sm:$0xff] }
 0x20d   :  { %v1035_v22 = vpop.f32.mrf.mxu3 }
 0x20e   :  { %v1036_v0 = vadd.f32 %v1035_v22, %v998_v54 }
 0x211   :  { %v924_v13 = vpop.f32.mrf.mxu0 }
 0x212   :  { %v962_v21 = vpop.f32.mrf.mxu1  ;;  %v925_v42 = vadd.f32 %v3623_v40, %v924_v13 }
 0x214   :  { %v963_v45 = vadd.f32 %v962_v21, %v925_v42  ;;  %v1217_v21 = vld [vmem:[%s5665_s18 + $0x78] sm:$0xff] }
 0x215   :  { %1224 = vmatpush.msrb.mxu1 %v1217_v21 }
 0x217   :  { %v1000_v23 = vpop.f32.mrf.mxu2 }
 0x218   :  { %v1038_v27 = vpop.f32.mrf.mxu3  ;;  %v1001_v48 = vadd.f32 %v1000_v23, %v963_v45  ;;  %v1216_v23 = vld [vmem:[%s5665_s18 + $0x70] sm:$0xff] }
 0x219   :  { %1225 = vmatpush.msrb.mxu1 %v1216_v23 }
 0x21a   :  { %v1039_v59 = vadd.f32 %v1038_v27, %v1001_v48 }
 0x21d   :  { %v927_v14 = vpop.f32.mrf.mxu0 }
 0x21e   :  { %v965_v28 = vpop.f32.mrf.mxu1  ;;  %v928_v44 = vadd.f32 %v3623_v40, %v927_v14 }
 0x220   :  { %v966_v52 = vadd.f32 %v965_v28, %v928_v44  ;;  %v1213_v44 = vld [vmem:[%s5665_s18 + $0x58] sm:$0xff] }
 0x223   :  { %v1003_v29 = vpop.f32.mrf.mxu2 }
 0x224   :  { %v1041_v30 = vpop.f32.mrf.mxu3  ;;  %v1004_v55 = vadd.f32 %v1003_v29, %v966_v52 }
 0x226   :  { %v1042_v18 = vadd.f32 %v1041_v30, %v1004_v55  ;;  %v1215_v30 = vld [vmem:[%s5665_s18 + $0x68] sm:$0xff] }
 0x227   :  { %1226 = vmatpush.msrb.mxu1 %v1215_v30 }
 0x229   :  { %v930_v15 = vpop.f32.mrf.mxu0 }
 0x22a   :  { %v968_v32 = vpop.f32.mrf.mxu1  ;;  %v931_v46 = vadd.f32 %v3623_v40, %v930_v15 }
 0x22c   :  { %v969_v56 = vadd.f32 %v968_v32, %v931_v46 }
 0x22f   :  { %v1006_v36 = vpop.f32.mrf.mxu2 }
 0x230   :  { %v1044_v37 = vpop.f32.mrf.mxu3  ;;  %v1007_v60 = vadd.f32 %v1006_v36, %v969_v56  ;;  %v1210_v56 = vld [vmem:[%s5665_s18 + $0x40] sm:$0xff] }
 0x232   :  { %v1045_v50 = vadd.f32 %v1044_v37, %v1007_v60 }
 0x235   :  { %v933_v16 = vpop.f32.mrf.mxu0 }
 0x236   :  { %v971_v39 = vpop.f32.mrf.mxu1  ;;  %v934_v5 = vadd.f32 %v3623_v40, %v933_v16  ;;  %v4309_v16 = vmov 52.0  }
 0x237   :  { %3648 = vrcp.f32 %v4309_v16 }
 0x238   :  { %v972_v61 = vadd.f32 %v971_v39, %v934_v5  ;;  %v1214_v39 = vld [vmem:[%s5665_s18 + $0x60] sm:$0xff]  ;;  %v1211_v5 = vld [vmem:[%s5665_s18 + $0x48] sm:$0xff] }
 0x239   :  { %1227 = vmatpush.msrb.mxu1 %v1214_v39 }
 0x23b   :  { %v1009_v41 = vpop.f32.mrf.mxu2  ;;  %1228 = vmatpush.msrb.mxu1 %v1213_v44 }
 0x23c   :  { %v1047_v31 = vpop.f32.mrf.mxu3  ;;  %v1010_v24 = vadd.f32 %v1009_v41, %v972_v61  ;;  %v1208_v61 = vld [vmem:[%s5665_s18 + $0x30] sm:$0xff] }
 0x23d   :  { %v3649_v36 = vpop.eup %3648  ;;  %1229 = vmatpush.msrb.mxu1 %v1212_v35  ;;  %v3625_v35 = vld [vmem:[#allocation8] ss:$0 sm:$0xff] }
 0x23e   :  { %v1048_v6 = vadd.f32 %v1047_v31, %v1010_v24  ;;  %vm1133_vm15 = vweird.f32 %v3649_v36 }
 0x23f   :  { %1230 = vmatpush.msrb.mxu1 %v1211_v5 }
 0x241   :  { %v936_v20 = vpop.f32.mrf.mxu0  ;;  %1231 = vmatpush.msrb.mxu1 %v1210_v56 }
 0x242   :  { %v974_v53 = vpop.f32.mrf.mxu1  ;;  %v937_v57 = vadd.f32 %v3623_v40, %v936_v20 }
 0x244   :  { %v975_v3 = vadd.f32 %v974_v53, %v937_v57 }
 0x247   :  { %v1012_v58 = vpop.f32.mrf.mxu2 }
 0x248   :  { %v1050_v10 = vpop.f32.mrf.mxu3  ;;  %v1013_v1 = vadd.f32 %v1012_v58, %v975_v3  ;;  %v1209_v58 = vld [vmem:[%s5665_s18 + $0x38] sm:$0xff]  ;;  %v1206_v3 = vld [vmem:[%s5665_s18 + $0x20] sm:$0xff] }
 0x249   :  { %1232 = vmatpush.msrb.mxu1 %v1209_v58 }
 0x24a   :  { %v1051_v9 = vadd.f32 %v1050_v10, %v1013_v1 }
 0x24b   :  { %v939_v26 = vpop.f32.mrf.mxu0  ;;  %1233 = vmatpush.msrb.mxu1 %v1208_v61 }
 0x24c   :  { %v940_v4 = vadd.f32 %v3623_v40, %v939_v26  ;;  %v977_v51 = vpop.f32.mrf.mxu1 }
 0x24e   :  { %v978_v15 = vadd.f32 %v977_v51, %v940_v4  ;;  %v1203_v4 = vld [vmem:[%s5665_s18 + $0x8] sm:$0xff] }
 0x251   :  { %v1015_v11 = vpop.f32.mrf.mxu2 }
 0x252   :  { %v1016_v22 = vadd.f32 %v1015_v11, %v978_v15  ;;  %v1053_v26 = vpop.f32.mrf.mxu3 }
 0x253   :  { %v1073_v62 = vpop.f32.mrf.mxu0 }
 0x254   :  { %v1074_v49 = vadd.f32 %v1073_v62, %v1036_v0  ;;  %v1054_v37 = vadd.f32 %v1053_v26, %v1016_v22  ;;  %v1207_v0 = vld [vmem:[%s5665_s18 + $0x28] sm:$0xff] }
 0x255   :  { %1234 = vmatpush.msrb.mxu1 %v1207_v0 }
 0x256   :  { %v1101_v25 = vmul.f32 0.01, %v1074_v49  ;;  %vm1094_vm9 = vcmp.ge.f32.partialorder %v1074_v49, 0.0 }
 0x257   :  { %1235 = vmatpush.msrb.mxu1 %v1206_v3 }
 0x258   :  { %v4883_v27 = vsel %vm1094_vm9, %v1074_v49, %v1101_v25  ;;  %v1204_v49 = vld [vmem:[%s5665_s18 + $0x10] sm:$0xff] }
 0x25b   :  { %v1076_v33 = vpop.f32.mrf.mxu0 }
 0x25c   :  { %v1077_v47 = vadd.f32 %v1076_v33, %v1039_v59 }
 0x25e   :  { %v1102_v7 = vmul.f32 0.01, %v1077_v47  ;;  %vm1095_vm8 = vcmp.ge.f32.partialorder %v1077_v47, 0.0 }
 0x260   :  { %v4879_v17 = vsel %vm1095_vm8, %v1077_v47, %v1102_v7  ;;  %v1205_v47 = vld [vmem:[%s5665_s18 + $0x18] sm:$0xff] }
 0x261   :  { %v1115_v62 = vadd.f32 %v4879_v17, %v4883_v27  ;;  %1236 = vmatpush.msrb.mxu1 %v1205_v47 }
 0x263   :  { %v1079_v38 = vpop.f32.mrf.mxu0  ;;  %1237 = vmatpush.msrb.mxu1 %v1204_v49 }
 0x264   :  { %v1080_v2 = vadd.f32 %v1079_v38, %v1042_v18 }
 0x265   :  { %1238 = vmatpush.msrb.mxu1 %v1203_v4 }
 0x266   :  { %v1103_v12 = vmul.f32 0.01, %v1080_v2  ;;  %vm1096_vm10 = vcmp.ge.f32.partialorder %v1080_v2, 0.0 }
 0x268   :  { %v4885_v28 = vsel %vm1096_vm10, %v1080_v2, %v1103_v12 }
 0x269   :  { %v1116_v38 = vadd.f32 %v1115_v62, %v4885_v28 }
 0x26b   :  { %v1082_v34 = vpop.f32.mrf.mxu0 }
 0x26c   :  { %v1083_v8 = vadd.f32 %v1082_v34, %v1045_v50  ;;  %v1129_v34 = vmul.f32 52.0, %v3649_v36 }
 0x26e   :  { %v1104_v19 = vmul.f32 0.01, %v1083_v8  ;;  %vm1097_vm11 = vcmp.ge.f32.partialorder %v1083_v8, 0.0  ;;  %v1130_v54 = vsub.f32 1.0, %v1129_v34  ;;  %v3624_v34 = vld [vmem:[#allocation7] ss:$0 sm:$0xff] }
 0x270   :  { %v1111_v32 = vsel %vm1097_vm11, %v1083_v8, %v1104_v19  ;;  %v1131_v59 = vmul.f32 %v3649_v36, %v1130_v54 }
 0x271   :  { %v1117_v42 = vadd.f32 %v1116_v38, %v1111_v32 }
 0x272   :  { %v1132_v18 = vadd.f32 %v3649_v36, %v1131_v59 }
 0x273   :  { %v1085_v63 = vpop.f32.mrf.mxu0 }
 0x274   :  { %v1086_v13 = vadd.f32 %v1085_v63, %v1048_v6  ;;  %v4902_v50 = vsel %vm1133_vm15, %v3649_v36, %v1132_v18  ;;  %v1202_v6 = vld [vmem:[%s5665_s18] sm:$0xff] }
 0x275   :  { %1239 = vmatpush.msrb.mxu1 %v1202_v6 }
 0x276   :  { %v1105_v29 = vmul.f32 0.01, %v1086_v13  ;;  %vm1098_vm12 = vcmp.ge.f32.partialorder %v1086_v13, 0.0 }
 0x278   :  { %v1112_v40 = vsel %vm1098_vm12, %v1086_v13, %v1105_v29 }
 0x279   :  { %v1118_v45 = vadd.f32 %v1117_v42, %v1112_v40 }
 0x27b   :  { %v1088_v14 = vpop.f32.mrf.mxu0 }
 0x27c   :  { %v1089_v20 = vadd.f32 %v1088_v14, %v1051_v9 }
 0x27e   :  { %v1106_v33 = vmul.f32 0.01, %v1089_v20  ;;  %vm1099_vm13 = vcmp.ge.f32.partialorder %v1089_v20, 0.0 }
 0x280   :  { %v1113_v31 = vsel %vm1099_vm13, %v1089_v20, %v1106_v33 }
 0x281   :  { %v1119_v48 = vadd.f32 %v1118_v45, %v1113_v31 }
 0x283   :  { %v1091_v41 = vpop.f32.mrf.mxu0 }
 0x284   :  { %v1092_v43 = vadd.f32 %v1091_v41, %v1054_v37 }
 0x286   :  { %vm1100_vm14 = vcmp.ge.f32.partialorder %v1092_v43, 0.0  ;;  %v1107_v46 = vmul.f32 0.01, %v1092_v43 }
 0x288   :  { %v1114_v52 = vsel %vm1100_vm14, %v1092_v43, %v1107_v46 }
 0x289   :  { %v1120_v53 = vsel %vm615_vm5, %v1114_v52, 0.0 }
 0x28a   :  { %v1121_v55 = vadd.f32 %v1120_v53, %v1119_v48 }
 0x28c   :  { %v1122_v57 = vrot.slane %v1121_v55, 4 }
 0x28e   :  { %v1123_v60 = vadd.f32 %v1122_v57, %v1121_v55 }
 0x290   :  { %v1124_v63 = vrot.slane %v1123_v60, 2 }
 0x292   :  { %v1125_v24 = vadd.f32 %v1124_v63, %v1123_v60 }
 0x294   :  { %v1126_v10 = vrot.slane %v1125_v24, 1 }
 0x296   :  { %v1127_v1 = vadd.f32 %v1126_v10, %v1125_v24 }
 0x298   :  { %v1135_v2 = vmul.f32 %v4902_v50, %v1127_v1 }
 0x29a   :  { %v1136_v51 = vsub.f32 %v4883_v27, %v1135_v2  ;;  %v1137_v7 = vsub.f32 %v4879_v17, %v1135_v2  ;;  %v1138_v8 = vsub.f32 %v4885_v28, %v1135_v2  ;;  %v1139_v9 = vsub.f32 %v1111_v32, %v1135_v2 }
 0x29b   :  { %v1140_v12 = vsub.f32 %v1112_v40, %v1135_v2  ;;  %v1142_v15 = vsub.f32 %v1114_v52, %v1135_v2  ;;  %v1141_v16 = vsub.f32 %v1113_v31, %v1135_v2 }
 0x29c   :  { %v1143_v11 = vmul.f32 %v1136_v51, %v1136_v51  ;;  %v1144_v25 = vmul.f32 %v1137_v7, %v1137_v7  ;;  %v1145_v13 = vmul.f32 %v1138_v8, %v1138_v8  ;;  %v1146_v19 = vmul.f32 %v1139_v9, %v1139_v9 }
 0x29d   :  { %v1147_v22 = vmul.f32 %v1140_v12, %v1140_v12  ;;  %v1149_v23 = vmul.f32 %v1142_v15, %v1142_v15  ;;  %v1148_v26 = vmul.f32 %v1141_v16, %v1141_v16 }
 0x29e   :  { %v1150_v14 = vadd.f32 %v1144_v25, %v1143_v11 }
 0x29f   :  { %v1155_v28 = vsel %vm615_vm5, %v1149_v23, 0.0 }
 0x2a0   :  { %v1151_v20 = vadd.f32 %v1150_v14, %v1145_v13 }
 0x2a2   :  { %v1152_v21 = vadd.f32 %v1151_v20, %v1146_v19 }
 0x2a4   :  { %v1153_v27 = vadd.f32 %v1152_v21, %v1147_v22 }
 0x2a6   :  { %v1154_v17 = vadd.f32 %v1153_v27, %v1148_v26 }
 0x2a8   :  { %v1156_v29 = vadd.f32 %v1155_v28, %v1154_v17 }
 0x2aa   :  { %v1157_v62 = vrot.slane %v1156_v29, 4 }
 0x2ac   :  { %v1158_v30 = vadd.f32 %v1157_v62, %v1156_v29 }
 0x2ae   :  { %v1159_v32 = vrot.slane %v1158_v30, 2 }
 0x2b0   :  { %v1160_v33 = vadd.f32 %v1159_v32, %v1158_v30 }
 0x2b2   :  { %v1161_v36 = vrot.slane %v1160_v33, 1 }
 0x2b4   :  { %v1162_v37 = vadd.f32 %v1161_v36, %v1160_v33 }
 0x2b6   :  { %v1163_v38 = vmul.f32 %v1162_v37, %v4902_v50 }
 0x2b8   :  { %v1164_v39 = vadd.f32 1e-05, %v1163_v38 }
 0x2ba   :  { %3650 = vrsqrt.f32 %v1164_v39  ;;  %vm1171_vm8 = vweird.f32 %v1164_v39 }
 0x2c0   :  { %v3651_v40 = vpop.eup %3650 }
 0x2c1   :  { %v1166_v41 = vmul.f32 %v3651_v40, %v1164_v39  ;;  %vm1172_vm2 = vweird.f32 %v3651_v40 }
 0x2c2   :  { %vm1173_vm9 = vmor %vm1171_vm8, %vm1172_vm2 }
 0x2c3   :  { %v1167_v42 = vmul.f32 %v3651_v40, %v1166_v41 }
 0x2c5   :  { %v1168_v43 = vmul.f32 0.5, %v1167_v42 }
 0x2c7   :  { %v1169_v44 = vsub.f32 1.5, %v1168_v43 }
 0x2c9   :  { %v1170_v31 = vmul.f32 %v3651_v40, %v1169_v44 }
 0x2cb   :  { %v1174_v45 = vsel %vm1173_vm9, %v3651_v40, %v1170_v31 }
 0x2cc   :  { %v1175_v46 = vmul.f32 %v1174_v45, %v1136_v51  ;;  %v1178_v48 = vmul.f32 %v1174_v45, %v1139_v9  ;;  %v1179_v52 = vmul.f32 %v1174_v45, %v1140_v12  ;;  %v1180_v5 = vmul.f32 %v1174_v45, %v1141_v16  ;;  %v3626_v51 = vld [vmem:[#allocation10] ss:$0 sm:$0xff] }
 0x2cd   :  { %v1181_v53 = vmul.f32 %v1174_v45, %v1142_v15  ;;  %v1176_v56 = vmul.f32 %v1174_v45, %v1137_v7  ;;  %v1177_v59 = vmul.f32 %v1174_v45, %v1138_v8 }
 0x2ce   :  { %v1185_v54 = vmul.f32 %v3624_v34, %v1175_v46  ;;  %v1188_v63 = vmul.f32 %v3624_v34, %v1178_v48  ;;  %v1189_v18 = vmul.f32 %v3624_v34, %v1179_v52  ;;  %v1190_v3 = vmul.f32 %v3624_v34, %v1180_v5 }
 0x2cf   :  { %v1186_v57 = vmul.f32 %v3624_v34, %v1176_v56  ;;  %v1187_v60 = vmul.f32 %v3624_v34, %v1177_v59  ;;  %v1191_v47 = vmul.f32 %v3624_v34, %v1181_v53 }
 0x2d0   :  { %v1195_v55 = vadd.f32 %v3625_v35, %v1185_v54  ;;  %v1198_v0 = vadd.f32 %v3625_v35, %v1188_v63  ;;  %v1199_v24 = vadd.f32 %v3625_v35, %v1189_v18  ;;  %v1200_v10 = vadd.f32 %v3625_v35, %v1190_v3 }
 0x2d1   :  { %v1196_v58 = vadd.f32 %v3625_v35, %v1186_v57  ;;  %v1197_v61 = vadd.f32 %v3625_v35, %v1187_v60  ;;  %v1201_v1 = vadd.f32 %v3625_v35, %v1191_v47 }
 0x2d2   :  { %1240 = vmatmul.f32.vlgmr.msrb.gmra.mxu1 %v1195_v55 }
 0x2da   :  { %1243 = vmatmul.f32.gmra.mxu1 %v1196_v58 }
 0x2e2   :  { %1246 = vmatmul.f32.gmra.mxu1 %v1197_v61 }
 0x2ea   :  { %1249 = vmatmul.f32.gmra.mxu1 %v1198_v0 }
 0x2f2   :  { %1252 = vmatmul.f32.gmra.mxu1 %v1199_v24 }
 0x2fa   :  { %1255 = vmatmul.f32.gmra.mxu1 %v1200_v10 }
 0x302   :  { %1258 = vmatmul.f32.gmra.mxu1 %v1201_v1 }
 0x34f   :  { %v1241_v49 = vpop.f32.mrf.mxu1 }
 0x350   :  { %v1242_v9 = vadd.f32 %v3626_v51, %v1241_v49 }
 0x352   :  { %v1269_v13 = vmul.f32 0.01, %v1242_v9  ;;  %vm1262_vm11 = vcmp.ge.f32.partialorder %v1242_v9, 0.0 }
 0x354   :  { %v1276_v21 = vsel %vm1262_vm11, %v1242_v9, %v1269_v13 }
 0x357   :  { %v1244_v2 = vpop.f32.mrf.mxu1 }
 0x358   :  { %v1245_v8 = vadd.f32 %v3626_v51, %v1244_v2 }
 0x35a   :  { %v1270_v25 = vmul.f32 0.01, %v1245_v8  ;;  %vm1263_vm10 = vcmp.ge.f32.partialorder %v1245_v8, 0.0 }
 0x35c   :  { %v1277_v19 = vsel %vm1263_vm10, %v1245_v8, %v1270_v25 }
 0x35d   :  { %v1283_v27 = vadd.f32 %v1277_v19, %v1276_v21 }
 0x35f   :  { %v1247_v4 = vpop.f32.mrf.mxu1 }
 0x360   :  { %v1248_v11 = vadd.f32 %v3626_v51, %v1247_v4 }
 0x362   :  { %v1271_v14 = vmul.f32 0.01, %v1248_v11  ;;  %vm1264_vm12 = vcmp.ge.f32.partialorder %v1248_v11, 0.0 }
 0x364   :  { %v1278_v23 = vsel %vm1264_vm12, %v1248_v11, %v1271_v14 }
 0x365   :  { %v1284_v29 = vadd.f32 %v1283_v27, %v1278_v23 }
 0x367   :  { %v1250_v6 = vpop.f32.mrf.mxu1 }
 0x368   :  { %v1251_v12 = vadd.f32 %v3626_v51, %v1250_v6 }
 0x36a   :  { %v1272_v20 = vmul.f32 0.01, %v1251_v12  ;;  %vm1265_vm13 = vcmp.ge.f32.partialorder %v1251_v12, 0.0 }
 0x36c   :  { %v1279_v17 = vsel %vm1265_vm13, %v1251_v12, %v1272_v20 }
 0x36d   :  { %v1285_v32 = vadd.f32 %v1284_v29, %v1279_v17 }
 0x36f   :  { %v1253_v7 = vpop.f32.mrf.mxu1 }
 0x370   :  { %v1254_v15 = vadd.f32 %v3626_v51, %v1253_v7 }
 0x372   :  { %v1273_v26 = vmul.f32 0.01, %v1254_v15  ;;  %vm1266_vm14 = vcmp.ge.f32.partialorder %v1254_v15, 0.0 }
 0x374   :  { %v1280_v62 = vsel %vm1266_vm14, %v1254_v15, %v1273_v26 }
 0x375   :  { %v1286_v37 = vadd.f32 %v1285_v32, %v1280_v62 }
 0x377   :  { %v1256_v16 = vpop.f32.mrf.mxu1 }
 0x378   :  { %v1257_v22 = vadd.f32 %v3626_v51, %v1256_v16 }
 0x37a   :  { %v1274_v28 = vmul.f32 0.01, %v1257_v22  ;;  %vm1267_vm15 = vcmp.ge.f32.partialorder %v1257_v22, 0.0 }
 0x37c   :  { %v1281_v36 = vsel %vm1267_vm15, %v1257_v22, %v1274_v28 }
 0x37d   :  { %v1287_v39 = vadd.f32 %v1286_v37, %v1281_v36 }
 0x37f   :  { %v1259_v30 = vpop.f32.mrf.mxu1 }
 0x380   :  { %v1260_v33 = vadd.f32 %v3626_v51, %v1259_v30 }
 0x382   :  { %vm1268_vm2 = vcmp.ge.f32.partialorder %v1260_v33, 0.0  ;;  %v1275_v38 = vmul.f32 0.01, %v1260_v33 }
 0x384   :  { %v1282_v40 = vsel %vm1268_vm2, %v1260_v33, %v1275_v38 }
 0x385   :  { %v1288_v41 = vsel %vm615_vm5, %v1282_v40, 0.0 }
 0x386   :  { %v1289_v42 = vadd.f32 %v1288_v41, %v1287_v39 }
 0x388   :  { %v1290_v43 = vrot.slane %v1289_v42, 4 }
 0x38a   :  { %v1291_v44 = vadd.f32 %v1290_v43, %v1289_v42 }
 0x38c   :  { %v1292_v31 = vrot.slane %v1291_v44, 2 }
 0x38e   :  { %v1293_v34 = vadd.f32 %v1292_v31, %v1291_v44 }
 0x390   :  { %v1294_v45 = vrot.slane %v1293_v34, 1 }
 0x392   :  { %v1295_v46 = vadd.f32 %v1294_v45, %v1293_v34 }
 0x394   :  { %v1296_v35 = vmul.f32 %v1295_v46, %v4902_v50 }
 0x396   :  { %v1297_v48 = vsub.f32 %v1276_v21, %v1296_v35  ;;  %v1298_v52 = vsub.f32 %v1277_v19, %v1296_v35  ;;  %v1299_v5 = vsub.f32 %v1278_v23, %v1296_v35  ;;  %v1300_v53 = vsub.f32 %v1279_v17, %v1296_v35  ;;  %v4921_v19 = vld [vmem:[#allocation11] ss:$0 sm:$0xff] }
 0x397   :  { %v1301_v56 = vsub.f32 %v1280_v62, %v1296_v35  ;;  %v4915_v59 = vsub.f32 %v1282_v40, %v1296_v35  ;;  %v1302_v60 = vsub.f32 %v1281_v36, %v1296_v35 }
 0x398   :  { %v1304_v54 = vmul.f32 %v1297_v48, %v1297_v48  ;;  %v1305_v55 = vmul.f32 %v1298_v52, %v1298_v52  ;;  %v1306_v57 = vmul.f32 %v1299_v5, %v1299_v5  ;;  %v1307_v61 = vmul.f32 %v1300_v53, %v1300_v53 }
 0x399   :  { %v1308_v0 = vmul.f32 %v1301_v56, %v1301_v56  ;;  %v1310_v24 = vmul.f32 %v4915_v59, %v4915_v59  ;;  %v1309_v3 = vmul.f32 %v1302_v60, %v1302_v60 }
 0x39a   :  { %v1311_v58 = vadd.f32 %v1305_v55, %v1304_v54 }
 0x39b   :  { %v1316_v1 = vsel %vm615_vm5, %v1310_v24, 0.0 }
 0x39c   :  { %v1312_v63 = vadd.f32 %v1311_v58, %v1306_v57 }
 0x39e   :  { %v1313_v18 = vadd.f32 %v1312_v63, %v1307_v61 }
 0x3a0   :  { %v1314_v10 = vadd.f32 %v1313_v18, %v1308_v0 }
 0x3a2   :  { %v1315_v47 = vadd.f32 %v1314_v10, %v1309_v3 }
 0x3a4   :  { %v1317_v49 = vadd.f32 %v1316_v1, %v1315_v47  ;;  %v1404_v1 = vld [vmem:[#allocation14 + $0x78] sm:$0xff] }
 0x3a5   :  { %1685 = vmatpush.msrb.mxu2 %v1404_v1  ;;  %v1434_v1 = vld [vmem:[#allocation14 + $0x168] sm:$0xff] }
 0x3a6   :  { %v1318_v2 = vrot.slane %v1317_v49, 4 }
 0x3a8   :  { %v1319_v4 = vadd.f32 %v1318_v2, %v1317_v49  ;;  %v1420_v49 = vld [vmem:[#allocation14 + $0xf8] sm:$0xff]  ;;  %v1403_v2 = vld [vmem:[#allocation14 + $0x70] sm:$0xff] }
 0x3a9   :  { %1720 = vmatpush.msrb.mxu3 %v1420_v49  ;;  %1686 = vmatpush.msrb.mxu2 %v1403_v2  ;;  %v1430_v49 = vld [vmem:[#allocation14 + $0x148] sm:$0xff]  ;;  %v1429_v2 = vld [vmem:[#allocation14 + $0x140] sm:$0xff] }
 0x3aa   :  { %v1320_v6 = vrot.slane %v1319_v4, 2 }
 0x3ac   :  { %v1321_v51 = vadd.f32 %v1320_v6, %v1319_v4  ;;  %v1419_v4 = vld [vmem:[#allocation14 + $0xf0] sm:$0xff] }
 0x3ad   :  { %1721 = vmatpush.msrb.mxu3 %v1419_v4 }
 0x3ae   :  { %v1322_v7 = vrot.slane %v1321_v51, 1 }
 0x3b0   :  { %v1323_v8 = vadd.f32 %v1322_v7, %v1321_v51  ;;  %v1402_v51 = vld [vmem:[#allocation14 + $0x68] sm:$0xff] }
 0x3b1   :  { %v1418_v7 = vld [vmem:[#allocation14 + $0xe8] sm:$0xff]  ;;  %1687 = vmatpush.msrb.mxu2 %v1402_v51 }
 0x3b2   :  { %v1324_v9 = vmul.f32 %v1323_v8, %v4902_v50  ;;  %v4927_v50 = vld [vmem:[#allocation13] ss:$0 sm:$0xff]  ;;  %1722 = vmatpush.msrb.mxu3 %v1418_v7 }
 0x3b4   :  { %v1325_v11 = vadd.f32 1e-05, %v1324_v9  ;;  %v1401_v9 = vld [vmem:[#allocation14 + $0x60] sm:$0xff] }
 0x3b5   :  { %1688 = vmatpush.msrb.mxu2 %v1401_v9 }
 0x3b6   :  { %3652 = vrsqrt.f32 %v1325_v11  ;;  %vm1332_vm9 = vweird.f32 %v1325_v11 }
 0x3bc   :  { %v3653_v25 = vpop.eup %3652 }
 0x3bd   :  { %v1327_v12 = vmul.f32 %v3653_v25, %v1325_v11  ;;  %vm1333_vm8 = vweird.f32 %v3653_v25  ;;  %v1417_v11 = vld [vmem:[#allocation14 + $0xe0] sm:$0xff] }
 0x3be   :  { %vm1334_vm10 = vmor %vm1332_vm9, %vm1333_vm8  ;;  %1723 = vmatpush.msrb.mxu3 %v1417_v11 }
 0x3bf   :  { %v1328_v13 = vmul.f32 %v3653_v25, %v1327_v12  ;;  %v1400_v12 = vld [vmem:[#allocation14 + $0x58] sm:$0xff] }
 0x3c0   :  { %1689 = vmatpush.msrb.mxu2 %v1400_v12 }
 0x3c1   :  { %v1329_v14 = vmul.f32 0.5, %v1328_v13  ;;  %v1399_v13 = vld [vmem:[#allocation14 + $0x50] sm:$0xff] }
 0x3c2   :  { %1690 = vmatpush.msrb.mxu2 %v1399_v13 }
 0x3c3   :  { %v1330_v15 = vsub.f32 1.5, %v1329_v14  ;;  %v1415_v14 = vld [vmem:[#allocation14 + $0xd0] sm:$0xff] }
 0x3c5   :  { %v1331_v16 = vmul.f32 %v3653_v25, %v1330_v15 }
 0x3c7   :  { %v4923_v20 = vsel %vm1334_vm10, %v3653_v25, %v1331_v16 }
 0x3c8   :  { %v1336_v22 = vmul.f32 %v4923_v20, %v1297_v48  ;;  %v1337_v21 = vmul.f32 %v4923_v20, %v1298_v52  ;;  %v1338_v28 = vmul.f32 %v4923_v20, %v1299_v5  ;;  %v1339_v32 = vmul.f32 %v4923_v20, %v1300_v53 }
 0x3c9   :  { %v1340_v41 = vmul.f32 %v4923_v20, %v1301_v56  ;;  %v1341_v31 = vmul.f32 %v4923_v20, %v1302_v60  ;;  %v1342_v6 = vmul.f32 %v4923_v20, %v4915_v59  ;;  %v1416_v59 = vld [vmem:[#allocation14 + $0xd8] sm:$0xff]  ;;  %v1414_v20 = vld [vmem:[#allocation14 + $0xc8] sm:$0xff] }
 0x3ca   :  { %v1346_v23 = vmul.f32 %v4921_v19, %v1336_v22  ;;  %v1347_v26 = vmul.f32 %v4921_v19, %v1337_v21  ;;  %v1348_v37 = vmul.f32 %v4921_v19, %v1338_v28  ;;  %v1349_v39 = vmul.f32 %v4921_v19, %v1339_v32  ;;  %1724 = vmatpush.msrb.mxu3 %v1416_v59  ;;  %v1397_v22 = vld [vmem:[#allocation14 + $0x40] sm:$0xff]  ;;  %v1411_v28 = vld [vmem:[#allocation14 + $0xb0] sm:$0xff]  ;;  %v1410_v32 = vld [vmem:[#allocation14 + $0xa8] sm:$0xff] }
 0x3cb   :  { %v1350_v34 = vmul.f32 %v4921_v19, %v1340_v41  ;;  %v1351_v5 = vmul.f32 %v4921_v19, %v1341_v31  ;;  %v1352_v25 = vmul.f32 %v4921_v19, %v1342_v6  ;;  %v1398_v19 = vld [vmem:[#allocation14 + $0x48] sm:$0xff]  ;;  %v1413_v21 = vld [vmem:[#allocation14 + $0xc0] sm:$0xff]  ;;  %v1408_v41 = vld [vmem:[#allocation14 + $0x98] sm:$0xff] }
 0x3cc   :  { %v1356_v27 = vadd.f32 %v4927_v50, %v1346_v23  ;;  %v4933_v17 = vadd.f32 %v4927_v50, %v1347_v26  ;;  %v4958_v40 = vadd.f32 %v4927_v50, %v1348_v37  ;;  %v4963_v42 = vadd.f32 %v4927_v50, %v1349_v39  ;;  %1725 = vmatpush.msrb.mxu3 %v1415_v14  ;;  %v1396_v23 = vld [vmem:[#allocation14 + $0x38] sm:$0xff]  ;;  %v1393_v39 = vld [vmem:[#allocation14 + $0x20] sm:$0xff]  ;;  %v1407_v31 = vld [vmem:[#allocation14 + $0x90] sm:$0xff] }
 0x3cd   :  { %v4987_v53 = vadd.f32 %v4927_v50, %v1350_v34  ;;  %v4992_v54 = vadd.f32 %v4927_v50, %v1351_v5  ;;  %v5058_v16 = vadd.f32 %v4927_v50, %v1352_v25  ;;  %1691 = vmatpush.msrb.mxu2 %v1398_v19  ;;  %v1412_v26 = vld [vmem:[#allocation14 + $0xb8] sm:$0xff]  ;;  %v1395_v50 = vld [vmem:[#allocation14 + $0x30] sm:$0xff]  ;;  %v1406_v34 = vld [vmem:[#allocation14 + $0x88] sm:$0xff] }
 0x3ce   :  { %v1370_v29 = vrot.slane %v1356_v27, 2  ;;  %v4936_v62 = vrot.slane %v1356_v27, 4  ;;  %v4938_v30 = vrot.slane %v1356_v27, 6  ;;  %1440 = vst [vmem:[#allocation1] ss:$4 sm:$0xff] %v1356_v27  ;;  %v4942_v33 = vrot.slane %v4933_v17, 2  ;;  %1726 = vmatpush.msrb.mxu3 %v1414_v20 }
 0x3cf   :  { %1448 = vst [vmem:[#allocation1 + $0x20] ss:$4 sm:$0xff] %v4933_v17  ;;  %v4946_v36 = vrot.slane %v4933_v17, 4  ;;  %v4950_v38 = vrot.slane %v4933_v17, 6  ;;  %v4966_v43 = vrot.slane %v4958_v40, 2  ;;  %v4973_v45 = vrot.slane %v4958_v40, 4  ;;  %1692 = vmatpush.msrb.mxu2 %v1397_v22 }
 0x3d0   :  { %1442 = vst [vmem:[#allocation1 + $0x1] ss:$4 sm:$0xff] %v1370_v29  ;;  %v1379_v46 = vrot.slane %v4963_v42, 2  ;;  %v1380_v35 = vrot.slane %v4963_v42, 4  ;;  %v4983_v52 = vrot.slane %v4963_v42, 6  ;;  %v4995_v55 = vrot.slane %v4987_v53, 2  ;;  %1727 = vmatpush.msrb.mxu3 %v1413_v21 }
 0x3d1   :  { %1444 = vst [vmem:[#allocation1 + $0x2] ss:$4 sm:$0xff] %v4936_v62  ;;  %v4998_v56 = vrot.slane %v4987_v53, 4  ;;  %v5003_v58 = vrot.slane %v4987_v53, 6  ;;  %v5008_v60 = vrot.slane %v4992_v54, 2  ;;  %v5012_v61 = vrot.slane %v4992_v54, 4  ;;  %1693 = vmatpush.msrb.mxu2 %v1396_v23 }
 0x3d2   :  { %1446 = vst [vmem:[#allocation1 + $0x3] ss:$4 sm:$0xff] %v4938_v30  ;;  %v5018_v0 = vrot.slane %v4992_v54, 6  ;;  %v1378_v10 = vrot.slane %v4958_v40, 6  ;;  %1728 = vmatpush.msrb.mxu3 %v1412_v26 }
 0x3d3   :  { %1450 = vst [vmem:[#allocation1 + $0x21] ss:$4 sm:$0xff] %v4942_v33  ;;  %1694 = vmatpush.msrb.mxu2 %v1395_v50  ;;  %v1428_v50 = vld [vmem:[#allocation14 + $0x138] sm:$0xff] }
 0x3d4   :  { %1452 = vst [vmem:[#allocation1 + $0x22] ss:$4 sm:$0xff] %v4946_v36  ;;  %1729 = vmatpush.msrb.mxu3 %v1411_v28  ;;  %v1427_v28 = vld [vmem:[#allocation14 + $0x130] sm:$0xff] }
 0x3d5   :  { %1454 = vst [vmem:[#allocation1 + $0x23] ss:$4 sm:$0xff] %v4950_v38 }
 0x3d6   :  { %1730 = vmatpush.msrb.mxu3 %v1410_v32 }
 0x3d9   :  { %v4968_v44 = vld.sshfl [vmem:[#allocation1] sm:$0xff pattern:$0x73625140] }
 0x3da   :  { %1457 = vst [vmem:[#allocation1] ss:$4 sm:$0xff] %v4958_v40 }
 0x3db   :  { %1458 = vst [vmem:[#allocation1 + $0x1] ss:$4 sm:$0xff] %v4966_v43 }
 0x3dc   :  { %v4979_v48 = vld.sshfl [vmem:[#allocation1 + $0x20] sm:$0xff pattern:$0x73625140]  ;;  %1459 = vst [vmem:[#allocation1 + $0x2] ss:$4 sm:$0xff] %v4973_v45 }
 0x3dd   :  { %1461 = vst [vmem:[#allocation1 + $0x20] ss:$4 sm:$0xff] %v1379_v46  ;;  %v1389_v46 = vld [vmem:[#allocation14] sm:$0xff] }
 0x3de   :  { %1462 = vst [vmem:[#allocation1 + $0x21] ss:$4 sm:$0xff] %v1380_v35 }
 0x3df   :  { %1463 = vst [vmem:[#allocation1 + $0x22] ss:$4 sm:$0xff] %v4983_v52 }
 0x3e0   :  { %1464 = vst [vmem:[#allocation1 + $0x23] ss:$4 sm:$0xff] %v4987_v53 }
 0x3e3   :  { %v5000_v57 = vld.sshfl [vmem:[#allocation1] sm:$0xff pattern:$0x73625140] }
 0x3e4   :  { %1466 = vst [vmem:[#allocation1] ss:$4 sm:$0xff] %v4995_v55 }
 0x3e5   :  { %1467 = vst [vmem:[#allocation1 + $0x1] ss:$4 sm:$0xff] %v4998_v56 }
 0x3e6   :  { %1468 = vst [vmem:[#allocation1 + $0x2] ss:$4 sm:$0xff] %v5003_v58 }
 0x3e7   :  { %v5014_v63 = vld.sshfl [vmem:[#allocation1 + $0x20] sm:$0xff pattern:$0x73625140]  ;;  %1469 = vst [vmem:[#allocation1 + $0x3] ss:$4 sm:$0xff] %v4992_v54 }
 0x3e8   :  { %1470 = vst [vmem:[#allocation1 + $0x20] ss:$4 sm:$0xff] %v5008_v60 }
 0x3e9   :  { %1471 = vst [vmem:[#allocation1 + $0x21] ss:$4 sm:$0xff] %v5012_v61 }
 0x3ea   :  { %1472 = vst [vmem:[#allocation1 + $0x22] ss:$4 sm:$0xff] %v5018_v0 }
 0x3ee   :  { %v5023_v18 = vld.sshfl [vmem:[#allocation1] sm:$0xff pattern:$0x73625140] }
 0x3ef   :  { %1475 = vst [vmem:[#allocation1] ss:$4 sm:$0xff] %v1370_v29  ;;  %v1394_v29 = vld [vmem:[#allocation14 + $0x28] sm:$0xff] }
 0x3f0   :  { %1477 = vst [vmem:[#allocation1 + $0x1] ss:$4 sm:$0xff] %v4936_v62  ;;  %1695 = vmatpush.msrb.mxu2 %v1394_v29 }
 0x3f1   :  { %v5026_v24 = vld.sshfl [vmem:[#allocation1 + $0x20] sm:$0xff pattern:$0x73625140]  ;;  %1479 = vst [vmem:[#allocation1 + $0x2] ss:$4 sm:$0xff] %v4938_v30 }
 0x3f2   :  { %1481 = vst [vmem:[#allocation1 + $0x3] ss:$4 sm:$0xff] %v4933_v17  ;;  %1696 = vmatpush.msrb.mxu2 %v1393_v39 }
 0x3f3   :  { %1483 = vst [vmem:[#allocation1 + $0x20] ss:$4 sm:$0xff] %v4942_v33 }
 0x3f4   :  { %1485 = vst [vmem:[#allocation1 + $0x21] ss:$4 sm:$0xff] %v4946_v36 }
 0x3f5   :  { %1487 = vst [vmem:[#allocation1 + $0x22] ss:$4 sm:$0xff] %v4950_v38 }
 0x3f6   :  { %1489 = vst [vmem:[#allocation1 + $0x23] ss:$4 sm:$0xff] %v4958_v40 }
 0x3f9   :  { %v5034_v3 = vld.sshfl [vmem:[#allocation1] sm:$0xff pattern:$0x73625140] }
 0x3fa   :  { %1492 = vst [vmem:[#allocation1] ss:$4 sm:$0xff] %v4966_v43 }
 0x3fb   :  { %1493 = vst [vmem:[#allocation1 + $0x1] ss:$4 sm:$0xff] %v4973_v45 }
 0x3fc   :  { %1494 = vst [vmem:[#allocation1 + $0x2] ss:$4 sm:$0xff] %v1378_v10 }
 0x3fd   :  { %v5041_v47 = vld.sshfl [vmem:[#allocation1 + $0x20] sm:$0xff pattern:$0x73625140] }
 0x3fe   :  { %1496 = vst [vmem:[#allocation1 + $0x20] ss:$4 sm:$0xff] %v1380_v35  ;;  %v1436_v35 = vld [vmem:[#allocation14 + $0x178] sm:$0xff] }
 0x3ff   :  { %1497 = vst [vmem:[#allocation1 + $0x21] ss:$4 sm:$0xff] %v4983_v52 }
 0x400   :  { %1498 = vst [vmem:[#allocation1 + $0x22] ss:$4 sm:$0xff] %v4987_v53 }
 0x401   :  { %1499 = vst [vmem:[#allocation1 + $0x23] ss:$4 sm:$0xff] %v4995_v55 }
 0x403   :  { %v5048_v8 = vld.sshfl [vmem:[#allocation1] sm:$0xff pattern:$0x73625140] }
 0x404   :  { %1501 = vst [vmem:[#allocation1] ss:$4 sm:$0xff] %v4998_v56  ;;  %v1549_v20 = vrot.slane %v5048_v8, 6 }
 0x405   :  { %1502 = vst [vmem:[#allocation1 + $0x1] ss:$4 sm:$0xff] %v5003_v58 }
 0x406   :  { %1503 = vst [vmem:[#allocation1 + $0x2] ss:$4 sm:$0xff] %v4992_v54 }
 0x407   :  { %1504 = vst [vmem:[#allocation1 + $0x3] ss:$4 sm:$0xff] %v5008_v60 }
 0x408   :  { %v5055_v15 = vld.sshfl [vmem:[#allocation1 + $0x20] sm:$0xff pattern:$0x73625140] }
 0x409   :  { %1505 = vst [vmem:[#allocation1 + $0x20] ss:$4 sm:$0xff] %v5012_v61  ;;  %v1551_v32 = vrot.slane %v5055_v15, 6 }
 0x40a   :  { %1506 = vst [vmem:[#allocation1 + $0x21] ss:$4 sm:$0xff] %v5018_v0 }
 0x40b   :  { %1507 = vst [vmem:[#allocation1 + $0x22] ss:$4 sm:$0xff] %v5058_v16 }
 0x40e   :  { %v5063_v27 = vld.sshfl [vmem:[#allocation1] sm:$0xff pattern:$0x73625140] }
 0x40f   :  { %1510 = vst [vmem:[#allocation1] ss:$4 sm:$0xff] %v4936_v62  ;;  %v1409_v62 = vld [vmem:[#allocation14 + $0xa0] sm:$0xff] }
 0x410   :  { %1512 = vst [vmem:[#allocation1 + $0x1] ss:$4 sm:$0xff] %v4938_v30  ;;  %1731 = vmatpush.msrb.mxu3 %v1409_v62  ;;  %v1392_v30 = vld [vmem:[#allocation14 + $0x18] sm:$0xff]  ;;  %v1426_v62 = vld [vmem:[#allocation14 + $0x128] sm:$0xff] }
 0x411   :  { %1514 = vst [vmem:[#allocation1 + $0x2] ss:$4 sm:$0xff] %v4933_v17  ;;  %v1391_v17 = vld [vmem:[#allocation14 + $0x10] sm:$0xff]  ;;  %1697 = vmatpush.msrb.mxu2 %v1392_v30  ;;  %v1581_v30 = vsel %vm659_vm6, %v5000_v57, %v1549_v20 }
 0x412   :  { %v5068_v37 = vld.sshfl [vmem:[#allocation1 + $0x20] sm:$0xff pattern:$0x73625140]  ;;  %1516 = vst [vmem:[#allocation1 + $0x3] ss:$4 sm:$0xff] %v4942_v33  ;;  %1732 = vmatpush.msrb.mxu3 %v1408_v41  ;;  %v1584_v41 = vsel %vm656_vm4, %v5000_v57, %v1549_v20 }
 0x413   :  { %1518 = vst [vmem:[#allocation1 + $0x20] ss:$4 sm:$0xff] %v4946_v36  ;;  %v1390_v33 = vld [vmem:[#allocation14 + $0x8] sm:$0xff]  ;;  %1698 = vmatpush.msrb.mxu2 %v1391_v17 }
 0x414   :  { %1520 = vst [vmem:[#allocation1 + $0x21] ss:$4 sm:$0xff] %v4950_v38  ;;  %1733 = vmatpush.msrb.mxu3 %v1407_v31  ;;  %v1405_v38 = vld [vmem:[#allocation14 + $0x80] sm:$0xff] }
 0x415   :  { %1522 = vst [vmem:[#allocation1 + $0x22] ss:$4 sm:$0xff] %v4958_v40  ;;  %1699 = vmatpush.msrb.mxu2 %v1390_v33  ;;  %v1579_v33 = vsel %vm654_vm3, %v5000_v57, %v1549_v20 }
 0x416   :  { %1524 = vst [vmem:[#allocation1 + $0x23] ss:$4 sm:$0xff] %v4966_v43  ;;  %1734 = vmatpush.msrb.mxu3 %v1406_v34  ;;  %v1435_v43 = vld [vmem:[#allocation14 + $0x170] sm:$0xff] }
 0x417   :  { %1700 = vmatpush.msrb.mxu2 %v1389_v46 }
 0x418   :  { %1735 = vmatpush.msrb.mxu3 %v1405_v38 }
 0x419   :  { %v1525_v36 = vld.sshfl [vmem:[#allocation1] sm:$0xff pattern:$0x73625140]  ;;  %1755 = vmatpush.msra.mxu2 %v1436_v35 }
 0x41a   :  { %1527 = vst [vmem:[#allocation1] ss:$4 sm:$0xff] %v4973_v45  ;;  %v1433_v45 = vld [vmem:[#allocation14 + $0x160] sm:$0xff] }
 0x41b   :  { %1528 = vst [vmem:[#allocation1 + $0x1] ss:$4 sm:$0xff] %v1378_v10  ;;  %1756 = vmatpush.msra.mxu2 %v1435_v43  ;;  %v1432_v10 = vld [vmem:[#allocation14 + $0x158] sm:$0xff]  ;;  %v1592_v43 = vsel %vm656_vm4, %v5014_v63, %v1551_v32 }
 0x41c   :  { %1529 = vst [vmem:[#allocation1 + $0x2] ss:$4 sm:$0xff] %v4963_v42  ;;  %v1431_v42 = vld [vmem:[#allocation14 + $0x150] sm:$0xff] }
 0x41d   :  { %v1526_v5 = vld.sshfl [vmem:[#allocation1 + $0x20] sm:$0xff pattern:$0x73625140]  ;;  %1757 = vmatpush.msra.mxu2 %v1434_v1  ;;  %v1425_v1 = vld [vmem:[#allocation14 + $0x120] sm:$0xff] }
 0x41e   :  { %1531 = vst [vmem:[#allocation1 + $0x20] ss:$4 sm:$0xff] %v4983_v52  ;;  %v1545_v52 = vrot.slane %v5034_v3, 6 }
 0x41f   :  { %1532 = vst [vmem:[#allocation1 + $0x21] ss:$4 sm:$0xff] %v4987_v53  ;;  %1758 = vmatpush.msra.mxu2 %v1433_v45  ;;  %v1546_v53 = vrot.slane %v1525_v36, 4  ;;  %v1553_v45 = vrot.slane %v5063_v27, 6 }
 0x420   :  { %1533 = vst [vmem:[#allocation1 + $0x22] ss:$4 sm:$0xff] %v4995_v55  ;;  %v1557_v6 = vsel %vm654_vm3, %v4968_v44, %v1545_v52 }
 0x421   :  { %1534 = vst [vmem:[#allocation1 + $0x23] ss:$4 sm:$0xff] %v4998_v56  ;;  %1759 = vmatpush.msra.mxu2 %v1432_v10  ;;  %v1388_v56 = vrot.slane %v5058_v16, 2  ;;  %v1558_v25 = vsel %vm615_vm5, %v1557_v6, %v1546_v53  ;;  %v1422_v6 = vld [vmem:[#allocation14 + $0x108] sm:$0xff] }
 0x423   :  { %v1530_v40 = vld.sshfl [vmem:[#allocation1] sm:$0xff pattern:$0x73625140]  ;;  %1760 = vmatpush.msra.mxu2 %v1431_v42 }
 0x424   :  { %1536 = vst [vmem:[#allocation1] ss:$4 sm:$0xff] %v5003_v58  ;;  %v1547_v58 = vrot.slane %v5041_v47, 6  ;;  %v1550_v26 = vrot.slane %v1530_v40, 4  ;;  %v1424_v40 = vld [vmem:[#allocation14 + $0x118] sm:$0xff] }
 0x425   :  { %1537 = vst [vmem:[#allocation1 + $0x1] ss:$4 sm:$0xff] %v4992_v54  ;;  %v1548_v54 = vrot.slane %v1526_v5, 4  ;;  %1761 = vmatpush.msra.mxu2 %v1430_v49  ;;  %v1595_v5 = vsel %vm585_vm1, %v1551_v32, %v5014_v63  ;;  %v1598_v49 = vsel %vm654_vm3, %v5023_v18, %v1553_v45 }
 0x426   :  { %1538 = vst [vmem:[#allocation1 + $0x2] ss:$4 sm:$0xff] %v5008_v60  ;;  %v1559_v60 = vsel %vm659_vm6, %v4968_v44, %v1545_v52  ;;  %v1570_v47 = vsel %vm659_vm6, %v4979_v48, %v1547_v58  ;;  %v1573_v9 = vsel %vm656_vm4, %v4979_v48, %v1547_v58  ;;  %v1576_v13 = vsel %vm585_vm1, %v1547_v58, %v4979_v48 }
 0x427   :  { %1539 = vst [vmem:[#allocation1 + $0x3] ss:$4 sm:$0xff] %v5012_v61  ;;  %v1560_v3 = vsel %vm662_vm7, %v1559_v60, %v1546_v53  ;;  %v1562_v61 = vsel %vm656_vm4, %v4968_v44, %v1545_v52  ;;  %v1571_v7 = vsel %vm662_vm7, %v1570_v47, %v1548_v54  ;;  %1762 = vmatpush.msra.mxu2 %v1429_v2  ;;  %v1555_v47 = vrot.slane %v5068_v37, 6 }
 0x428   :  { %v1535_v55 = vld.sshfl [vmem:[#allocation1 + $0x20] sm:$0xff pattern:$0x73625140]  ;;  %v1563_v4 = vsel %vm615_vm5, %v1546_v53, %v1562_v61  ;;  %v1561_v12 = vrot.slane %v1560_v3, 2  ;;  %v1574_v59 = vsel %vm615_vm5, %v1548_v54, %v1573_v9  ;;  %v1572_v19 = vrot.slane %v1571_v7, 2 }
 0x429   :  { %1540 = vst [vmem:[#allocation1 + $0x20] ss:$4 sm:$0xff] %v5018_v0  ;;  %v1565_v0 = vsel %vm585_vm1, %v1545_v52, %v4968_v44  ;;  %v1564_v14 = vrot.slane %v1563_v4, 4  ;;  %v1577_v44 = vsel %vm662_vm7, %v1548_v54, %v1576_v13  ;;  %v1575_v21 = vrot.slane %v1574_v59, 4  ;;  %1763 = vmatpush.msra.mxu2 %v1428_v50  ;;  %v1423_v52 = vld [vmem:[#allocation14 + $0x110] sm:$0xff] }
 0x42a   :  { %1541 = vst [vmem:[#allocation1 + $0x21] ss:$4 sm:$0xff] %v5058_v16  ;;  %v1566_v51 = vsel %vm662_vm7, %v1546_v53, %v1565_v0  ;;  %v1578_v23 = vrot.slane %v1577_v44, 6  ;;  %v1568_v29 = vsel %vm654_vm3, %v4979_v48, %v1547_v58  ;;  %v1552_v8 = vrot.slane %v1535_v55, 4 }
 0x42b   :  { %1542 = vst [vmem:[#allocation1 + $0x22] ss:$4 sm:$0xff] %v1388_v56  ;;  %v1567_v16 = vrot.slane %v1566_v51, 6  ;;  %v1569_v39 = vsel %vm615_vm5, %v1568_v29, %v1548_v54  ;;  %1764 = vmatpush.msra.mxu2 %v1427_v28  ;;  %v1582_v17 = vsel %vm662_vm7, %v1581_v30, %v1550_v26  ;;  %v1589_v48 = vsel %vm659_vm6, %v5014_v63, %v1551_v32  ;;  %v1421_v51 = vld [vmem:[#allocation14 + $0x100] sm:$0xff] }
 0x42c   :  { %v1585_v34 = vsel %vm615_vm5, %v1550_v26, %v1584_v41  ;;  %v1590_v36 = vsel %vm662_vm7, %v1589_v48, %v1552_v8  ;;  %v1580_v38 = vsel %vm615_vm5, %v1579_v33, %v1550_v26  ;;  %v1583_v35 = vrot.slane %v1582_v17, 2 }
 0x42d   :  { %1765 = vmatpush.msra.mxu2 %v1426_v62  ;;  %v1586_v57 = vrot.slane %v1585_v34, 4  ;;  %v1591_v10 = vrot.slane %v1590_v36, 2  ;;  %v1593_v42 = vsel %vm615_vm5, %v1552_v8, %v1592_v43  ;;  %v1587_v56 = vsel %vm654_vm3, %v5014_v63, %v1551_v32 }
 0x42e   :  { %v5108_v11 = vld.sshfl [vmem:[#allocation1] sm:$0xff pattern:$0x73625140]  ;;  %v1596_v58 = vsel %vm662_vm7, %v1552_v8, %v1595_v5  ;;  %v1588_v60 = vsel %vm615_vm5, %v1587_v56, %v1552_v8  ;;  %v1594_v27 = vrot.slane %v1593_v42, 4  ;;  %v1600_v63 = vsel %vm659_vm6, %v5023_v18, %v1553_v45 }
 0x42f   :  { %1620 = vst [vmem:[#allocation1] ss:$4 sm:$0xff] %v1558_v25  ;;  %1766 = vmatpush.msra.mxu2 %v1425_v1  ;;  %v1554_v3 = vrot.slane %v5108_v11, 4  ;;  %v1597_v61 = vrot.slane %v1596_v58, 6  ;;  %v1603_v0 = vsel %vm656_vm4, %v5023_v18, %v1553_v45  ;;  %v1606_v25 = vsel %vm585_vm1, %v1553_v45, %v5023_v18 }
 0x430   :  { %1622 = vst [vmem:[#allocation1 + $0x1] ss:$4 sm:$0xff] %v1561_v12  ;;  %v1611_v37 = vsel %vm659_vm6, %v5026_v24, %v1555_v47 }
 0x431   :  { %1624 = vst [vmem:[#allocation1 + $0x2] ss:$4 sm:$0xff] %v1564_v14  ;;  %1767 = vmatpush.msra.mxu2 %v1424_v40  ;;  %v1599_v2 = vsel %vm615_vm5, %v1598_v49, %v1554_v3  ;;  %v1601_v4 = vsel %vm662_vm7, %v1600_v63, %v1554_v3  ;;  %v1604_v7 = vsel %vm615_vm5, %v1554_v3, %v1603_v0 }
 0x432   :  { %v5116_v22 = vld.sshfl [vmem:[#allocation1 + $0x20] sm:$0xff pattern:$0x73625140]  ;;  %1626 = vst [vmem:[#allocation1 + $0x3] ss:$4 sm:$0xff] %v1567_v16  ;;  %v1602_v11 = vrot.slane %v1601_v4, 2  ;;  %v1607_v13 = vsel %vm662_vm7, %v1554_v3, %v1606_v25 }
 0x433   :  { %1630 = vst [vmem:[#allocation1 + $0x21] ss:$4 sm:$0xff] %v1572_v19  ;;  %1768 = vmatpush.msra.mxu2 %v1423_v52  ;;  %v1556_v9 = vrot.slane %v5116_v22, 4  ;;  %v1605_v44 = vrot.slane %v1604_v7, 4  ;;  %v1614_v19 = vsel %vm656_vm4, %v5026_v24, %v1555_v47  ;;  %v1608_v20 = vrot.slane %v1607_v13, 6 }
 0x434   :  { %1632 = vst [vmem:[#allocation1 + $0x22] ss:$4 sm:$0xff] %v1575_v21 }
 0x435   :  { %1634 = vst [vmem:[#allocation1 + $0x23] ss:$4 sm:$0xff] %v1578_v23  ;;  %1769 = vmatpush.msra.mxu2 %v1422_v6  ;;  %v1612_v16 = vsel %vm662_vm7, %v1611_v37, %v1556_v9  ;;  %v1615_v18 = vsel %vm615_vm5, %v1556_v9, %v1614_v19  ;;  %v1609_v23 = vsel %vm654_vm3, %v5026_v24, %v1555_v47 }
 0x436   :  { %1628 = vst [vmem:[#allocation1 + $0x20] ss:$4 sm:$0xff] %v1569_v39  ;;  %v1610_v50 = vsel %vm615_vm5, %v1609_v23, %v1556_v9  ;;  %v1613_v28 = vrot.slane %v1612_v16, 2  ;;  %v1616_v29 = vrot.slane %v1615_v18, 4 }
 0x437   :  { %1770 = vmatpush.msra.mxu2 %v1421_v51  ;;  %v4310_v51 = vmov 44.0  }
 0x438   :  { %3654 = vrcp.f32 %v4310_v51 }
 0x439   :  { %v1635_v15 = vld.sshfl [vmem:[#allocation1] sm:$0xff pattern:$0x73625140]  ;;  %v5129_v31 = vld.sshfl [vmem:[#allocation1 + $0x10] sm:$0xff pattern:$0x73625140] }
 0x43a   :  { %1701 = vmatmul.f32.vlgmr.msrb.gmra.mxu2 %v1635_v15  ;;  %v1636_v46 = vld.sshfl [vmem:[#allocation1 + $0x8] sm:$0xff pattern:$0x73625140] }
 0x43b   :  { %1736 = vmatmul.f32.vlgmr.msrb.gmra.mxu3 %v1636_v46  ;;  %1641 = vst [vmem:[#allocation1] ss:$4 sm:$0xff] %v1580_v38  ;;  %v3629_v46 = vld [vmem:[#allocation16] ss:$0 sm:$0xff] }
 0x43c   :  { %1642 = vst [vmem:[#allocation1 + $0x1] ss:$4 sm:$0xff] %v1583_v35 }
 0x43d   :  { %v1638_v53 = vld.sshfl [vmem:[#allocation1 + $0x20] sm:$0xff pattern:$0x73625140]  ;;  %v5142_v55 = vld.sshfl [vmem:[#allocation1 + $0x30] sm:$0xff pattern:$0x73625140] }
 0x43e   :  { %v1639_v54 = vld.sshfl [vmem:[#allocation1 + $0x28] sm:$0xff pattern:$0x73625140]  ;;  %1643 = vst [vmem:[#allocation1 + $0x2] ss:$4 sm:$0xff] %v1586_v57 }
 0x43f   :  { %1644 = vst [vmem:[#allocation1 + $0x3] ss:$4 sm:$0xff] %v1588_v60 }
 0x440   :  { %1645 = vst [vmem:[#allocation1 + $0x20] ss:$4 sm:$0xff] %v1591_v10 }
 0x441   :  { %1646 = vst [vmem:[#allocation1 + $0x21] ss:$4 sm:$0xff] %v1594_v27 }
 0x442   :  { %1704 = vmatmul.f32.gmra.mxu2 %v1638_v53  ;;  %1647 = vst [vmem:[#allocation1 + $0x22] ss:$4 sm:$0xff] %v1597_v61 }
 0x443   :  { %1739 = vmatmul.f32.gmra.mxu3 %v1639_v54  ;;  %1648 = vst [vmem:[#allocation1 + $0x23] ss:$4 sm:$0xff] %v1599_v2 }
 0x446   :  { %v1649_v12 = vld.sshfl [vmem:[#allocation1] sm:$0xff pattern:$0x73625140]  ;;  %v1651_v59 = vld.sshfl [vmem:[#allocation1 + $0x10] sm:$0xff pattern:$0x73625140] }
 0x447   :  { %v1650_v14 = vld.sshfl [vmem:[#allocation1 + $0x8] sm:$0xff pattern:$0x73625140] }
 0x448   :  { %1655 = vst [vmem:[#allocation1] ss:$4 sm:$0xff] %v1602_v11 }
 0x449   :  { %1656 = vst [vmem:[#allocation1 + $0x1] ss:$4 sm:$0xff] %v1605_v44 }
 0x44a   :  { %1707 = vmatmul.f32.gmra.mxu2 %v1649_v12  ;;  %v1652_v22 = vld.sshfl [vmem:[#allocation1 + $0x20] sm:$0xff pattern:$0x73625140]  ;;  %v1654_v21 = vld.sshfl [vmem:[#allocation1 + $0x30] sm:$0xff pattern:$0x73625140] }
 0x44b   :  { %1742 = vmatmul.f32.gmra.mxu3 %v1650_v14  ;;  %1657 = vst [vmem:[#allocation1 + $0x2] ss:$4 sm:$0xff] %v1608_v20  ;;  %v1653_v26 = vld.sshfl [vmem:[#allocation1 + $0x28] sm:$0xff pattern:$0x73625140]  ;;  %v3655_v14 = vpop.eup %3654 }
 0x44c   :  { %1658 = vst [vmem:[#allocation1 + $0x3] ss:$4 sm:$0xff] %v1610_v50  ;;  %vm1825_vm12 = vweird.f32 %v3655_v14 }
 0x44d   :  { %1659 = vst [vmem:[#allocation1 + $0x20] ss:$4 sm:$0xff] %v1613_v28 }
 0x44e   :  { %1660 = vst [vmem:[#allocation1 + $0x21] ss:$4 sm:$0xff] %v1616_v29 }
 0x452   :  { %1710 = vmatmul.f32.gmra.mxu2 %v1652_v22  ;;  %v1821_v22 = vmul.f32 44.0, %v3655_v14 }
 0x453   :  { %1745 = vmatmul.f32.gmra.mxu3 %v1653_v26  ;;  %v1661_v32 = vld.sshfl [vmem:[#allocation1] sm:$0xff pattern:$0x73625140]  ;;  %v1662_v39 = vld.sshfl [vmem:[#allocation1 + $0x8] sm:$0xff pattern:$0x73625140] }
 0x454   :  { %v1663_v24 = vld.sshfl [vmem:[#allocation1 + $0x10] sm:$0xff pattern:$0x73625140]  ;;  %v1822_v29 = vsub.f32 1.0, %v1821_v22 }
 0x455   :  { %v1664_v8 = vld.sshfl [vmem:[#allocation1 + $0x20] sm:$0xff pattern:$0x73625140]  ;;  %v1665_v62 = vld.sshfl [vmem:[#allocation1 + $0x28] sm:$0xff pattern:$0x73625140] }
 0x456   :  { %v1666_v30 = vld.sshfl [vmem:[#allocation1 + $0x30] sm:$0xff pattern:$0x73625140] }
 0x45a   :  { %1713 = vmatmul.f32.gmra.mxu2 %v1661_v32 }
 0x45b   :  { %1748 = vmatmul.f32.gmra.mxu3 %v1662_v39 }
 0x462   :  { %1716 = vmatmul.f32.gmra.mxu2 %v1664_v8  ;;  %v1823_v8 = vmul.f32 %v3655_v14, %v1822_v29 }
 0x463   :  { %1751 = vmatmul.f32.gmra.mxu3 %v1665_v62 }
 0x46a   :  { %1771 = vmatmul.f32.vlgmr.msra.gmra.mxu2 %v5129_v31 }
 0x472   :  { %1774 = vmatmul.f32.gmra.mxu2 %v5142_v55 }
 0x47a   :  { %1777 = vmatmul.f32.gmra.mxu2 %v1651_v59 }
 0x482   :  { %1780 = vmatmul.f32.gmra.mxu2 %v1654_v21 }
 0x48a   :  { %1783 = vmatmul.f32.gmra.mxu2 %v1663_v24 }
 0x492   :  { %1786 = vmatmul.f32.gmra.mxu2 %v1666_v30  ;;  %v1824_v30 = vadd.f32 %v3655_v14, %v1823_v8 }
 0x4bd   :  { %v1702_v17 = vpop.f32.mrf.mxu2 }
 0x4be   :  { %v1737_v34 = vpop.f32.mrf.mxu3  ;;  %v1703_v35 = vadd.f32 %v3629_v46, %v1702_v17 }
 0x4c0   :  { %v1738_v31 = vadd.f32 %v1737_v34, %v1703_v35 }
 0x4c5   :  { %v1705_v41 = vpop.f32.mrf.mxu2 }
 0x4c6   :  { %v1740_v38 = vpop.f32.mrf.mxu3  ;;  %v1706_v5 = vadd.f32 %v3629_v46, %v1705_v41 }
 0x4c8   :  { %v1741_v40 = vadd.f32 %v1740_v38, %v1706_v5  ;;  %v1903_v5 = vld [vmem:[#allocation20 + $0x78] sm:$0xff] }
 0x4c9   :  { %1910 = vmatpush.msra.mxu3 %v1903_v5 }
 0x4cd   :  { %v1708_v48 = vpop.f32.mrf.mxu2 }
 0x4ce   :  { %v1743_v57 = vpop.f32.mrf.mxu3  ;;  %v1709_v60 = vadd.f32 %v3629_v46, %v1708_v48  ;;  %v5175_v48 = vsel %vm1825_vm12, %v3655_v14, %v1824_v30 }
 0x4d0   :  { %v1744_v61 = vadd.f32 %v1743_v57, %v1709_v60 }
 0x4d5   :  { %v1711_v15 = vpop.f32.mrf.mxu2 }
 0x4d6   :  { %v1746_v54 = vpop.f32.mrf.mxu3  ;;  %v1712_v27 = vadd.f32 %v3629_v46, %v1711_v15 }
 0x4d8   :  { %v1747_v2 = vadd.f32 %v1746_v54, %v1712_v27  ;;  %v1899_v54 = vld [vmem:[#allocation20 + $0x58] sm:$0xff]  ;;  %v1898_v27 = vld [vmem:[#allocation20 + $0x50] sm:$0xff] }
 0x4dd   :  { %v1714_v33 = vpop.f32.mrf.mxu2 }
 0x4de   :  { %v1715_v49 = vadd.f32 %v3629_v46, %v1714_v33  ;;  %v1749_v63 = vpop.f32.mrf.mxu3 }
 0x4e0   :  { %v1750_v0 = vadd.f32 %v1749_v63, %v1715_v49  ;;  %v1897_v49 = vld [vmem:[#allocation20 + $0x48] sm:$0xff] }
 0x4e5   :  { %v1717_v36 = vpop.f32.mrf.mxu2 }
 0x4e6   :  { %v1718_v11 = vadd.f32 %v3629_v46, %v1717_v36  ;;  %v1752_v12 = vpop.f32.mrf.mxu3 }
 0x4e8   :  { %v1753_v44 = vadd.f32 %v1752_v12, %v1718_v11  ;;  %v1892_v11 = vld [vmem:[#allocation20 + $0x20] sm:$0xff]  ;;  %v1891_v12 = vld [vmem:[#allocation20 + $0x18] sm:$0xff] }
 0x4ed   :  { %v1772_v43 = vpop.f32.mrf.mxu2 }
 0x4ee   :  { %v1773_v1 = vadd.f32 %v1772_v43, %v1738_v31 }
 0x4f0   :  { %v1796_v10 = vmul.f32 0.01, %v1773_v1  ;;  %vm1790_vm1 = vcmp.ge.f32.partialorder %v1773_v1, 0.0 }
 0x4f2   :  { %v1802_v53 = vsel %vm1790_vm1, %v1773_v1, %v1796_v10 }
 0x4f5   :  { %v1775_v45 = vpop.f32.mrf.mxu2 }
 0x4f6   :  { %v1776_v42 = vadd.f32 %v1775_v45, %v1741_v40  ;;  %v1902_v45 = vld [vmem:[#allocation20 + $0x70] sm:$0xff] }
 0x4f7   :  { %1911 = vmatpush.msra.mxu3 %v1902_v45 }
 0x4f8   :  { %vm1791_vm3 = vcmp.ge.f32.partialorder %v1776_v42, 0.0  ;;  %v1797_v52 = vmul.f32 0.01, %v1776_v42 }
 0x4fa   :  { %v1803_v55 = vsel %vm1791_vm3, %v1776_v42, %v1797_v52 }
 0x4fb   :  { %v1808_v56 = vadd.f32 %v1803_v55, %v1802_v53 }
 0x4fd   :  { %v1778_v58 = vpop.f32.mrf.mxu2 }
 0x4fe   :  { %v1779_v4 = vadd.f32 %v1778_v58, %v1744_v61  ;;  %v1900_v58 = vld [vmem:[#allocation20 + $0x60] sm:$0xff] }
 0x500   :  { %v1798_v7 = vmul.f32 0.01, %v1779_v4  ;;  %vm1792_vm4 = vcmp.ge.f32.partialorder %v1779_v4, 0.0 }
 0x502   :  { %v1804_v59 = vsel %vm1792_vm4, %v1779_v4, %v1798_v7  ;;  %v1893_v7 = vld [vmem:[#allocation20 + $0x28] sm:$0xff] }
 0x503   :  { %v1809_v19 = vadd.f32 %v1808_v56, %v1804_v59 }
 0x505   :  { %v1781_v3 = vpop.f32.mrf.mxu2 }
 0x506   :  { %v1782_v47 = vadd.f32 %v1781_v3, %v1747_v2  ;;  %v1896_v2 = vld [vmem:[#allocation20 + $0x40] sm:$0xff] }
 0x508   :  { %v1799_v25 = vmul.f32 0.01, %v1782_v47  ;;  %vm1793_vm6 = vcmp.ge.f32.partialorder %v1782_v47, 0.0 }
 0x50a   :  { %v1805_v37 = vsel %vm1793_vm6, %v1782_v47, %v1799_v25 }
 0x50b   :  { %v1810_v21 = vadd.f32 %v1809_v19, %v1805_v37 }
 0x50d   :  { %v1784_v6 = vpop.f32.mrf.mxu2 }
 0x50e   :  { %v1785_v9 = vadd.f32 %v1784_v6, %v1750_v0  ;;  %v1895_v0 = vld [vmem:[#allocation20 + $0x38] sm:$0xff]  ;;  %v1894_v6 = vld [vmem:[#allocation20 + $0x30] sm:$0xff] }
 0x510   :  { %v1800_v13 = vmul.f32 0.01, %v1785_v9  ;;  %vm1794_vm7 = vcmp.ge.f32.partialorder %v1785_v9, 0.0 }
 0x512   :  { %v1806_v18 = vsel %vm1794_vm7, %v1785_v9, %v1800_v13  ;;  %v1890_v13 = vld [vmem:[#allocation20 + $0x10] sm:$0xff] }
 0x513   :  { %v1811_v26 = vadd.f32 %v1810_v21, %v1806_v18 }
 0x515   :  { %v1787_v16 = vpop.f32.mrf.mxu2 }
 0x516   :  { %v1788_v20 = vadd.f32 %v1787_v16, %v1753_v44  ;;  %v1889_v44 = vld [vmem:[#allocation20 + $0x8] sm:$0xff] }
 0x518   :  { %vm1795_vm11 = vcmp.ge.f32.partialorder %v1788_v20, 0.0  ;;  %v1801_v23 = vmul.f32 0.01, %v1788_v20 }
 0x51a   :  { %v1807_v50 = vsel %vm1795_vm11, %v1788_v20, %v1801_v23  ;;  %v3630_v23 = vld [vmem:[#allocation17] ss:$0 sm:$0xff] }
 0x51b   :  { %v1812_v28 = vsel %vm615_vm5, %v1807_v50, 0.0 }
 0x51c   :  { %v1813_v32 = vadd.f32 %v1812_v28, %v1811_v26  ;;  %v3631_v28 = vld [vmem:[#allocation19] ss:$0 sm:$0xff] }
 0x51e   :  { %v1814_v39 = vrot.slane %v1813_v32, 4 }
 0x520   :  { %v1815_v62 = vadd.f32 %v1814_v39, %v1813_v32 }
 0x522   :  { %v1816_v24 = vrot.slane %v1815_v62, 2 }
 0x524   :  { %v1817_v17 = vadd.f32 %v1816_v24, %v1815_v62 }
 0x526   :  { %v1818_v41 = vrot.slane %v1817_v17, 1 }
 0x528   :  { %v1819_v15 = vadd.f32 %v1818_v41, %v1817_v17 }
 0x52a   :  { %v1827_v33 = vmul.f32 %v5175_v48, %v1819_v15 }
 0x52c   :  { %v5178_v34 = vsub.f32 %v1802_v53, %v1827_v33  ;;  %v5180_v36 = vsub.f32 %v1803_v55, %v1827_v33  ;;  %v5182_v46 = vsub.f32 %v1804_v59, %v1827_v33  ;;  %v5184_v38 = vsub.f32 %v1805_v37, %v1827_v33  ;;  %v1901_v53 = vld [vmem:[#allocation20 + $0x68] sm:$0xff]  ;;  %v1888_v37 = vld [vmem:[#allocation20] sm:$0xff] }
 0x52d   :  { %v5190_v31 = vsub.f32 %v1807_v50, %v1827_v33  ;;  %v5192_v1 = vsub.f32 %v1806_v18, %v1827_v33  ;;  %1912 = vmatpush.msra.mxu3 %v1901_v53 }
 0x52e   :  { %v1834_v35 = vmul.f32 %v5178_v34, %v5178_v34  ;;  %v1835_v43 = vmul.f32 %v5180_v36, %v5180_v36  ;;  %v1836_v40 = vmul.f32 %v5182_v46, %v5182_v46  ;;  %v1837_v10 = vmul.f32 %v5184_v38, %v5184_v38 }
 0x52f   :  { %v1839_v52 = vmul.f32 %v5190_v31, %v5190_v31  ;;  %v1838_v55 = vmul.f32 %v5192_v1, %v5192_v1  ;;  %1913 = vmatpush.msra.mxu3 %v1900_v58 }
 0x530   :  { %v1840_v57 = vadd.f32 %v1835_v43, %v1834_v35 }
 0x531   :  { %v1844_v3 = vsel %vm615_vm5, %v1839_v52, 0.0  ;;  %1914 = vmatpush.msra.mxu3 %v1899_v54 }
 0x532   :  { %v1841_v42 = vadd.f32 %v1840_v57, %v1836_v40  ;;  %v3632_v57 = vld [vmem:[#allocation22] ss:$0 sm:$0xff] }
 0x533   :  { %1915 = vmatpush.msra.mxu3 %v1898_v27 }
 0x534   :  { %v1842_v56 = vadd.f32 %v1841_v42, %v1837_v10 }
 0x535   :  { %1916 = vmatpush.msra.mxu3 %v1897_v49 }
 0x536   :  { %v1843_v60 = vadd.f32 %v1842_v56, %v1838_v55 }
 0x537   :  { %1917 = vmatpush.msra.mxu3 %v1896_v2 }
 0x538   :  { %v1845_v61 = vadd.f32 %v1844_v3, %v1843_v60 }
 0x539   :  { %1918 = vmatpush.msra.mxu3 %v1895_v0 }
 0x53a   :  { %v1846_v63 = vrot.slane %v1845_v61, 4 }
 0x53b   :  { %1919 = vmatpush.msra.mxu3 %v1894_v6 }
 0x53c   :  { %v1847_v4 = vadd.f32 %v1846_v63, %v1845_v61 }
 0x53d   :  { %1920 = vmatpush.msra.mxu3 %v1893_v7 }
 0x53e   :  { %v1848_v47 = vrot.slane %v1847_v4, 2 }
 0x53f   :  { %1921 = vmatpush.msra.mxu3 %v1892_v11 }
 0x540   :  { %v1849_v51 = vadd.f32 %v1848_v47, %v1847_v4 }
 0x541   :  { %1922 = vmatpush.msra.mxu3 %v1891_v12 }
 0x542   :  { %v1850_v9 = vrot.slane %v1849_v51, 1 }
 0x543   :  { %1923 = vmatpush.msra.mxu3 %v1890_v13 }
 0x544   :  { %v1851_v25 = vadd.f32 %v1850_v9, %v1849_v51 }
 0x545   :  { %1924 = vmatpush.msra.mxu3 %v1889_v44 }
 0x546   :  { %v1852_v59 = vmul.f32 %v1851_v25, %v5175_v48 }
 0x547   :  { %1925 = vmatpush.msra.mxu3 %v1888_v37 }
 0x548   :  { %v1853_v14 = vadd.f32 1e-05, %v1852_v59 }
 0x54a   :  { %3656 = vrsqrt.f32 %v1853_v14  ;;  %vm1860_vm14 = vweird.f32 %v1853_v14 }
 0x550   :  { %v3657_v16 = vpop.eup %3656 }
 0x551   :  { %v1855_v19 = vmul.f32 %v3657_v16, %v1853_v14  ;;  %vm1861_vm13 = vweird.f32 %v3657_v16 }
 0x552   :  { %vm1862_vm15 = vmor %vm1860_vm14, %vm1861_vm13 }
 0x553   :  { %v1856_v20 = vmul.f32 %v3657_v16, %v1855_v19 }
 0x555   :  { %v1857_v18 = vmul.f32 0.5, %v1856_v20 }
 0x557   :  { %v1858_v22 = vsub.f32 1.5, %v1857_v18 }
 0x559   :  { %v1859_v21 = vmul.f32 %v3657_v16, %v1858_v22 }
 0x55b   :  { %v1863_v26 = vsel %vm1862_vm15, %v3657_v16, %v1859_v21 }
 0x55c   :  { %v1864_v50 = vmul.f32 %v1863_v26, %v5178_v34  ;;  %v1865_v29 = vmul.f32 %v1863_v26, %v5180_v36  ;;  %v1866_v32 = vmul.f32 %v1863_v26, %v5182_v46  ;;  %v1867_v39 = vmul.f32 %v1863_v26, %v5184_v38 }
 0x55d   :  { %v1868_v8 = vmul.f32 %v1863_v26, %v5192_v1  ;;  %v1869_v62 = vmul.f32 %v1863_v26, %v5190_v31 }
 0x55e   :  { %v1873_v24 = vmul.f32 %v3630_v23, %v1864_v50  ;;  %v1874_v17 = vmul.f32 %v3630_v23, %v1865_v29  ;;  %v1875_v15 = vmul.f32 %v3630_v23, %v1866_v32  ;;  %v1876_v34 = vmul.f32 %v3630_v23, %v1867_v39 }
 0x55f   :  { %v1877_v36 = vmul.f32 %v3630_v23, %v1868_v8  ;;  %v1878_v38 = vmul.f32 %v3630_v23, %v1869_v62 }
 0x560   :  { %v1882_v30 = vadd.f32 %v3631_v28, %v1873_v24  ;;  %v1883_v41 = vadd.f32 %v3631_v28, %v1874_v17  ;;  %v1884_v33 = vadd.f32 %v3631_v28, %v1875_v15  ;;  %v1885_v35 = vadd.f32 %v3631_v28, %v1876_v34 }
 0x561   :  { %v1886_v46 = vadd.f32 %v3631_v28, %v1877_v36  ;;  %v1887_v43 = vadd.f32 %v3631_v28, %v1878_v38 }
 0x562   :  { %1926 = vmatmul.f32.vlgmr.msra.gmra.mxu3 %v1882_v30 }
 0x56a   :  { %1929 = vmatmul.f32.gmra.mxu3 %v1883_v41 }
 0x572   :  { %1932 = vmatmul.f32.gmra.mxu3 %v1884_v33  ;;  %v2073_v33 = vld [vmem:[#allocation25 + $0x78] sm:$0xff] }
 0x573   :  { %2219 = vmatpush.msra.mxu0 %v2073_v33 }
 0x57a   :  { %1935 = vmatmul.f32.gmra.mxu3 %v1885_v35  ;;  %v2072_v35 = vld [vmem:[#allocation25 + $0x70] sm:$0xff] }
 0x57b   :  { %2220 = vmatpush.msra.mxu0 %v2072_v35 }
 0x582   :  { %1938 = vmatmul.f32.gmra.mxu3 %v1886_v46  ;;  %v2071_v46 = vld [vmem:[#allocation25 + $0x68] sm:$0xff] }
 0x583   :  { %2221 = vmatpush.msra.mxu0 %v2071_v46  ;;  %v2075_v46 = vld [vmem:[#allocation25 + $0x88] sm:$0xff] }
 0x58a   :  { %1941 = vmatmul.f32.gmra.mxu3 %v1887_v43  ;;  %v2070_v43 = vld [vmem:[#allocation25 + $0x60] sm:$0xff] }
 0x58b   :  { %2222 = vmatpush.msra.mxu0 %v2070_v43 }
 0x5e5   :  { %v1927_v5 = vpop.f32.mrf.mxu3 }
 0x5e6   :  { %v1928_v10 = vadd.f32 %v3632_v57, %v1927_v5 }
 0x5e8   :  { %v1951_v56 = vmul.f32 0.01, %v1928_v10  ;;  %vm1945_vm8 = vcmp.ge.f32.partialorder %v1928_v10, 0.0 }
 0x5ea   :  { %v1957_v27 = vsel %vm1945_vm8, %v1928_v10, %v1951_v56  ;;  %v2064_v56 = vld [vmem:[#allocation25 + $0x30] sm:$0xff] }
 0x5ed   :  { %v1930_v31 = vpop.f32.mrf.mxu3 }
 0x5ee   :  { %v1931_v45 = vadd.f32 %v3632_v57, %v1930_v31  ;;  %v2069_v31 = vld [vmem:[#allocation25 + $0x58] sm:$0xff] }
 0x5ef   :  { %2223 = vmatpush.msra.mxu0 %v2069_v31 }
 0x5f0   :  { %v1952_v52 = vmul.f32 0.01, %v1931_v45  ;;  %vm1946_vm2 = vcmp.ge.f32.partialorder %v1931_v45, 0.0 }
 0x5f2   :  { %v1958_v60 = vsel %vm1946_vm2, %v1931_v45, %v1952_v52  ;;  %v2067_v45 = vld [vmem:[#allocation25 + $0x48] sm:$0xff] }
 0x5f3   :  { %v1963_v63 = vadd.f32 %v1958_v60, %v1957_v27 }
 0x5f5   :  { %v1933_v1 = vpop.f32.mrf.mxu3 }
 0x5f6   :  { %v1934_v42 = vadd.f32 %v3632_v57, %v1933_v1 }
 0x5f8   :  { %v1953_v58 = vmul.f32 0.01, %v1934_v42  ;;  %vm1947_vm9 = vcmp.ge.f32.partialorder %v1934_v42, 0.0 }
 0x5fa   :  { %v1959_v61 = vsel %vm1947_vm9, %v1934_v42, %v1953_v58  ;;  %v2066_v42 = vld [vmem:[#allocation25 + $0x40] sm:$0xff]  ;;  %v2088_v58 = vld [vmem:[#allocation25 + $0xf0] sm:$0xff] }
 0x5fb   :  { %v1964_v0 = vadd.f32 %v1963_v63, %v1959_v61 }
 0x5fd   :  { %v1936_v40 = vpop.f32.mrf.mxu3 }
 0x5fe   :  { %v1937_v53 = vadd.f32 %v3632_v57, %v1936_v40  ;;  %v2068_v40 = vld [vmem:[#allocation25 + $0x50] sm:$0xff] }
 0x5ff   :  { %2224 = vmatpush.msra.mxu0 %v2068_v40 }
 0x600   :  { %v1954_v3 = vmul.f32 0.01, %v1937_v53  ;;  %vm1948_vm10 = vcmp.ge.f32.partialorder %v1937_v53, 0.0 }
 0x601   :  { %2225 = vmatpush.msra.mxu0 %v2067_v45 }
 0x602   :  { %v1960_v2 = vsel %vm1948_vm10, %v1937_v53, %v1954_v3  ;;  %v2065_v53 = vld [vmem:[#allocation25 + $0x38] sm:$0xff]  ;;  %v2062_v3 = vld [vmem:[#allocation25 + $0x20] sm:$0xff] }
 0x603   :  { %v1965_v51 = vadd.f32 %v1964_v0, %v1960_v2  ;;  %2226 = vmatpush.msra.mxu0 %v2066_v42  ;;  %v2098_v42 = vld [vmem:[#allocation25 + $0x140] sm:$0xff] }
 0x605   :  { %v1939_v55 = vpop.f32.mrf.mxu3  ;;  %2227 = vmatpush.msra.mxu0 %v2065_v53 }
 0x606   :  { %v1940_v54 = vadd.f32 %v3632_v57, %v1939_v55  ;;  %v2089_v55 = vld [vmem:[#allocation25 + $0xf8] sm:$0xff] }
 0x607   :  { %2248 = vmatpush.msra.mxu1 %v2089_v55  ;;  %2228 = vmatpush.msra.mxu0 %v2064_v56  ;;  %v2097_v56 = vld [vmem:[#allocation25 + $0x138] sm:$0xff] }
 0x608   :  { %v1955_v49 = vmul.f32 0.01, %v1940_v54  ;;  %vm1949_vm1 = vcmp.ge.f32.partialorder %v1940_v54, 0.0 }
 0x609   :  { %2249 = vmatpush.msra.mxu1 %v2088_v58 }
 0x60a   :  { %v1961_v6 = vsel %vm1949_vm1, %v1940_v54, %v1955_v49  ;;  %v2063_v54 = vld [vmem:[#allocation25 + $0x28] sm:$0xff] }
 0x60b   :  { %v1966_v9 = vadd.f32 %v1965_v51, %v1961_v6  ;;  %2229 = vmatpush.msra.mxu0 %v2063_v54 }
 0x60d   :  { %v1942_v4 = vpop.f32.mrf.mxu3  ;;  %2230 = vmatpush.msra.mxu0 %v2062_v3  ;;  %v2096_v3 = vld [vmem:[#allocation25 + $0x130] sm:$0xff] }
 0x60e   :  { %v1943_v47 = vadd.f32 %v3632_v57, %v1942_v4  ;;  %v2084_v4 = vld [vmem:[#allocation25 + $0xd0] sm:$0xff] }
 0x610   :  { %vm1950_vm3 = vcmp.ge.f32.partialorder %v1943_v47, 0.0  ;;  %v1956_v7 = vmul.f32 0.01, %v1943_v47 }
 0x612   :  { %v1962_v11 = vsel %vm1950_vm3, %v1943_v47, %v1956_v7  ;;  %v2059_v47 = vld [vmem:[#allocation25 + $0x8] sm:$0xff]  ;;  %v2058_v7 = vld [vmem:[#allocation25] sm:$0xff] }
 0x613   :  { %v1967_v25 = vsel %vm615_vm5, %v1962_v11, 0.0 }
 0x614   :  { %v1968_v12 = vadd.f32 %v1967_v25, %v1966_v9  ;;  %v2082_v9 = vld [vmem:[#allocation25 + $0xc0] sm:$0xff] }
 0x616   :  { %v1969_v59 = vrot.slane %v1968_v12, 4 }
 0x618   :  { %v1970_v13 = vadd.f32 %v1969_v59, %v1968_v12  ;;  %v2081_v12 = vld [vmem:[#allocation25 + $0xb8] sm:$0xff]  ;;  %v2104_v59 = vld [vmem:[#allocation25 + $0x170] sm:$0xff] }
 0x61a   :  { %v1971_v14 = vrot.slane %v1970_v13, 2 }
 0x61c   :  { %v1972_v44 = vadd.f32 %v1971_v14, %v1970_v13  ;;  %v2080_v14 = vld [vmem:[#allocation25 + $0xb0] sm:$0xff] }
 0x61e   :  { %v1973_v37 = vrot.slane %v1972_v44, 1 }
 0x620   :  { %v1974_v16 = vadd.f32 %v1973_v37, %v1972_v44  ;;  %v5238_v44 = vld [vmem:[#allocation23] ss:$0 sm:$0xff]  ;;  %v2103_v37 = vld [vmem:[#allocation25 + $0x168] sm:$0xff] }
 0x622   :  { %v1975_v19 = vmul.f32 %v1974_v16, %v5175_v48 }
 0x624   :  { %v5212_v20 = vsub.f32 %v1957_v27, %v1975_v19  ;;  %v5214_v18 = vsub.f32 %v1958_v60, %v1975_v19  ;;  %v5216_v22 = vsub.f32 %v1959_v61, %v1975_v19  ;;  %v5218_v21 = vsub.f32 %v1960_v2, %v1975_v19  ;;  %v2087_v60 = vld [vmem:[#allocation25 + $0xe8] sm:$0xff]  ;;  %v2086_v27 = vld [vmem:[#allocation25 + $0xe0] sm:$0xff]  ;;  %v2085_v61 = vld [vmem:[#allocation25 + $0xd8] sm:$0xff] }
 0x625   :  { %v5224_v50 = vsub.f32 %v1962_v11, %v1975_v19  ;;  %v5226_v28 = vsub.f32 %v1961_v6, %v1975_v19  ;;  %2250 = vmatpush.msra.mxu1 %v2087_v60  ;;  %v2060_v2 = vld [vmem:[#allocation25 + $0x10] sm:$0xff]  ;;  %v2083_v6 = vld [vmem:[#allocation25 + $0xc8] sm:$0xff]  ;;  %v2105_v11 = vld [vmem:[#allocation25 + $0x178] sm:$0xff] }
 0x626   :  { %v1982_v23 = vmul.f32 %v5212_v20, %v5212_v20  ;;  %v1983_v26 = vmul.f32 %v5214_v18, %v5214_v18  ;;  %v1984_v29 = vmul.f32 %v5216_v22, %v5216_v22  ;;  %v1985_v39 = vmul.f32 %v5218_v21, %v5218_v21  ;;  %v2079_v19 = vld [vmem:[#allocation25 + $0xa8] sm:$0xff] }
 0x627   :  { %v1987_v62 = vmul.f32 %v5224_v50, %v5224_v50  ;;  %v1986_v24 = vmul.f32 %v5226_v28, %v5226_v28  ;;  %2251 = vmatpush.msra.mxu1 %v2086_v27 }
 0x628   :  { %v1988_v32 = vadd.f32 %v1983_v26, %v1982_v23 }
 0x629   :  { %v1992_v41 = vsel %vm615_vm5, %v1987_v62, 0.0  ;;  %2252 = vmatpush.msra.mxu1 %v2085_v61  ;;  %v2095_v61 = vld [vmem:[#allocation25 + $0x128] sm:$0xff] }
 0x62a   :  { %v1989_v8 = vadd.f32 %v1988_v32, %v1984_v29  ;;  %v5247_v29 = vld [vmem:[%s5666_s22] ss:$0 sm:$0xff] }
 0x62b   :  { %2253 = vmatpush.msra.mxu1 %v2084_v4  ;;  %v2102_v32 = vld [vmem:[#allocation25 + $0x160] sm:$0xff]  ;;  %v2092_v4 = vld [vmem:[#allocation25 + $0x110] sm:$0xff] }
 0x62c   :  { %v1990_v30 = vadd.f32 %v1989_v8, %v1985_v39  ;;  %v2078_v39 = vld [vmem:[#allocation25 + $0xa0] sm:$0xff] }
 0x62d   :  { %2254 = vmatpush.msra.mxu1 %v2083_v6  ;;  %v2090_v6 = vld [vmem:[#allocation25 + $0x100] sm:$0xff] }
 0x62e   :  { %v1991_v17 = vadd.f32 %v1990_v30, %v1986_v24  ;;  %v2101_v24 = vld [vmem:[#allocation25 + $0x158] sm:$0xff] }
 0x62f   :  { %2255 = vmatpush.msra.mxu1 %v2082_v9  ;;  %v2077_v30 = vld [vmem:[#allocation25 + $0x98] sm:$0xff] }
 0x630   :  { %v1993_v15 = vadd.f32 %v1992_v41, %v1991_v17  ;;  %v2100_v41 = vld [vmem:[#allocation25 + $0x150] sm:$0xff] }
 0x631   :  { %2256 = vmatpush.msra.mxu1 %v2081_v12 }
 0x632   :  { %v1994_v34 = vrot.slane %v1993_v15, 4 }
 0x633   :  { %2257 = vmatpush.msra.mxu1 %v2080_v14 }
 0x634   :  { %v1995_v36 = vadd.f32 %v1994_v34, %v1993_v15  ;;  %v2076_v15 = vld [vmem:[#allocation25 + $0x90] sm:$0xff] }
 0x635   :  { %2258 = vmatpush.msra.mxu1 %v2079_v19 }
 0x636   :  { %v1996_v38 = vrot.slane %v1995_v36, 2 }
 0x637   :  { %2259 = vmatpush.msra.mxu1 %v2078_v39 }
 0x638   :  { %v1997_v5 = vadd.f32 %v1996_v38, %v1995_v36 }
 0x639   :  { %2260 = vmatpush.msra.mxu1 %v2077_v30 }
 0x63a   :  { %v1998_v1 = vrot.slane %v1997_v5, 1 }
 0x63b   :  { %2261 = vmatpush.msra.mxu1 %v2076_v15 }
 0x63c   :  { %v1999_v57 = vadd.f32 %v1998_v1, %v1997_v5  ;;  %v2074_v5 = vld [vmem:[#allocation25 + $0x80] sm:$0xff] }
 0x63d   :  { %2262 = vmatpush.msra.mxu1 %v2075_v46 }
 0x63e   :  { %v2000_v10 = vmul.f32 %v1999_v57, %v5175_v48  ;;  %v2061_v48 = vld [vmem:[#allocation25 + $0x18] sm:$0xff] }
 0x63f   :  { %2231 = vmatpush.msra.mxu0 %v2061_v48  ;;  %2263 = vmatpush.msra.mxu1 %v2074_v5 }
 0x640   :  { %v2001_v52 = vadd.f32 1e-05, %v2000_v10 }
 0x641   :  { %2232 = vmatpush.msra.mxu0 %v2060_v2 }
 0x642   :  { %3658 = vrsqrt.f32 %v2001_v52  ;;  %vm2008_vm6 = vweird.f32 %v2001_v52 }
 0x643   :  { %2233 = vmatpush.msra.mxu0 %v2059_v47 }
 0x645   :  { %2234 = vmatpush.msra.mxu0 %v2058_v7 }
 0x647   :  { %2277 = vmatpush.msrb.mxu0 %v2105_v11 }
 0x648   :  { %v3659_v49 = vpop.eup %3658 }
 0x649   :  { %v2003_v63 = vmul.f32 %v3659_v49, %v2001_v52  ;;  %vm2009_vm4 = vweird.f32 %v3659_v49  ;;  %2278 = vmatpush.msrb.mxu0 %v2104_v59 }
 0x64a   :  { %vm2010_vm7 = vmor %vm2008_vm6, %vm2009_vm4 }
 0x64b   :  { %v2004_v0 = vmul.f32 %v3659_v49, %v2003_v63  ;;  %2279 = vmatpush.msrb.mxu0 %v2103_v37  ;;  %v2093_v63 = vld [vmem:[#allocation25 + $0x118] sm:$0xff] }
 0x64d   :  { %v2005_v51 = vmul.f32 0.5, %v2004_v0  ;;  %2280 = vmatpush.msrb.mxu0 %v2102_v32  ;;  %v2091_v0 = vld [vmem:[#allocation25 + $0x108] sm:$0xff] }
 0x64f   :  { %v2006_v25 = vsub.f32 1.5, %v2005_v51  ;;  %2281 = vmatpush.msrb.mxu0 %v2101_v24 }
 0x651   :  { %v2007_v13 = vmul.f32 %v3659_v49, %v2006_v25  ;;  %2282 = vmatpush.msrb.mxu0 %v2100_v41 }
 0x653   :  { %v5240_v16 = vsel %vm2010_vm7, %v3659_v49, %v2007_v13  ;;  %v2094_v49 = vld [vmem:[#allocation25 + $0x120] sm:$0xff] }
 0x654   :  { %v2012_v23 = vmul.f32 %v5240_v16, %v5212_v20  ;;  %v2013_v26 = vmul.f32 %v5240_v16, %v5214_v18  ;;  %v2014_v20 = vmul.f32 %v5240_v16, %v5216_v22  ;;  %v2015_v33 = vmul.f32 %v5240_v16, %v5218_v21 }
 0x655   :  { %v2016_v31 = vmul.f32 %v5240_v16, %v5226_v28  ;;  %v2099_v28 = vld [vmem:[#allocation25 + $0x148] sm:$0xff]  ;;  %v2017_v12 = vmul.f32 %v5240_v16, %v5224_v50 }
 0x656   :  { %v2021_v8 = vmul.f32 %v5238_v44, %v2012_v23  ;;  %v2022_v62 = vmul.f32 %v5238_v44, %v2013_v26  ;;  %v2023_v38 = vmul.f32 %v5238_v44, %v2014_v20  ;;  %v2024_v1 = vmul.f32 %v5238_v44, %v2015_v33  ;;  %2283 = vmatpush.msrb.mxu0 %v2099_v28 }
 0x657   :  { %v2025_v57 = vmul.f32 %v5238_v44, %v2016_v31  ;;  %v2026_v37 = vmul.f32 %v5238_v44, %v2017_v12 }
 0x658   :  { %v5254_v17 = vadd.f32 %v5247_v29, %v2021_v8  ;;  %v5257_v18 = vadd.f32 %v5247_v29, %v2022_v62  ;;  %v5284_v40 = vadd.f32 %v5247_v29, %v2023_v38  ;;  %v2033_v45 = vadd.f32 %v5247_v29, %v2024_v1  ;;  %2284 = vmatpush.msrb.mxu0 %v2098_v42 }
 0x659   :  { %v5292_v53 = vadd.f32 %v5247_v29, %v2025_v57  ;;  %v2035_v16 = vadd.f32 %v5247_v29, %v2026_v37  ;;  %v4311_v42 = vmov 32.0   ;;  %v2397_v37 = vld [vmem:[#allocation26 + $0x78] sm:$0xff] }
 0x65a   :  { %v2042_v34 = vrot.slane %v5254_v17, 2  ;;  %v2043_v35 = vrot.slane %v5254_v17, 4  ;;  %v5264_v36 = vrot.slane %v5254_v17, 6  ;;  %2109 = vst [vmem:[#allocation1] ss:$4 sm:$0xff] %v5254_v17  ;;  %v5268_v22 = vrot.slane %v5257_v18, 2  ;;  %2285 = vmatpush.msrb.mxu0 %v2097_v56  ;;  %2404 = vmatpush.msrb.mxu1 %v2397_v37 }
 0x65b   :  { %2117 = vst [vmem:[#allocation1 + $0x20] ss:$4 sm:$0xff] %v5257_v18  ;;  %v5273_v21 = vrot.slane %v5257_v18, 4  ;;  %v5276_v43 = vrot.slane %v5257_v18, 6  ;;  %v2050_v10 = vrot.slane %v5284_v40, 6  ;;  %v2051_v55 = vrot.slane %v2033_v45, 2 }
 0x65c   :  { %2111 = vst [vmem:[#allocation1 + $0x1] ss:$4 sm:$0xff] %v2042_v34  ;;  %v5294_v58 = vrot.slane %v2033_v45, 4  ;;  %v5296_v54 = vrot.slane %v2033_v45, 6  ;;  %v5300_v27 = vrot.slane %v5292_v53, 2  ;;  %v5304_v48 = vrot.slane %v5292_v53, 4  ;;  %2286 = vmatpush.msrb.mxu0 %v2096_v3 }
 0x65d   :  { %2113 = vst [vmem:[#allocation1 + $0x2] ss:$4 sm:$0xff] %v2043_v35  ;;  %v2048_v51 = vrot.slane %v5284_v40, 2  ;;  %v2056_v19 = vrot.slane %v5292_v53, 6  ;;  %v2049_v29 = vrot.slane %v5284_v40, 4  ;;  %v2057_v17 = vrot.slane %v2035_v16, 2 }
 0x65e   :  { %2115 = vst [vmem:[#allocation1 + $0x3] ss:$4 sm:$0xff] %v5264_v36  ;;  %2287 = vmatpush.msrb.mxu0 %v2095_v61  ;;  %3660 = vrcp.f32 %v4311_v42  ;;  %v2382_v42 = vld [vmem:[#allocation26] sm:$0xff] }
 0x65f   :  { %2119 = vst [vmem:[#allocation1 + $0x21] ss:$4 sm:$0xff] %v5268_v22 }
 0x660   :  { %2121 = vst [vmem:[#allocation1 + $0x22] ss:$4 sm:$0xff] %v5273_v21  ;;  %2288 = vmatpush.msrb.mxu0 %v2094_v49 }
 0x661   :  { %2123 = vst [vmem:[#allocation1 + $0x23] ss:$4 sm:$0xff] %v5276_v43 }
 0x662   :  { %2289 = vmatpush.msrb.mxu0 %v2093_v63 }
 0x664   :  { %2290 = vmatpush.msrb.mxu0 %v2092_v4  ;;  %v3661_v3 = vpop.eup %3660 }
 0x665   :  { %v2124_v52 = vld.sshfl [vmem:[#allocation1] sm:$0xff pattern:$0x73625140]  ;;  %v2328_v4 = vmul.f32 32.0, %v3661_v3  ;;  %vm2332_vm14 = vweird.f32 %v3661_v3 }
 0x666   :  { %2235 = vmatmul.f32.vlgmr.msra.gmra.mxu0 %v2124_v52  ;;  %2126 = vst [vmem:[#allocation1] ss:$4 sm:$0xff] %v2050_v10 }
 0x667   :  { %2127 = vst [vmem:[#allocation1 + $0x1] ss:$4 sm:$0xff] %v2033_v45  ;;  %2291 = vmatpush.msrb.mxu0 %v2091_v0 }
 0x668   :  { %2128 = vst [vmem:[#allocation1 + $0x2] ss:$4 sm:$0xff] %v2051_v55  ;;  %v2125_v60 = vld.sshfl [vmem:[#allocation1 + $0x20] sm:$0xff pattern:$0x73625140] }
 0x669   :  { %2129 = vst [vmem:[#allocation1 + $0x3] ss:$4 sm:$0xff] %v5294_v58  ;;  %2292 = vmatpush.msrb.mxu0 %v2090_v6 }
 0x66a   :  { %2130 = vst [vmem:[#allocation1 + $0x20] ss:$4 sm:$0xff] %v5296_v54 }
 0x66b   :  { %2131 = vst [vmem:[#allocation1 + $0x21] ss:$4 sm:$0xff] %v5292_v53 }
 0x66c   :  { %2132 = vst [vmem:[#allocation1 + $0x22] ss:$4 sm:$0xff] %v5300_v27 }
 0x66d   :  { %2133 = vst [vmem:[#allocation1 + $0x23] ss:$4 sm:$0xff] %v5304_v48 }
 0x66e   :  { %2238 = vmatmul.f32.gmra.mxu0 %v2125_v60 }
 0x670   :  { %v2134_v2 = vld.sshfl [vmem:[#allocation1] sm:$0xff pattern:$0x73625140] }
 0x671   :  { %2140 = vst [vmem:[#allocation1] ss:$4 sm:$0xff] %v2042_v34 }
 0x672   :  { %2142 = vst [vmem:[#allocation1 + $0x1] ss:$4 sm:$0xff] %v2043_v35 }
 0x673   :  { %2144 = vst [vmem:[#allocation1 + $0x2] ss:$4 sm:$0xff] %v5264_v36 }
 0x674   :  { %2146 = vst [vmem:[#allocation1 + $0x3] ss:$4 sm:$0xff] %v5257_v18  ;;  %v2135_v47 = vld.sshfl [vmem:[#allocation1 + $0x20] sm:$0xff pattern:$0x73625140] }
 0x675   :  { %2148 = vst [vmem:[#allocation1 + $0x20] ss:$4 sm:$0xff] %v5268_v22 }
 0x676   :  { %2241 = vmatmul.f32.gmra.mxu0 %v2134_v2  ;;  %2150 = vst [vmem:[#allocation1 + $0x21] ss:$4 sm:$0xff] %v5273_v21 }
 0x677   :  { %2152 = vst [vmem:[#allocation1 + $0x22] ss:$4 sm:$0xff] %v5276_v43 }
 0x678   :  { %2154 = vst [vmem:[#allocation1 + $0x23] ss:$4 sm:$0xff] %v5284_v40 }
 0x67b   :  { %v2155_v7 = vld.sshfl [vmem:[#allocation1] sm:$0xff pattern:$0x73625140] }
 0x67c   :  { %2157 = vst [vmem:[#allocation1] ss:$4 sm:$0xff] %v2048_v51  ;;  %v2171_v9 = vrot.slane %v2155_v7, 1  ;;  %v2329_v7 = vsub.f32 1.0, %v2328_v4 }
 0x67e   :  { %2244 = vmatmul.f32.gmra.mxu0 %v2135_v47 }
 0x67f   :  { %v2156_v11 = vld.sshfl [vmem:[#allocation1 + $0x20] sm:$0xff pattern:$0x73625140] }
 0x680   :  { %v2172_v25 = vrot.slane %v2156_v11, 1  ;;  %2159 = vst [vmem:[#allocation1 + $0x20] ss:$4 sm:$0xff] %v2033_v45 }
 0x681   :  { %2160 = vst [vmem:[#allocation1 + $0x21] ss:$4 sm:$0xff] %v2051_v55 }
 0x682   :  { %v2173_v59 = vsel %vm570_vm0, %v2171_v9, %v2172_v25  ;;  %2161 = vst [vmem:[#allocation1 + $0x22] ss:$4 sm:$0xff] %v5294_v58 }
 0x683   :  { %2264 = vmatmul.f32.vlgmr.msra.gmra.mxu1 %v2173_v59  ;;  %2162 = vst [vmem:[#allocation1 + $0x23] ss:$4 sm:$0xff] %v5296_v54  ;;  %v2158_v13 = vld.sshfl [vmem:[#allocation1] sm:$0xff pattern:$0x73625140] }
 0x684   :  { %v2174_v14 = vrot.slane %v2158_v13, 1  ;;  %2164 = vst [vmem:[#allocation1] ss:$4 sm:$0xff] %v5292_v53 }
 0x685   :  { %2165 = vst [vmem:[#allocation1 + $0x1] ss:$4 sm:$0xff] %v5300_v27 }
 0x686   :  { %2166 = vst [vmem:[#allocation1 + $0x2] ss:$4 sm:$0xff] %v5304_v48  ;;  %v2175_v50 = vsel %vm570_vm0, %v2172_v25, %v2174_v14  ;;  %v2330_v25 = vmul.f32 %v3661_v3, %v2329_v7 }
 0x687   :  { %2167 = vst [vmem:[#allocation1 + $0x3] ss:$4 sm:$0xff] %v2056_v19 }
 0x688   :  { %v2331_v13 = vadd.f32 %v3661_v3, %v2330_v25 }
 0x68a   :  { %v2163_v23 = vld.sshfl [vmem:[#allocation1 + $0x20] sm:$0xff pattern:$0x73625140] }
 0x68b   :  { %2267 = vmatmul.f32.gmra.mxu1 %v2175_v50  ;;  %2168 = vst [vmem:[#allocation1 + $0x20] ss:$4 sm:$0xff] %v2035_v16  ;;  %v2176_v32 = vrot.slane %v2163_v23, 1  ;;  %v5343_v50 = vsel %vm2332_vm14, %v3661_v3, %v2331_v13  ;;  %v3638_v13 = vld [vmem:[%s5670_s6] ss:$0 sm:$0xff] }
 0x68e   :  { %v2169_v26 = vld.sshfl [vmem:[#allocation1] sm:$0xff pattern:$0x73625140] }
 0x68f   :  { %v2177_v39 = vrot.slane %v2169_v26, 1  ;;  %2185 = vst [vmem:[#allocation1] ss:$4 sm:$0xff] %v5264_v36  ;;  %v2395_v26 = vld [vmem:[#allocation26 + $0x68] sm:$0xff] }
 0x690   :  { %2187 = vst [vmem:[#allocation1 + $0x1] ss:$4 sm:$0xff] %v5257_v18 }
 0x691   :  { %v2178_v44 = vsel %vm570_vm0, %v2176_v32, %v2177_v39  ;;  %2189 = vst [vmem:[#allocation1 + $0x2] ss:$4 sm:$0xff] %v5268_v22 }
 0x692   :  { %2191 = vst [vmem:[#allocation1 + $0x3] ss:$4 sm:$0xff] %v5273_v21  ;;  %v2170_v8 = vld.sshfl [vmem:[#allocation1 + $0x20] sm:$0xff pattern:$0x73625140] }
 0x693   :  { %2270 = vmatmul.f32.gmra.mxu1 %v2178_v44  ;;  %2193 = vst [vmem:[#allocation1 + $0x20] ss:$4 sm:$0xff] %v5276_v43  ;;  %v2179_v62 = vrot.slane %v2170_v8, 1  ;;  %v3635_v21 = vld [vmem:[%s5667_s12] ss:$0 sm:$0xff] }
 0x694   :  { %2195 = vst [vmem:[#allocation1 + $0x21] ss:$4 sm:$0xff] %v5284_v40 }
 0x695   :  { %2197 = vst [vmem:[#allocation1 + $0x22] ss:$4 sm:$0xff] %v2048_v51  ;;  %v2180_v30 = vsel %vm570_vm0, %v2177_v39, %v2179_v62  ;;  %v2394_v39 = vld [vmem:[#allocation26 + $0x60] sm:$0xff]  ;;  %v2393_v62 = vld [vmem:[#allocation26 + $0x58] sm:$0xff] }
 0x696   :  { %2199 = vst [vmem:[#allocation1 + $0x23] ss:$4 sm:$0xff] %v2049_v29 }
 0x699   :  { %v2200_v24 = vld.sshfl [vmem:[#allocation1] sm:$0xff pattern:$0x73625140] }
 0x69a   :  { %2293 = vmatmul.f32.vlgmr.msrb.gmra.mxu0 %v2200_v24  ;;  %2202 = vst [vmem:[#allocation1] ss:$4 sm:$0xff] %v5294_v58  ;;  %v2392_v24 = vld [vmem:[#allocation26 + $0x50] sm:$0xff] }
 0x69b   :  { %2203 = vst [vmem:[#allocation1 + $0x1] ss:$4 sm:$0xff] %v5296_v54  ;;  %2273 = vmatmul.f32.gmra.mxu1 %v2180_v30 }
 0x69c   :  { %2204 = vst [vmem:[#allocation1 + $0x2] ss:$4 sm:$0xff] %v5292_v53 }
 0x69d   :  { %2205 = vst [vmem:[#allocation1 + $0x3] ss:$4 sm:$0xff] %v5300_v27  ;;  %v2201_v20 = vld.sshfl [vmem:[#allocation1 + $0x20] sm:$0xff pattern:$0x73625140] }
 0x69e   :  { %2206 = vst [vmem:[#allocation1 + $0x20] ss:$4 sm:$0xff] %v5304_v48 }
 0x69f   :  { %2207 = vst [vmem:[#allocation1 + $0x21] ss:$4 sm:$0xff] %v2056_v19 }
 0x6a0   :  { %2208 = vst [vmem:[#allocation1 + $0x22] ss:$4 sm:$0xff] %v2035_v16  ;;  %v2396_v16 = vld [vmem:[#allocation26 + $0x70] sm:$0xff] }
 0x6a1   :  { %2209 = vst [vmem:[#allocation1 + $0x23] ss:$4 sm:$0xff] %v2057_v17  ;;  %2405 = vmatpush.msrb.mxu1 %v2396_v16 }
 0x6a2   :  { %2296 = vmatmul.f32.gmra.mxu0 %v2201_v20 }
 0x6a3   :  { %2406 = vmatpush.msrb.mxu1 %v2395_v26 }
 0x6a4   :  { %v2210_v18 = vld.sshfl [vmem:[#allocation1] sm:$0xff pattern:$0x73625140] }
 0x6a5   :  { %2407 = vmatpush.msrb.mxu1 %v2394_v39 }
 0x6a7   :  { %2408 = vmatpush.msrb.mxu1 %v2393_v62 }
 0x6a8   :  { %v2211_v41 = vld.sshfl [vmem:[#allocation1 + $0x20] sm:$0xff pattern:$0x73625140] }
 0x6a9   :  { %2409 = vmatpush.msrb.mxu1 %v2392_v24 }
 0x6aa   :  { %2299 = vmatmul.f32.gmra.mxu0 %v2210_v18  ;;  %v2391_v18 = vld [vmem:[#allocation26 + $0x48] sm:$0xff] }
 0x6ab   :  { %2410 = vmatpush.msrb.mxu1 %v2391_v18 }
 0x6b2   :  { %2302 = vmatmul.f32.gmra.mxu0 %v2211_v41 }
 0x6e3   :  { %v2236_v15 = vpop.f32.mrf.mxu0 }
 0x6e4   :  { %v2237_v31 = vadd.f32 %v3635_v21, %v2236_v15 }
 0x6eb   :  { %v2239_v33 = vpop.f32.mrf.mxu0 }
 0x6ec   :  { %v2240_v5 = vadd.f32 %v3635_v21, %v2239_v33  ;;  %v2390_v33 = vld [vmem:[#allocation26 + $0x40] sm:$0xff] }
 0x6ed   :  { %2411 = vmatpush.msrb.mxu1 %v2390_v33 }
 0x6f3   :  { %v2242_v34 = vpop.f32.mrf.mxu0 }
 0x6f4   :  { %v2243_v1 = vadd.f32 %v3635_v21, %v2242_v34 }
 0x6fb   :  { %v2245_v36 = vpop.f32.mrf.mxu0 }
 0x6fc   :  { %v2246_v58 = vadd.f32 %v3635_v21, %v2245_v36  ;;  %v2389_v36 = vld [vmem:[#allocation26 + $0x38] sm:$0xff]  ;;  %v2387_v21 = vld [vmem:[#allocation26 + $0x28] sm:$0xff] }
 0x6fd   :  { %2412 = vmatpush.msrb.mxu1 %v2389_v36  ;;  %v2549_v36 = vld [vmem:[#allocation28 + $0x178] sm:$0xff] }
 0x6fe   :  { %2614 = vmatpush.msra.mxu0 %v2549_v36 }
 0x700   :  { %v2265_v35 = vpop.f32.mrf.mxu1 }
 0x701   :  { %v2266_v57 = vadd.f32 %v2265_v35, %v2237_v31 }
 0x708   :  { %v2268_v22 = vpop.f32.mrf.mxu1 }
 0x709   :  { %v2269_v40 = vadd.f32 %v2268_v22, %v2240_v5  ;;  %v2386_v5 = vld [vmem:[#allocation26 + $0x20] sm:$0xff] }
 0x710   :  { %v2271_v43 = vpop.f32.mrf.mxu1 }
 0x711   :  { %v2272_v45 = vadd.f32 %v2271_v43, %v2243_v1  ;;  %v2385_v1 = vld [vmem:[#allocation26 + $0x18] sm:$0xff] }
 0x717   :  { %v2294_v46 = vpop.f32.mrf.mxu0 }
 0x718   :  { %v2295_v52 = vadd.f32 %v2294_v46, %v2266_v57  ;;  %v2274_v56 = vpop.f32.mrf.mxu1  ;;  %v2388_v46 = vld [vmem:[#allocation26 + $0x30] sm:$0xff] }
 0x719   :  { %v2275_v27 = vadd.f32 %v2274_v56, %v2246_v58  ;;  %2413 = vmatpush.msrb.mxu1 %v2388_v46  ;;  %v2384_v57 = vld [vmem:[#allocation26 + $0x10] sm:$0xff] }
 0x71a   :  { %v2310_v54 = vmul.f32 0.01, %v2295_v52  ;;  %vm2306_vm11 = vcmp.ge.f32.partialorder %v2295_v52, 0.0  ;;  %v2516_v46 = vld [vmem:[#allocation28 + $0x70] sm:$0xff] }
 0x71b   :  { %2414 = vmatpush.msrb.mxu1 %v2387_v21 }
 0x71c   :  { %v2314_v49 = vsel %vm2306_vm11, %v2295_v52, %v2310_v54 }
 0x71d   :  { %2415 = vmatpush.msrb.mxu1 %v2386_v5  ;;  %v2515_v5 = vld [vmem:[#allocation28 + $0x68] sm:$0xff] }
 0x71f   :  { %v2297_v38 = vpop.f32.mrf.mxu0  ;;  %2416 = vmatpush.msrb.mxu1 %v2385_v1 }
 0x720   :  { %v2298_v28 = vadd.f32 %v2297_v38, %v2269_v40 }
 0x721   :  { %2417 = vmatpush.msrb.mxu1 %v2384_v57  ;;  %v2514_v57 = vld [vmem:[#allocation28 + $0x60] sm:$0xff] }
 0x722   :  { %v2311_v55 = vmul.f32 0.01, %v2298_v28  ;;  %vm2307_vm0 = vcmp.ge.f32.partialorder %v2298_v28, 0.0 }
 0x724   :  { %v2315_v48 = vsel %vm2307_vm0, %v2298_v28, %v2311_v55  ;;  %v2383_v28 = vld [vmem:[#allocation26 + $0x8] sm:$0xff] }
 0x725   :  { %v2318_v0 = vadd.f32 %v2315_v48, %v2314_v49  ;;  %2418 = vmatpush.msrb.mxu1 %v2383_v28 }
 0x727   :  { %v2300_v10 = vpop.f32.mrf.mxu0  ;;  %2419 = vmatpush.msrb.mxu1 %v2382_v42 }
 0x728   :  { %v2301_v53 = vadd.f32 %v2300_v10, %v2272_v45 }
 0x72a   :  { %v2312_v60 = vmul.f32 0.01, %v2301_v53  ;;  %vm2308_vm12 = vcmp.ge.f32.partialorder %v2301_v53, 0.0 }
 0x72c   :  { %v2316_v63 = vsel %vm2308_vm12, %v2301_v53, %v2312_v60 }
 0x72d   :  { %v2319_v6 = vadd.f32 %v2318_v0, %v2316_v63 }
 0x72f   :  { %v2303_v61 = vpop.f32.mrf.mxu0 }
 0x730   :  { %v2304_v2 = vadd.f32 %v2303_v61, %v2275_v27  ;;  %v3636_v27 = vld [vmem:[%s5668_s16] ss:$0 sm:$0xff] }
 0x732   :  { %vm2309_vm13 = vcmp.ge.f32.partialorder %v2304_v2, 0.0  ;;  %v2313_v47 = vmul.f32 0.01, %v2304_v2 }
 0x734   :  { %v2317_v51 = vsel %vm2309_vm13, %v2304_v2, %v2313_v47 }
 0x735   :  { %v2320_v9 = vadd.f32 %v2319_v6, %v2317_v51 }
 0x737   :  { %v2321_v11 = vrot.slane %v2320_v9, 4 }
 0x739   :  { %v2322_v12 = vadd.f32 %v2321_v11, %v2320_v9 }
 0x73b   :  { %v2323_v59 = vrot.slane %v2322_v12, 2 }
 0x73d   :  { %v2324_v14 = vadd.f32 %v2323_v59, %v2322_v12 }
 0x73f   :  { %v2325_v19 = vrot.slane %v2324_v14, 1 }
 0x741   :  { %v2326_v23 = vadd.f32 %v2325_v19, %v2324_v14 }
 0x743   :  { %v2334_v32 = vmul.f32 %v5343_v50, %v2326_v23 }
 0x745   :  { %v2335_v44 = vsub.f32 %v2314_v49, %v2334_v32  ;;  %v2336_v8 = vsub.f32 %v2315_v48, %v2334_v32  ;;  %v2337_v29 = vsub.f32 %v2316_v63, %v2334_v32  ;;  %v2338_v30 = vsub.f32 %v2317_v51, %v2334_v32  ;;  %v3637_v49 = vld [vmem:[%s5669_s3] ss:$0 sm:$0xff] }
 0x747   :  { %v2339_v20 = vmul.f32 %v2335_v44, %v2335_v44  ;;  %v2340_v17 = vmul.f32 %v2336_v8, %v2336_v8  ;;  %v2341_v41 = vmul.f32 %v2337_v29, %v2337_v29  ;;  %v2342_v34 = vmul.f32 %v2338_v30, %v2338_v30 }
 0x749   :  { %v2343_v15 = vadd.f32 %v2340_v17, %v2339_v20 }
 0x74b   :  { %v2344_v35 = vadd.f32 %v2343_v15, %v2341_v41 }
 0x74d   :  { %v2345_v22 = vadd.f32 %v2344_v35, %v2342_v34  ;;  %v2517_v35 = vld [vmem:[#allocation28 + $0x78] sm:$0xff] }
 0x74e   :  { %2568 = vmatpush.msrb.mxu2 %v2517_v35  ;;  %v2502_v35 = vld [vmem:[#allocation28] sm:$0xff] }
 0x74f   :  { %v2346_v38 = vrot.slane %v2345_v22, 4 }
 0x750   :  { %2569 = vmatpush.msrb.mxu2 %v2516_v46  ;;  %v2535_v46 = vld [vmem:[#allocation28 + $0x108] sm:$0xff] }
 0x751   :  { %v2347_v43 = vadd.f32 %v2346_v38, %v2345_v22  ;;  %v2548_v38 = vld [vmem:[#allocation28 + $0x170] sm:$0xff] }
 0x752   :  { %2615 = vmatpush.msra.mxu0 %v2548_v38  ;;  %2570 = vmatpush.msrb.mxu2 %v2515_v5 }
 0x753   :  { %v2348_v31 = vrot.slane %v2347_v43, 2 }
 0x754   :  { %2571 = vmatpush.msrb.mxu2 %v2514_v57 }
 0x755   :  { %v2349_v40 = vadd.f32 %v2348_v31, %v2347_v43  ;;  %v2533_v43 = vld [vmem:[#allocation28 + $0xf8] sm:$0xff]  ;;  %v2547_v31 = vld [vmem:[#allocation28 + $0x168] sm:$0xff] }
 0x756   :  { %2591 = vmatpush.msrb.mxu3 %v2533_v43  ;;  %2616 = vmatpush.msra.mxu0 %v2547_v31  ;;  %v2518_v43 = vld [vmem:[#allocation28 + $0x80] sm:$0xff] }
 0x757   :  { %v2350_v45 = vrot.slane %v2349_v40, 1 }
 0x759   :  { %v2351_v10 = vadd.f32 %v2350_v45, %v2349_v40  ;;  %v2532_v40 = vld [vmem:[#allocation28 + $0xf0] sm:$0xff]  ;;  %v2546_v45 = vld [vmem:[#allocation28 + $0x160] sm:$0xff] }
 0x75a   :  { %2592 = vmatpush.msrb.mxu3 %v2532_v40  ;;  %2617 = vmatpush.msra.mxu0 %v2546_v45  ;;  %v3639_v45 = vld [vmem:[%s5671_s29] ss:$0 sm:$0xff] }
 0x75b   :  { %v2352_v52 = vmul.f32 %v2351_v10, %v5343_v50 }
 0x75d   :  { %v2353_v53 = vadd.f32 1e-05, %v2352_v52  ;;  %v2531_v52 = vld [vmem:[#allocation28 + $0xe8] sm:$0xff] }
 0x75e   :  { %2593 = vmatpush.msrb.mxu3 %v2531_v52 }
 0x75f   :  { %3662 = vrsqrt.f32 %v2353_v53  ;;  %vm2360_vm2 = vweird.f32 %v2353_v53 }
 0x765   :  { %v3663_v55 = vpop.eup %3662 }
 0x766   :  { %v2355_v56 = vmul.f32 %v3663_v55, %v2353_v53  ;;  %vm2361_vm15 = vweird.f32 %v3663_v55  ;;  %v2530_v53 = vld [vmem:[#allocation28 + $0xe0] sm:$0xff] }
 0x767   :  { %vm2362_vm8 = vmor %vm2360_vm2, %vm2361_vm15  ;;  %2594 = vmatpush.msrb.mxu3 %v2530_v53 }
 0x768   :  { %v2356_v58 = vmul.f32 %v3663_v55, %v2355_v56 }
 0x76a   :  { %v2357_v54 = vmul.f32 0.5, %v2356_v58 }
 0x76c   :  { %v2358_v60 = vsub.f32 1.5, %v2357_v54 }
 0x76e   :  { %v2359_v3 = vmul.f32 %v3663_v55, %v2358_v60  ;;  %v2529_v60 = vld [vmem:[#allocation28 + $0xd8] sm:$0xff] }
 0x76f   :  { %2595 = vmatpush.msrb.mxu3 %v2529_v60 }
 0x770   :  { %v2363_v48 = vsel %vm2362_vm8, %v3663_v55, %v2359_v3  ;;  %v2513_v55 = vld [vmem:[#allocation28 + $0x58] sm:$0xff]  ;;  %v2512_v3 = vld [vmem:[#allocation28 + $0x50] sm:$0xff] }
 0x771   :  { %v2364_v61 = vmul.f32 %v2363_v48, %v2335_v44  ;;  %v2365_v4 = vmul.f32 %v2363_v48, %v2336_v8  ;;  %v2366_v6 = vmul.f32 %v2363_v48, %v2337_v29  ;;  %v2367_v9 = vmul.f32 %v2363_v48, %v2338_v30  ;;  %2572 = vmatpush.msrb.mxu2 %v2513_v55  ;;  %v3640_v55 = vld [vmem:[%s5672_s26] ss:$0 sm:$0xff] }
 0x773   :  { %v2371_v63 = vmul.f32 %v3636_v27, %v2364_v61  ;;  %v2372_v0 = vmul.f32 %v3636_v27, %v2365_v4  ;;  %v2373_v51 = vmul.f32 %v3636_v27, %v2366_v6  ;;  %v2374_v11 = vmul.f32 %v3636_v27, %v2367_v9  ;;  %v2511_v27 = vld [vmem:[#allocation28 + $0x48] sm:$0xff]  ;;  %2573 = vmatpush.msrb.mxu2 %v2512_v3  ;;  %v2544_v4 = vld [vmem:[#allocation28 + $0x150] sm:$0xff] }
 0x774   :  { %v2527_v6 = vld [vmem:[#allocation28 + $0xc8] sm:$0xff] }
 0x775   :  { %v2378_v2 = vadd.f32 %v3637_v49, %v2371_v63  ;;  %v2379_v47 = vadd.f32 %v3637_v49, %v2372_v0  ;;  %v2380_v7 = vadd.f32 %v3637_v49, %v2373_v51  ;;  %v2381_v25 = vadd.f32 %v3637_v49, %v2374_v11  ;;  %v2528_v49 = vld [vmem:[#allocation28 + $0xd0] sm:$0xff]  ;;  %v2545_v63 = vld [vmem:[#allocation28 + $0x158] sm:$0xff]  ;;  %2574 = vmatpush.msrb.mxu2 %v2511_v27  ;;  %v2543_v51 = vld [vmem:[#allocation28 + $0x148] sm:$0xff] }
 0x776   :  { %2618 = vmatpush.msra.mxu0 %v2545_v63  ;;  %2596 = vmatpush.msrb.mxu3 %v2528_v49  ;;  %v2526_v11 = vld [vmem:[#allocation28 + $0xc0] sm:$0xff] }
 0x777   :  { %2420 = vmatmul.f32.vlgmr.msrb.gmra.mxu1 %v2378_v2  ;;  %v2510_v2 = vld [vmem:[#allocation28 + $0x40] sm:$0xff] }
 0x778   :  { %2619 = vmatpush.msra.mxu0 %v2544_v4  ;;  %2575 = vmatpush.msrb.mxu2 %v2510_v2 }
 0x779   :  { %2597 = vmatpush.msrb.mxu3 %v2527_v6  ;;  %v3641_v6 = vld [vmem:[%s5673_s23] ss:$0 sm:$0xff] }
 0x77a   :  { %2620 = vmatpush.msra.mxu0 %v2543_v51 }
 0x77b   :  { %2598 = vmatpush.msrb.mxu3 %v2526_v11 }
 0x77f   :  { %2423 = vmatmul.f32.gmra.mxu1 %v2379_v47 }
 0x787   :  { %2426 = vmatmul.f32.gmra.mxu1 %v2380_v7  ;;  %v2509_v7 = vld [vmem:[#allocation28 + $0x38] sm:$0xff] }
 0x788   :  { %2576 = vmatpush.msrb.mxu2 %v2509_v7 }
 0x78f   :  { %2429 = vmatmul.f32.gmra.mxu1 %v2381_v25  ;;  %v2542_v25 = vld [vmem:[#allocation28 + $0x140] sm:$0xff] }
 0x790   :  { %2621 = vmatpush.msra.mxu0 %v2542_v25  ;;  %v4312_v25 = vmov 16.0  }
 0x7f4   :  { %v2421_v12 = vpop.f32.mrf.mxu1 }
 0x7f5   :  { %v2422_v19 = vadd.f32 %v3638_v13, %v2421_v12  ;;  %v2508_v12 = vld [vmem:[#allocation28 + $0x30] sm:$0xff] }
 0x7f6   :  { %2577 = vmatpush.msrb.mxu2 %v2508_v12 }
 0x7f7   :  { %v2437_v26 = vmul.f32 0.01, %v2422_v19  ;;  %vm2433_vm10 = vcmp.ge.f32.partialorder %v2422_v19, 0.0 }
 0x7f9   :  { %v2441_v8 = vsel %vm2433_vm10, %v2422_v19, %v2437_v26  ;;  %v2506_v26 = vld [vmem:[#allocation28 + $0x20] sm:$0xff] }
 0x7fc   :  { %v2424_v59 = vpop.f32.mrf.mxu1 }
 0x7fd   :  { %v2425_v14 = vadd.f32 %v3638_v13, %v2424_v59 }
 0x7ff   :  { %v2438_v23 = vmul.f32 0.01, %v2425_v14  ;;  %vm2434_vm9 = vcmp.ge.f32.partialorder %v2425_v14, 0.0 }
 0x801   :  { %v2442_v39 = vsel %vm2434_vm9, %v2425_v14, %v2438_v23  ;;  %v2541_v14 = vld [vmem:[#allocation28 + $0x138] sm:$0xff]  ;;  %v2540_v23 = vld [vmem:[#allocation28 + $0x130] sm:$0xff] }
 0x802   :  { %v2445_v24 = vadd.f32 %v2442_v39, %v2441_v8  ;;  %2622 = vmatpush.msra.mxu0 %v2541_v14 }
 0x804   :  { %v2427_v37 = vpop.f32.mrf.mxu1  ;;  %2623 = vmatpush.msra.mxu0 %v2540_v23 }
 0x805   :  { %v2428_v16 = vadd.f32 %v3638_v13, %v2427_v37  ;;  %v2507_v37 = vld [vmem:[#allocation28 + $0x28] sm:$0xff] }
 0x806   :  { %2578 = vmatpush.msrb.mxu2 %v2507_v37 }
 0x807   :  { %v2439_v32 = vmul.f32 0.01, %v2428_v16  ;;  %vm2435_vm1 = vcmp.ge.f32.partialorder %v2428_v16, 0.0 }
 0x808   :  { %2579 = vmatpush.msrb.mxu2 %v2506_v26 }
 0x809   :  { %v2443_v29 = vsel %vm2435_vm1, %v2428_v16, %v2439_v32  ;;  %v2524_v16 = vld [vmem:[#allocation28 + $0xb0] sm:$0xff] }
 0x80a   :  { %v2446_v20 = vadd.f32 %v2445_v24, %v2443_v29  ;;  %v2538_v24 = vld [vmem:[#allocation28 + $0x120] sm:$0xff] }
 0x80c   :  { %v2430_v44 = vpop.f32.mrf.mxu1 }
 0x80d   :  { %v2431_v62 = vadd.f32 %v3638_v13, %v2430_v44  ;;  %v2525_v13 = vld [vmem:[#allocation28 + $0xb8] sm:$0xff]  ;;  %v2539_v44 = vld [vmem:[#allocation28 + $0x128] sm:$0xff] }
 0x80e   :  { %2599 = vmatpush.msrb.mxu3 %v2525_v13  ;;  %2624 = vmatpush.msra.mxu0 %v2539_v44 }
 0x80f   :  { %vm2436_vm3 = vcmp.ge.f32.partialorder %v2431_v62, 0.0  ;;  %v2440_v30 = vmul.f32 0.01, %v2431_v62 }
 0x810   :  { %2600 = vmatpush.msrb.mxu3 %v2524_v16  ;;  %2625 = vmatpush.msra.mxu0 %v2538_v24 }
 0x811   :  { %v2444_v17 = vsel %vm2436_vm3, %v2431_v62, %v2440_v30  ;;  %v2522_v62 = vld [vmem:[#allocation28 + $0xa0] sm:$0xff]  ;;  %v2504_v30 = vld [vmem:[#allocation28 + $0x10] sm:$0xff] }
 0x812   :  { %v2447_v18 = vadd.f32 %v2446_v20, %v2444_v17 }
 0x814   :  { %v2448_v41 = vrot.slane %v2447_v18, 4 }
 0x816   :  { %v2449_v15 = vadd.f32 %v2448_v41, %v2447_v18  ;;  %v2537_v18 = vld [vmem:[#allocation28 + $0x118] sm:$0xff]  ;;  %v2503_v41 = vld [vmem:[#allocation28 + $0x8] sm:$0xff] }
 0x817   :  { %2626 = vmatpush.msra.mxu0 %v2537_v18 }
 0x818   :  { %v2450_v33 = vrot.slane %v2449_v15, 2 }
 0x81a   :  { %v2451_v34 = vadd.f32 %v2450_v33, %v2449_v15  ;;  %v2520_v33 = vld [vmem:[#allocation28 + $0x90] sm:$0xff] }
 0x81c   :  { %v2452_v22 = vrot.slane %v2451_v34, 1 }
 0x81e   :  { %v2453_v21 = vadd.f32 %v2452_v22, %v2451_v34  ;;  %v2536_v34 = vld [vmem:[#allocation28 + $0x110] sm:$0xff]  ;;  %v2519_v22 = vld [vmem:[#allocation28 + $0x88] sm:$0xff] }
 0x81f   :  { %2627 = vmatpush.msra.mxu0 %v2536_v34  ;;  %v2705_v34 = vld [vmem:[#allocation29 + $0x60] sm:$0xff] }
 0x820   :  { %v2454_v1 = vmul.f32 %v2453_v21, %v5343_v50  ;;  %v2534_v21 = vld [vmem:[#allocation28 + $0x100] sm:$0xff] }
 0x821   :  { %2628 = vmatpush.msra.mxu0 %v2535_v46 }
 0x822   :  { %v5351_v28 = vsub.f32 %v2441_v8, %v2454_v1  ;;  %v5353_v10 = vsub.f32 %v2442_v39, %v2454_v1  ;;  %v5355_v42 = vsub.f32 %v2443_v29, %v2454_v1  ;;  %v5357_v56 = vsub.f32 %v2444_v17, %v2454_v1  ;;  %v2523_v39 = vld [vmem:[#allocation28 + $0xa8] sm:$0xff]  ;;  %v2505_v8 = vld [vmem:[#allocation28 + $0x18] sm:$0xff] }
 0x823   :  { %2601 = vmatpush.msrb.mxu3 %v2523_v39  ;;  %2580 = vmatpush.msrb.mxu2 %v2505_v8  ;;  %v2521_v17 = vld [vmem:[#allocation28 + $0x98] sm:$0xff] }
 0x824   :  { %v2459_v58 = vmul.f32 %v5351_v28, %v5351_v28  ;;  %v2460_v54 = vmul.f32 %v5353_v10, %v5353_v10  ;;  %v2461_v48 = vmul.f32 %v5355_v42, %v5355_v42  ;;  %v2462_v0 = vmul.f32 %v5357_v56, %v5357_v56  ;;  %2629 = vmatpush.msra.mxu0 %v2534_v21 }
 0x825   :  { %2602 = vmatpush.msrb.mxu3 %v2522_v62  ;;  %2581 = vmatpush.msrb.mxu2 %v2504_v30 }
 0x826   :  { %v2463_v61 = vadd.f32 %v2460_v54, %v2459_v58 }
 0x827   :  { %2603 = vmatpush.msrb.mxu3 %v2521_v17  ;;  %2582 = vmatpush.msrb.mxu2 %v2503_v41  ;;  %v2707_v17 = vld [vmem:[#allocation29 + $0x70] sm:$0xff] }
 0x828   :  { %v2464_v47 = vadd.f32 %v2463_v61, %v2461_v48 }
 0x829   :  { %2604 = vmatpush.msrb.mxu3 %v2520_v33  ;;  %2583 = vmatpush.msrb.mxu2 %v2502_v35 }
 0x82a   :  { %v2465_v9 = vadd.f32 %v2464_v47, %v2462_v0 }
 0x82b   :  { %2605 = vmatpush.msrb.mxu3 %v2519_v22  ;;  %v2704_v22 = vld [vmem:[#allocation29 + $0x58] sm:$0xff] }
 0x82c   :  { %v2466_v59 = vrot.slane %v2465_v9, 4 }
 0x82d   :  { %2606 = vmatpush.msrb.mxu3 %v2518_v43 }
 0x82e   :  { %v2467_v19 = vadd.f32 %v2466_v59, %v2465_v9 }
 0x830   :  { %v2468_v32 = vrot.slane %v2467_v19, 2 }
 0x832   :  { %v2469_v29 = vadd.f32 %v2468_v32, %v2467_v19 }
 0x834   :  { %v2470_v20 = vrot.slane %v2469_v29, 1 }
 0x836   :  { %v2471_v15 = vadd.f32 %v2470_v20, %v2469_v29  ;;  %v2708_v20 = vld [vmem:[#allocation29 + $0x78] sm:$0xff] }
 0x837   :  { %2715 = vmatpush.msra.mxu1 %v2708_v20 }
 0x838   :  { %v2472_v36 = vmul.f32 %v2471_v15, %v5343_v50  ;;  %v2706_v15 = vld [vmem:[#allocation29 + $0x68] sm:$0xff] }
 0x839   :  { %2716 = vmatpush.msra.mxu1 %v2707_v17  ;;  %v2832_v17 = vld [vmem:[#allocation31 + $0x168] sm:$0xff] }
 0x83a   :  { %v2473_v38 = vadd.f32 1e-05, %v2472_v36  ;;  %2845 = vmatpush.msra.mxu2 %v2832_v17 }
 0x83b   :  { %2717 = vmatpush.msra.mxu1 %v2706_v15 }
 0x83c   :  { %3664 = vrsqrt.f32 %v2473_v38  ;;  %vm2480_vm6 = vweird.f32 %v2473_v38 }
 0x83d   :  { %3666 = vrcp.f32 %v4312_v25  ;;  %2718 = vmatpush.msra.mxu1 %v2705_v34  ;;  %v2830_v34 = vld [vmem:[#allocation31 + $0x158] sm:$0xff] }
 0x83f   :  { %2719 = vmatpush.msra.mxu1 %v2704_v22  ;;  %v2827_v22 = vld [vmem:[#allocation31 + $0x140] sm:$0xff] }
 0x842   :  { %v3665_v5 = vpop.eup %3664 }
 0x843   :  { %v2475_v31 = vmul.f32 %v3665_v5, %v2473_v38  ;;  %vm2481_vm4 = vweird.f32 %v3665_v5  ;;  %v3667_v37 = vpop.eup %3666  ;;  %v2703_v38 = vld [vmem:[#allocation29 + $0x50] sm:$0xff] }
 0x844   :  { %vm2482_vm7 = vmor %vm2480_vm6, %vm2481_vm4  ;;  %v2651_v39 = vmul.f32 16.0, %v3667_v37  ;;  %vm2655_vm11 = vweird.f32 %v3667_v37  ;;  %2720 = vmatpush.msra.mxu1 %v2703_v38  ;;  %v2828_v38 = vld [vmem:[#allocation31 + $0x148] sm:$0xff] }
 0x845   :  { %v2476_v1 = vmul.f32 %v3665_v5, %v2475_v31 }
 0x846   :  { %v2652_v62 = vsub.f32 1.0, %v2651_v39 }
 0x847   :  { %v2477_v50 = vmul.f32 0.5, %v2476_v1  ;;  %v2701_v1 = vld [vmem:[#allocation29 + $0x40] sm:$0xff] }
 0x848   :  { %v2653_v18 = vmul.f32 %v3667_v37, %v2652_v62 }
 0x849   :  { %v2478_v40 = vsub.f32 1.5, %v2477_v50 }
 0x84a   :  { %v2654_v35 = vadd.f32 %v3667_v37, %v2653_v18  ;;  %v2833_v18 = vld [vmem:[#allocation31 + $0x170] sm:$0xff] }
 0x84b   :  { %v2479_v57 = vmul.f32 %v3665_v5, %v2478_v40  ;;  %2868 = vmatpush.msra.mxu3 %v2833_v18  ;;  %v2789_v18 = vld [vmem:[#allocation31 + $0x10] sm:$0xff] }
 0x84c   :  { %v5377_v21 = vsel %vm2655_vm11, %v3667_v37, %v2654_v35  ;;  %v2831_v35 = vld [vmem:[#allocation31 + $0x160] sm:$0xff] }
 0x84d   :  { %v2483_v52 = vsel %vm2482_vm7, %v3665_v5, %v2479_v57  ;;  %v2702_v5 = vld [vmem:[#allocation29 + $0x48] sm:$0xff]  ;;  %v2700_v57 = vld [vmem:[#allocation29 + $0x38] sm:$0xff]  ;;  %2869 = vmatpush.msra.mxu3 %v2830_v34 }
 0x84e   :  { %v2484_v53 = vmul.f32 %v2483_v52, %v5351_v28  ;;  %v2485_v58 = vmul.f32 %v2483_v52, %v5353_v10  ;;  %v2486_v54 = vmul.f32 %v2483_v52, %v5355_v42  ;;  %v2487_v60 = vmul.f32 %v2483_v52, %v5357_v56  ;;  %2721 = vmatpush.msra.mxu1 %v2702_v5  ;;  %v2824_v5 = vld [vmem:[#allocation31 + $0x128] sm:$0xff] }
 0x84f   :  { %2870 = vmatpush.msra.mxu3 %v2827_v22 }
 0x850   :  { %v2491_v3 = vmul.f32 %v3639_v45, %v2484_v53  ;;  %v2492_v27 = vmul.f32 %v3639_v45, %v2485_v58  ;;  %v2493_v49 = vmul.f32 %v3639_v45, %v2486_v54  ;;  %v2494_v63 = vmul.f32 %v3639_v45, %v2487_v60  ;;  %2722 = vmatpush.msra.mxu1 %v2701_v1  ;;  %v2699_v53 = vld [vmem:[#allocation29 + $0x30] sm:$0xff]  ;;  %v2698_v58 = vld [vmem:[#allocation29 + $0x28] sm:$0xff]  ;;  %v2697_v60 = vld [vmem:[#allocation29 + $0x20] sm:$0xff] }
 0x851   :  { %v2825_v1 = vld [vmem:[#allocation31 + $0x130] sm:$0xff]  ;;  %2871 = vmatpush.msra.mxu3 %v2824_v5  ;;  %v3646_v5 = vld [vmem:[%s5678_s8] ss:$0 sm:$0xff] }
 0x852   :  { %v2498_v48 = vadd.f32 %v3640_v55, %v2491_v3  ;;  %v2499_v61 = vadd.f32 %v3640_v55, %v2492_v27  ;;  %v2500_v0 = vadd.f32 %v3640_v55, %v2493_v49  ;;  %v2501_v47 = vadd.f32 %v3640_v55, %v2494_v63  ;;  %2723 = vmatpush.msra.mxu1 %v2700_v57  ;;  %v2696_v27 = vld [vmem:[#allocation29 + $0x18] sm:$0xff]  ;;  %v2694_v63 = vld [vmem:[#allocation29 + $0x8] sm:$0xff] }
 0x854   :  { %2584 = vmatmul.f32.vlgmr.msrb.gmra.mxu2 %v2498_v48  ;;  %2630 = vmatmul.f32.vlgmr.msra.gmra.mxu0 %v2499_v61  ;;  %v2557_v2 = vrot.slane %v2498_v48, 4  ;;  %v2558_v4 = vrot.slane %v2499_v61, 4  ;;  %v2560_v10 = vrot.slane %v2500_v0, 4  ;;  %v2561_v42 = vrot.slane %v2501_v47, 4  ;;  %v2695_v61 = vld [vmem:[#allocation29 + $0x10] sm:$0xff] }
 0x855   :  { %2724 = vmatpush.msra.mxu1 %v2699_v53  ;;  %v2818_v53 = vld [vmem:[#allocation31 + $0xf8] sm:$0xff] }
 0x856   :  { %v2559_v28 = vsel %vm615_vm5, %v2557_v2, %v2558_v4  ;;  %v2562_v56 = vsel %vm615_vm5, %v2560_v10, %v2561_v42  ;;  %v2693_v4 = vld [vmem:[#allocation29] sm:$0xff] }
 0x857   :  { %2607 = vmatmul.f32.vlgmr.msrb.gmra.mxu3 %v2559_v28  ;;  %2725 = vmatpush.msra.mxu1 %v2698_v58  ;;  %v2819_v58 = vld [vmem:[#allocation31 + $0x100] sm:$0xff] }
 0x859   :  { %2726 = vmatpush.msra.mxu1 %v2697_v60  ;;  %v2815_v60 = vld [vmem:[#allocation31 + $0xe0] sm:$0xff] }
 0x85b   :  { %2727 = vmatpush.msra.mxu1 %v2696_v27 }
 0x85c   :  { %2587 = vmatmul.f32.gmra.mxu2 %v2500_v0  ;;  %2633 = vmatmul.f32.gmra.mxu0 %v2501_v47 }
 0x85d   :  { %2728 = vmatpush.msra.mxu1 %v2695_v61  ;;  %v2811_v61 = vld [vmem:[#allocation31 + $0xc0] sm:$0xff] }
 0x85f   :  { %2610 = vmatmul.f32.gmra.mxu3 %v2562_v56  ;;  %2729 = vmatpush.msra.mxu1 %v2694_v63 }
 0x861   :  { %2730 = vmatpush.msra.mxu1 %v2693_v4  ;;  %v2813_v4 = vld [vmem:[#allocation31 + $0xd0] sm:$0xff] }
 0x8d1   :  { %v2631_v9 = vpop.f32.mrf.mxu0 }
 0x8d7   :  { %v2585_v51 = vpop.f32.mrf.mxu2 }
 0x8d8   :  { %v2586_v7 = vadd.f32 %v3641_v6, %v2585_v51 }
 0x8d9   :  { %v2634_v23 = vpop.f32.mrf.mxu0 }
 0x8da   :  { %v2608_v11 = vpop.f32.mrf.mxu3 }
 0x8db   :  { %v2609_v12 = vadd.f32 %v2608_v11, %v2586_v7 }
 0x8dd   :  { %v2632_v14 = vadd.f32 %v2631_v9, %v2609_v12  ;;  %v3642_v9 = vld [vmem:[%s5674_s13] ss:$0 sm:$0xff] }
 0x8de   :  { %v3643_v12 = vld [vmem:[%s5675_s30] ss:$0 sm:$0xff] }
 0x8df   :  { %v2588_v59 = vpop.f32.mrf.mxu2  ;;  %v2639_v26 = vmul.f32 0.01, %v2632_v14  ;;  %vm2637_vm5 = vcmp.ge.f32.partialorder %v2632_v14, 0.0 }
 0x8e0   :  { %v2589_v13 = vadd.f32 %v3641_v6, %v2588_v59 }
 0x8e1   :  { %v2641_v8 = vsel %vm2637_vm5, %v2632_v14, %v2639_v26 }
 0x8e2   :  { %v2611_v19 = vpop.f32.mrf.mxu3 }
 0x8e3   :  { %v2612_v16 = vadd.f32 %v2611_v19, %v2589_v13 }
 0x8e5   :  { %v2635_v32 = vadd.f32 %v2634_v23, %v2612_v16  ;;  %v3644_v23 = vld [vmem:[%s5676_s14] ss:$0 sm:$0xff] }
 0x8e7   :  { %vm2638_vm0 = vcmp.ge.f32.partialorder %v2635_v32, 0.0  ;;  %v2640_v44 = vmul.f32 0.01, %v2635_v32 }
 0x8e9   :  { %v2642_v29 = vsel %vm2638_vm0, %v2635_v32, %v2640_v44 }
 0x8ea   :  { %v2643_v24 = vadd.f32 %v2642_v29, %v2641_v8 }
 0x8ec   :  { %v2644_v30 = vrot.slane %v2643_v24, 4 }
 0x8ee   :  { %v2645_v41 = vadd.f32 %v2644_v30, %v2643_v24 }
 0x8f0   :  { %v2646_v33 = vrot.slane %v2645_v41, 2 }
 0x8f2   :  { %v2647_v36 = vadd.f32 %v2646_v33, %v2645_v41  ;;  %v2834_v41 = vld [vmem:[#allocation31 + $0x178] sm:$0xff]  ;;  %v2829_v33 = vld [vmem:[#allocation31 + $0x150] sm:$0xff] }
 0x8f3   :  { %2891 = vmatpush.msrb.mxu0 %v2834_v41  ;;  %2846 = vmatpush.msra.mxu2 %v2829_v33 }
 0x8f4   :  { %v2648_v46 = vrot.slane %v2647_v36, 1 }
 0x8f5   :  { %2892 = vmatpush.msrb.mxu0 %v2831_v35 }
 0x8f6   :  { %v2649_v43 = vadd.f32 %v2648_v46, %v2647_v36  ;;  %v2826_v36 = vld [vmem:[#allocation31 + $0x138] sm:$0xff] }
 0x8f7   :  { %2847 = vmatpush.msra.mxu2 %v2826_v36  ;;  %2893 = vmatpush.msrb.mxu0 %v2828_v38 }
 0x8f8   :  { %v2657_v31 = vmul.f32 %v5377_v21, %v2649_v43  ;;  %v2823_v43 = vld [vmem:[#allocation31 + $0x120] sm:$0xff] }
 0x8f9   :  { %2848 = vmatpush.msra.mxu2 %v2823_v43  ;;  %2894 = vmatpush.msrb.mxu0 %v2825_v1 }
 0x8fa   :  { %v2658_v50 = vsub.f32 %v2641_v8, %v2657_v31  ;;  %v2659_v40 = vsub.f32 %v2642_v29, %v2657_v31 }
 0x8fc   :  { %v2660_v45 = vmul.f32 %v2658_v50, %v2658_v50  ;;  %v2661_v52 = vmul.f32 %v2659_v40, %v2659_v40 }
 0x8fe   :  { %v2662_v55 = vadd.f32 %v2661_v52, %v2660_v45  ;;  %v2822_v45 = vld [vmem:[#allocation31 + $0x118] sm:$0xff]  ;;  %v2817_v52 = vld [vmem:[#allocation31 + $0xf0] sm:$0xff] }
 0x8ff   :  { %2895 = vmatpush.msrb.mxu0 %v2822_v45  ;;  %v2835_v45 = vld [vmem:[%s5679_s1] sm:$0x7] }
 0x900   :  { %v2663_v54 = vrot.slane %v2662_v55, 4 }
 0x901   :  { %2896 = vmatpush.msrb.mxu0 %v2819_v58 }
 0x902   :  { %v2664_v3 = vadd.f32 %v2663_v54, %v2662_v55  ;;  %v2814_v54 = vld [vmem:[#allocation31 + $0xd8] sm:$0xff] }
 0x904   :  { %v2665_v48 = vrot.slane %v2664_v3, 2 }
 0x906   :  { %v2666_v49 = vadd.f32 %v2665_v48, %v2664_v3  ;;  %v2816_v48 = vld [vmem:[#allocation31 + $0xe8] sm:$0xff] }
 0x907   :  { %2897 = vmatpush.msrb.mxu0 %v2816_v48 }
 0x908   :  { %v2667_v2 = vrot.slane %v2666_v49, 1 }
 0x909   :  { %2898 = vmatpush.msrb.mxu0 %v2813_v4 }
 0x90a   :  { %v2668_v28 = vadd.f32 %v2667_v2, %v2666_v49  ;;  %v2812_v49 = vld [vmem:[#allocation31 + $0xc8] sm:$0xff] }
 0x90c   :  { %v2669_v0 = vmul.f32 %v2668_v28, %v5377_v21  ;;  %v2808_v28 = vld [vmem:[#allocation31 + $0xa8] sm:$0xff] }
 0x90e   :  { %v2670_v47 = vadd.f32 1e-05, %v2669_v0  ;;  %v2809_v0 = vld [vmem:[#allocation31 + $0xb0] sm:$0xff] }
 0x910   :  { %3668 = vrsqrt.f32 %v2670_v47  ;;  %vm2677_vm13 = vweird.f32 %v2670_v47 }
 0x916   :  { %v3669_v10 = vpop.eup %3668 }
 0x917   :  { %v2672_v42 = vmul.f32 %v3669_v10, %v2670_v47  ;;  %vm2678_vm12 = vweird.f32 %v3669_v10 }
 0x918   :  { %vm2679_vm14 = vmor %vm2677_vm13, %vm2678_vm12 }
 0x919   :  { %v2673_v56 = vmul.f32 %v3669_v10, %v2672_v42  ;;  %v2805_v42 = vld [vmem:[#allocation31 + $0x90] sm:$0xff] }
 0x91b   :  { %v2674_v6 = vmul.f32 0.5, %v2673_v56  ;;  %v2806_v56 = vld [vmem:[#allocation31 + $0x98] sm:$0xff] }
 0x91d   :  { %v2675_v51 = vsub.f32 1.5, %v2674_v6 }
 0x91f   :  { %v2676_v7 = vmul.f32 %v3669_v10, %v2675_v51  ;;  %v2807_v51 = vld [vmem:[#allocation31 + $0xa0] sm:$0xff] }
 0x921   :  { %v2680_v11 = vsel %vm2679_vm14, %v3669_v10, %v2676_v7  ;;  %v2810_v10 = vld [vmem:[#allocation31 + $0xb8] sm:$0xff] }
 0x922   :  { %v2681_v25 = vmul.f32 %v2680_v11, %v2658_v50  ;;  %v2682_v14 = vmul.f32 %v2680_v11, %v2659_v40  ;;  %v2820_v50 = vld [vmem:[#allocation31 + $0x108] sm:$0xff]  ;;  %v2821_v40 = vld [vmem:[#allocation31 + $0x110] sm:$0xff]  ;;  %2899 = vmatpush.msrb.mxu0 %v2810_v10  ;;  %v2802_v7 = vld [vmem:[#allocation31 + $0x78] sm:$0xff] }
 0x923   :  { %2849 = vmatpush.msra.mxu2 %v2820_v50  ;;  %2872 = vmatpush.msra.mxu3 %v2821_v40 }
 0x924   :  { %v2686_v59 = vmul.f32 %v3642_v9, %v2681_v25  ;;  %v2687_v37 = vmul.f32 %v3642_v9, %v2682_v14  ;;  %v2803_v9 = vld [vmem:[#allocation31 + $0x80] sm:$0xff]  ;;  %v2804_v25 = vld [vmem:[#allocation31 + $0x88] sm:$0xff]  ;;  %2900 = vmatpush.msrb.mxu0 %v2807_v51  ;;  %v2801_v14 = vld [vmem:[#allocation31 + $0x70] sm:$0xff] }
 0x925   :  { %2850 = vmatpush.msra.mxu2 %v2817_v52  ;;  %2873 = vmatpush.msra.mxu3 %v2818_v53  ;;  %v2841_v53 = vperm.slane %v2835_v45, 2 }
 0x926   :  { %v2691_v13 = vadd.f32 %v3643_v12, %v2686_v59  ;;  %v2692_v19 = vadd.f32 %v3643_v12, %v2687_v37  ;;  %v2799_v12 = vld [vmem:[#allocation31 + $0x60] sm:$0xff]  ;;  %v2800_v59 = vld [vmem:[#allocation31 + $0x68] sm:$0xff]  ;;  %2901 = vmatpush.msrb.mxu0 %v2804_v25 }
 0x927   :  { %2851 = vmatpush.msra.mxu2 %v2814_v54  ;;  %2874 = vmatpush.msra.mxu3 %v2815_v60  ;;  %v2796_v37 = vld [vmem:[#allocation31 + $0x48] sm:$0xff]  ;;  %v2839_v60 = vperm.slane %v2835_v45, 0 }
 0x928   :  { %2731 = vmatmul.f32.vlgmr.msra.gmra.mxu1 %v2691_v13  ;;  %2902 = vmatpush.msrb.mxu0 %v2801_v14 }
 0x929   :  { %2852 = vmatpush.msra.mxu2 %v2811_v61  ;;  %2875 = vmatpush.msra.mxu3 %v2812_v49 }
 0x92b   :  { %2853 = vmatpush.msra.mxu2 %v2808_v28  ;;  %2876 = vmatpush.msra.mxu3 %v2809_v0 }
 0x92d   :  { %2854 = vmatpush.msra.mxu2 %v2805_v42  ;;  %2877 = vmatpush.msra.mxu3 %v2806_v56 }
 0x92f   :  { %2855 = vmatpush.msra.mxu2 %v2802_v7  ;;  %2878 = vmatpush.msra.mxu3 %v2803_v9 }
 0x930   :  { %2734 = vmatmul.f32.gmra.mxu1 %v2692_v19  ;;  %v2797_v19 = vld [vmem:[#allocation31 + $0x50] sm:$0xff] }
 0x931   :  { %2856 = vmatpush.msra.mxu2 %v2799_v12  ;;  %2879 = vmatpush.msra.mxu3 %v2800_v59 }
 0x933   :  { %2857 = vmatpush.msra.mxu2 %v2796_v37  ;;  %2880 = vmatpush.msra.mxu3 %v2797_v19 }
 0x9a5   :  { %v2732_v16 = vpop.f32.mrf.mxu1 }
 0x9a6   :  { %v2733_v26 = vadd.f32 %v3644_v23, %v2732_v16 }
 0x9a8   :  { %v2740_v39 = vmul.f32 0.01, %v2733_v26  ;;  %vm2738_vm15 = vcmp.ge.f32.partialorder %v2733_v26, 0.0 }
 0x9aa   :  { %v2742_v29 = vsel %vm2738_vm15, %v2733_v26, %v2740_v39  ;;  %v2793_v26 = vld [vmem:[#allocation31 + $0x30] sm:$0xff] }
 0x9ab   :  { %2858 = vmatpush.msra.mxu2 %v2793_v26 }
 0x9ad   :  { %v2735_v32 = vpop.f32.mrf.mxu1 }
 0x9ae   :  { %v2736_v44 = vadd.f32 %v3644_v23, %v2735_v32  ;;  %v2798_v23 = vld [vmem:[#allocation31 + $0x58] sm:$0xff] }
 0x9af   :  { %v2794_v32 = vld [vmem:[#allocation31 + $0x38] sm:$0xff]  ;;  %2903 = vmatpush.msrb.mxu0 %v2798_v23 }
 0x9b0   :  { %vm2739_vm2 = vcmp.ge.f32.partialorder %v2736_v44, 0.0  ;;  %v2741_v8 = vmul.f32 0.01, %v2736_v44  ;;  %2881 = vmatpush.msra.mxu3 %v2794_v32 }
 0x9b2   :  { %v2743_v62 = vsel %vm2739_vm2, %v2736_v44, %v2741_v8  ;;  %v2795_v44 = vld [vmem:[#allocation31 + $0x40] sm:$0xff]  ;;  %v2790_v8 = vld [vmem:[#allocation31 + $0x18] sm:$0xff] }
 0x9b3   :  { %v2744_v24 = vadd.f32 %v2743_v62, %v2742_v29  ;;  %2904 = vmatpush.msrb.mxu0 %v2795_v44  ;;  %2859 = vmatpush.msra.mxu2 %v2790_v8 }
 0x9b5   :  { %v2745_v30 = vrot.slane %v2744_v24, 4 }
 0x9b7   :  { %v2746_v20 = vadd.f32 %v2745_v30, %v2744_v24  ;;  %v2792_v24 = vld [vmem:[#allocation31 + $0x28] sm:$0xff]  ;;  %v2787_v30 = vld [vmem:[#allocation31] sm:$0xff] }
 0x9b8   :  { %2905 = vmatpush.msrb.mxu0 %v2792_v24  ;;  %2860 = vmatpush.msra.mxu2 %v2787_v30 }
 0x9b9   :  { %v2747_v15 = vrot.slane %v2746_v20, 2 }
 0x9ba   :  { %2906 = vmatpush.msrb.mxu0 %v2789_v18 }
 0x9bb   :  { %v2748_v46 = vadd.f32 %v2747_v15, %v2746_v20  ;;  %v2788_v20 = vld [vmem:[#allocation31 + $0x8] sm:$0xff] }
 0x9bd   :  { %v2749_v31 = vrot.slane %v2748_v46, 1 }
 0x9bf   :  { %v2750_v57 = vadd.f32 %v2749_v31, %v2748_v46  ;;  %v3645_v46 = vld [vmem:[%s5677_s28] ss:$0 sm:$0xff] }
 0x9c1   :  { %v2751_v55 = vmul.f32 %v2750_v57, %v5377_v21 }
 0x9c3   :  { %v5385_v3 = vsub.f32 %v2742_v29, %v2751_v55  ;;  %v5387_v27 = vsub.f32 %v2743_v62, %v2751_v55  ;;  %v2791_v29 = vld [vmem:[#allocation31 + $0x20] sm:$0xff] }
 0x9c4   :  { %2882 = vmatpush.msra.mxu3 %v2791_v29 }
 0x9c5   :  { %v2754_v63 = vmul.f32 %v5385_v3, %v5385_v3  ;;  %v2755_v2 = vmul.f32 %v5387_v27, %v5387_v27 }
 0x9c6   :  { %2883 = vmatpush.msra.mxu3 %v2788_v20 }
 0x9c7   :  { %v2756_v47 = vadd.f32 %v2755_v2, %v2754_v63 }
 0x9c9   :  { %v2757_v6 = vrot.slane %v2756_v47, 4 }
 0x9cb   :  { %v2758_v11 = vadd.f32 %v2757_v6, %v2756_v47 }
 0x9cd   :  { %v2759_v13 = vrot.slane %v2758_v11, 2 }
 0x9cf   :  { %v2760_v16 = vadd.f32 %v2759_v13, %v2758_v11 }
 0x9d1   :  { %v2761_v39 = vrot.slane %v2760_v16, 1 }
 0x9d3   :  { %v2762_v62 = vadd.f32 %v2761_v39, %v2760_v16 }
 0x9d5   :  { %v2763_v17 = vmul.f32 %v2762_v62, %v5377_v21 }
 0x9d7   :  { %v2764_v41 = vadd.f32 1e-05, %v2763_v17 }
 0x9d9   :  { %3670 = vrsqrt.f32 %v2764_v41  ;;  %vm2771_vm9 = vweird.f32 %v2764_v41 }
 0x9df   :  { %v3671_v15 = vpop.eup %3670 }
 0x9e0   :  { %v2766_v33 = vmul.f32 %v3671_v15, %v2764_v41  ;;  %vm2772_vm8 = vweird.f32 %v3671_v15 }
 0x9e1   :  { %vm2773_vm10 = vmor %vm2771_vm9, %vm2772_vm8 }
 0x9e2   :  { %v2767_v34 = vmul.f32 %v3671_v15, %v2766_v33 }
 0x9e4   :  { %v2768_v35 = vmul.f32 0.5, %v2767_v34 }
 0x9e6   :  { %v2769_v36 = vsub.f32 1.5, %v2768_v35 }
 0x9e8   :  { %v2770_v22 = vmul.f32 %v3671_v15, %v2769_v36 }
 0x9ea   :  { %v2774_v38 = vsel %vm2773_vm10, %v3671_v15, %v2770_v22 }
 0x9eb   :  { %v2775_v43 = vmul.f32 %v2774_v38, %v5385_v3  ;;  %v2776_v50 = vmul.f32 %v2774_v38, %v5387_v27  ;;  %v2840_v3 = vperm.slane %v2835_v45, 1 }
 0x9ed   :  { %v2780_v31 = vmul.f32 %v3645_v46, %v2775_v43  ;;  %v2781_v40 = vmul.f32 %v3645_v46, %v2776_v50 }
 0x9ef   :  { %v2785_v1 = vadd.f32 %v3646_v5, %v2780_v31  ;;  %v2786_v57 = vadd.f32 %v3646_v5, %v2781_v40 }
 0x9f1   :  { %2861 = vmatmul.f32.vlgmr.msra.gmra.mxu2 %v2785_v1  ;;  %2884 = vmatmul.f32.vlgmr.msra.gmra.mxu3 %v2785_v1 }
 0x9f2   :  { %2907 = vmatmul.f32.vlgmr.msrb.gmra.mxu0 %v2785_v1 }
 0x9f9   :  { %2864 = vmatmul.f32.gmra.mxu2 %v2786_v57  ;;  %2887 = vmatmul.f32.gmra.mxu3 %v2786_v57 }
 0x9fa   :  { %2910 = vmatmul.f32.gmra.mxu0 %v2786_v57 }
 0xa6f   :  { %v2908_v52 = vpop.f32.mrf.mxu0 }
 0xa70   :  { %v2909_v55 = vadd.f32 %v2908_v52, %v2841_v53 }
 0xa72   :  { %v2922_v61 = vmul.f32 0.01, %v2909_v55  ;;  %vm2916_vm1 = vcmp.ge.f32.partialorder %v2909_v55, 0.0 }
 0xa74   :  { %v2862_v58 = vpop.f32.mrf.mxu2  ;;  %v2885_v54 = vpop.f32.mrf.mxu3  ;;  %v2928_v4 = vsel %vm2916_vm1, %v2909_v55, %v2922_v61  ;;  %v3252_v61 = vld [vmem:[#allocation32 + $0x70] sm:$0xff]  ;;  %vm3341_vm1 = vcmask 1041409  }
 0xa75   :  { %v2863_v27 = vadd.f32 %v2862_v58, %v2839_v60  ;;  %v2886_v63 = vadd.f32 %v2885_v54, %v2840_v3  ;;  %v3253_v54 = vld [vmem:[#allocation32 + $0x78] sm:$0xff] }
 0xa76   :  { %3420 = vmatpush.msra.mxu0 %v3253_v54  ;;  %v5453_v54 = vld [vmem:[%s5681_s0] sm:$0x7] }
 0xa77   :  { %v2911_v48 = vpop.f32.mrf.mxu0  ;;  %v2920_v10 = vmul.f32 0.01, %v2863_v27  ;;  %vm2914_vm4 = vcmp.ge.f32.partialorder %v2863_v27, 0.0  ;;  %vm2915_vm6 = vcmp.ge.f32.partialorder %v2886_v63, 0.0  ;;  %v2921_v51 = vmul.f32 0.01, %v2886_v63 }
 0xa78   :  { %v2912_v49 = vadd.f32 %v2911_v48, %v2841_v53  ;;  %3421 = vmatpush.msra.mxu0 %v3252_v61 }
 0xa79   :  { %v2926_v25 = vsel %vm2914_vm4, %v2863_v27, %v2920_v10  ;;  %v2927_v13 = vsel %vm2915_vm6, %v2886_v63, %v2921_v51 }
 0xa7a   :  { %vm2919_vm3 = vcmp.ge.f32.partialorder %v2912_v49, 0.0  ;;  %v2925_v2 = vmul.f32 0.01, %v2912_v49 }
 0xa7c   :  { %v2931_v28 = vsel %vm2919_vm3, %v2912_v49, %v2925_v2  ;;  %v2865_v0 = vpop.f32.mrf.mxu2  ;;  %v2888_v47 = vpop.f32.mrf.mxu3  ;;  %v3251_v2 = vld [vmem:[#allocation32 + $0x68] sm:$0xff] }
 0xa7d   :  { %v2946_v42 = vadd.f32 %v2931_v28, %v2928_v4  ;;  %v2866_v56 = vadd.f32 %v2865_v0, %v2839_v60  ;;  %v2889_v6 = vadd.f32 %v2888_v47, %v2840_v3  ;;  %3422 = vmatpush.msra.mxu0 %v3251_v2  ;;  %v3250_v47 = vld [vmem:[#allocation32 + $0x60] sm:$0xff] }
 0xa7f   :  { %v2947_v7 = vrot.slane %v2946_v42, 4  ;;  %vm2917_vm7 = vcmp.ge.f32.partialorder %v2866_v56, 0.0  ;;  %v2923_v9 = vmul.f32 0.01, %v2866_v56  ;;  %vm2918_vm5 = vcmp.ge.f32.partialorder %v2889_v6, 0.0  ;;  %3423 = vmatpush.msra.mxu0 %v3250_v47 }
 0xa80   :  { %v2924_v11 = vmul.f32 0.01, %v2889_v6 }
 0xa81   :  { %v2948_v12 = vadd.f32 %v2947_v7, %v2946_v42  ;;  %v2929_v59 = vsel %vm2917_vm7, %v2866_v56, %v2923_v9 }
 0xa82   :  { %v2932_v14 = vadd.f32 %v2929_v59, %v2926_v25  ;;  %v2930_v37 = vsel %vm2918_vm5, %v2889_v6, %v2924_v11  ;;  %v3249_v6 = vld [vmem:[#allocation32 + $0x58] sm:$0xff]  ;;  %v3248_v11 = vld [vmem:[#allocation32 + $0x50] sm:$0xff] }
 0xa83   :  { %v2949_v19 = vrot.slane %v2948_v12, 2  ;;  %v2939_v16 = vadd.f32 %v2930_v37, %v2927_v13  ;;  %3424 = vmatpush.msra.mxu0 %v3249_v6  ;;  %v3238_v6 = vld [vmem:[#allocation32] sm:$0xff] }
 0xa84   :  { %v2933_v23 = vrot.slane %v2932_v14, 4 }
 0xa85   :  { %v2950_v26 = vadd.f32 %v2949_v19, %v2948_v12  ;;  %v2940_v32 = vrot.slane %v2939_v16, 4  ;;  %3425 = vmatpush.msra.mxu0 %v3248_v11  ;;  %v3246_v19 = vld [vmem:[#allocation32 + $0x40] sm:$0xff] }
 0xa86   :  { %v2934_v39 = vadd.f32 %v2933_v23, %v2932_v14 }
 0xa87   :  { %v2951_v44 = vrot.slane %v2950_v26, 1  ;;  %v2941_v8 = vadd.f32 %v2940_v32, %v2939_v16 }
 0xa88   :  { %v2935_v29 = vrot.slane %v2934_v39, 2 }
 0xa89   :  { %v2952_v62 = vadd.f32 %v2951_v44, %v2950_v26  ;;  %v2942_v24 = vrot.slane %v2941_v8, 2  ;;  %v3245_v26 = vld [vmem:[#allocation32 + $0x38] sm:$0xff] }
 0xa8a   :  { %v2936_v30 = vadd.f32 %v2935_v29, %v2934_v39  ;;  %v3301_v39 = vld [vmem:[#allocation34 + $0x78] sm:$0xff] }
 0xa8b   :  { %v2955_v20 = vmul.f32 %v2952_v62, %v5377_v21  ;;  %v2943_v17 = vadd.f32 %v2942_v24, %v2941_v8  ;;  %v3317_v44 = vld [vmem:[#allocation34 + $0xf8] sm:$0xff]  ;;  %v3244_v8 = vld [vmem:[#allocation32 + $0x30] sm:$0xff]  ;;  %3348 = vmatpush.msrb.mxu1 %v3301_v39 }
 0xa8c   :  { %v2937_v18 = vrot.slane %v2936_v30, 1  ;;  %3368 = vmatpush.msrb.mxu2 %v3317_v44  ;;  %v3316_v24 = vld [vmem:[#allocation34 + $0xf0] sm:$0xff] }
 0xa8d   :  { %v5400_v41 = vsub.f32 %v2928_v4, %v2955_v20  ;;  %v5402_v15 = vsub.f32 %v2931_v28, %v2955_v20  ;;  %v2944_v33 = vrot.slane %v2943_v17, 1  ;;  %v4313_v20 = vmov 8.0  }
 0xa8e   :  { %v2938_v34 = vadd.f32 %v2937_v18, %v2936_v30  ;;  %v3243_v30 = vld [vmem:[#allocation32 + $0x28] sm:$0xff]  ;;  %3369 = vmatpush.msrb.mxu2 %v3316_v24  ;;  %v3046_v24 = vperm.slane %v5453_v54, 1 }
 0xa8f   :  { %v2964_v35 = vmul.f32 %v5400_v41, %v5400_v41  ;;  %v2967_v36 = vmul.f32 %v5402_v15, %v5402_v15  ;;  %v2945_v22 = vadd.f32 %v2944_v33, %v2943_v17  ;;  %v3299_v18 = vld [vmem:[#allocation34 + $0x68] sm:$0xff] }
 0xa90   :  { %v2953_v46 = vmul.f32 %v2938_v34, %v5377_v21  ;;  %v3315_v33 = vld [vmem:[#allocation34 + $0xe8] sm:$0xff]  ;;  %v3242_v34 = vld [vmem:[#allocation32 + $0x20] sm:$0xff] }
 0xa91   :  { %v2982_v38 = vadd.f32 %v2967_v36, %v2964_v35  ;;  %v2954_v43 = vmul.f32 %v2945_v22, %v5377_v21  ;;  %3370 = vmatpush.msrb.mxu2 %v3315_v33  ;;  %v3298_v22 = vld [vmem:[#allocation34 + $0x60] sm:$0xff] }
 0xa92   :  { %v5410_v5 = vsub.f32 %v2926_v25, %v2953_v46  ;;  %v5412_v31 = vsub.f32 %v2929_v59, %v2953_v46  ;;  %v3314_v46 = vld [vmem:[#allocation34 + $0xe0] sm:$0xff] }
 0xa93   :  { %v2983_v1 = vrot.slane %v2982_v38, 4  ;;  %v5414_v50 = vsub.f32 %v2927_v13, %v2954_v43  ;;  %v5416_v40 = vsub.f32 %v2930_v37, %v2954_v43  ;;  %v3247_v13 = vld [vmem:[#allocation32 + $0x48] sm:$0xff]  ;;  %3371 = vmatpush.msrb.mxu2 %v3314_v46 }
 0xa94   :  { %v2962_v57 = vmul.f32 %v5410_v5, %v5410_v5  ;;  %v2965_v45 = vmul.f32 %v5412_v31, %v5412_v31  ;;  %3426 = vmatpush.msra.mxu0 %v3247_v13  ;;  %v3307_v46 = vld [vmem:[#allocation34 + $0xa8] sm:$0xff] }
 0xa95   :  { %v2984_v52 = vadd.f32 %v2983_v1, %v2982_v38  ;;  %v2963_v53 = vmul.f32 %v5414_v50, %v5414_v50  ;;  %v2966_v55 = vmul.f32 %v5416_v40, %v5416_v40  ;;  %v3241_v38 = vld [vmem:[#allocation32 + $0x18] sm:$0xff] }
 0xa96   :  { %v2968_v58 = vadd.f32 %v2965_v45, %v2962_v57  ;;  %3427 = vmatpush.msra.mxu0 %v3246_v19  ;;  %v5446_v57 = vld [vmem:[%s5680_s20] sm:$0x7] }
 0xa97   :  { %v2985_v60 = vrot.slane %v2984_v52, 2  ;;  %v2975_v3 = vadd.f32 %v2966_v55, %v2963_v53  ;;  %v3297_v53 = vld [vmem:[#allocation34 + $0x58] sm:$0xff]  ;;  %v3034_v2 = vperm.slane %v5446_v57, 2  ;;  %v3032_v11 = vperm.slane %v5446_v57, 0 }
 0xa98   :  { %v2969_v48 = vrot.slane %v2968_v58, 4  ;;  %3428 = vmatpush.msra.mxu0 %v3245_v26  ;;  %v3313_v55 = vld [vmem:[#allocation34 + $0xd8] sm:$0xff]  ;;  %v3033_v19 = vperm.slane %v5446_v57, 1 }
 0xa99   :  { %v2986_v49 = vadd.f32 %v2985_v60, %v2984_v52  ;;  %v2976_v27 = vrot.slane %v2975_v3, 4  ;;  %3372 = vmatpush.msrb.mxu2 %v3313_v55  ;;  %v3309_v26 = vld [vmem:[#allocation34 + $0xb8] sm:$0xff] }
 0xa9a   :  { %v2970_v63 = vadd.f32 %v2969_v48, %v2968_v58  ;;  %3429 = vmatpush.msra.mxu0 %v3244_v8  ;;  %v3045_v8 = vperm.slane %v5453_v54, 0 }
 0xa9b   :  { %v2987_v4 = vrot.slane %v2986_v49, 1  ;;  %v2977_v28 = vadd.f32 %v2976_v27, %v2975_v3  ;;  %v3240_v3 = vld [vmem:[#allocation32 + $0x10] sm:$0xff] }
 0xa9c   :  { %v2971_v0 = vrot.slane %v2970_v63, 2  ;;  %3430 = vmatpush.msra.mxu0 %v3243_v30  ;;  %v3312_v27 = vld [vmem:[#allocation34 + $0xd0] sm:$0xff] }
 0xa9d   :  { %v2988_v10 = vadd.f32 %v2987_v4, %v2986_v49  ;;  %v2978_v42 = vrot.slane %v2977_v28, 2  ;;  %v3296_v49 = vld [vmem:[#allocation34 + $0x50] sm:$0xff]  ;;  %3373 = vmatpush.msrb.mxu2 %v3312_v27 }
 0xa9e   :  { %v2972_v56 = vadd.f32 %v2971_v0, %v2970_v63  ;;  %3431 = vmatpush.msra.mxu0 %v3242_v34  ;;  %v3239_v63 = vld [vmem:[#allocation32 + $0x8] sm:$0xff]  ;;  %v3047_v0 = vperm.slane %v5453_v54, 2  ;;  %v3292_v30 = vld [vmem:[#allocation34 + $0x30] sm:$0xff] }
 0xa9f   :  { %v2991_v51 = vmul.f32 %v2988_v10, %v5377_v21  ;;  %v2979_v7 = vadd.f32 %v2978_v42, %v2977_v28  ;;  %v3295_v42 = vld [vmem:[#allocation34 + $0x48] sm:$0xff] }
 0xaa0   :  { %v2973_v9 = vrot.slane %v2972_v56, 1  ;;  %3432 = vmatpush.msra.mxu0 %v3241_v38 }
 0xaa1   :  { %v5427_v25 = vadd.f32 1e-05, %v2991_v51  ;;  %v2980_v12 = vrot.slane %v2979_v7, 1 }
 0xaa2   :  { %v2974_v59 = vadd.f32 %v2973_v9, %v2972_v56  ;;  %3433 = vmatpush.msra.mxu0 %v3240_v3  ;;  %v3311_v56 = vld [vmem:[#allocation34 + $0xc8] sm:$0xff] }
 0xaa3   :  { %3672 = vrsqrt.f32 %v5427_v25  ;;  %v2981_v14 = vadd.f32 %v2980_v12, %v2979_v7  ;;  %vm3021_vm11 = vweird.f32 %v5427_v25  ;;  %3374 = vmatpush.msrb.mxu2 %v3311_v56  ;;  %v3294_v12 = vld [vmem:[#allocation34 + $0x40] sm:$0xff]  ;;  %v3304_v56 = vld [vmem:[#allocation34 + $0x90] sm:$0xff] }
 0xaa4   :  { %v2989_v37 = vmul.f32 %v2974_v59, %v5377_v21  ;;  %3434 = vmatpush.msra.mxu0 %v3239_v63  ;;  %v3310_v59 = vld [vmem:[#allocation34 + $0xc0] sm:$0xff]  ;;  %v3289_v63 = vld [vmem:[#allocation34 + $0x18] sm:$0xff] }
 0xaa5   :  { %v2990_v16 = vmul.f32 %v2981_v14, %v5377_v21  ;;  %v3300_v21 = vld [vmem:[#allocation34 + $0x70] sm:$0xff]  ;;  %3375 = vmatpush.msrb.mxu2 %v3310_v59 }
 0xaa6   :  { %v5432_v23 = vadd.f32 1e-05, %v2989_v37  ;;  %3349 = vmatpush.msrb.mxu1 %v3300_v21  ;;  %3435 = vmatpush.msra.mxu0 %v3238_v6 }
 0xaa7   :  { %v5434_v32 = vadd.f32 1e-05, %v2990_v16  ;;  %v3293_v16 = vld [vmem:[#allocation34 + $0x38] sm:$0xff]  ;;  %3376 = vmatpush.msrb.mxu2 %v3309_v26 }
 0xaa8   :  { %3674 = vrsqrt.f32 %v5432_v23  ;;  %3350 = vmatpush.msrb.mxu1 %v3299_v18  ;;  %vm3001_vm15 = vweird.f32 %v5432_v23 }
 0xaa9   :  { %v3673_v29 = vpop.eup %3672  ;;  %3676 = vrsqrt.f32 %v5434_v32  ;;  %vm3011_vm8 = vweird.f32 %v5434_v32 }
 0xaaa   :  { %v3016_v62 = vmul.f32 %v3673_v29, %v5427_v25  ;;  %3678 = vrcp.f32 %v4313_v20  ;;  %3351 = vmatpush.msrb.mxu1 %v3298_v22  ;;  %vm3022_vm0 = vweird.f32 %v3673_v29  ;;  %v3308_v20 = vld [vmem:[#allocation34 + $0xb0] sm:$0xff]  ;;  %v3291_v22 = vld [vmem:[#allocation34 + $0x28] sm:$0xff] }
 0xaab   :  { %vm3023_vm12 = vmor %vm3021_vm11, %vm3022_vm0  ;;  %3377 = vmatpush.msrb.mxu2 %v3308_v20 }
 0xaac   :  { %v3017_v17 = vmul.f32 %v3673_v29, %v3016_v62  ;;  %3352 = vmatpush.msrb.mxu1 %v3297_v53  ;;  %v3306_v53 = vld [vmem:[#allocation34 + $0xa0] sm:$0xff] }
 0xaad   :  { %3378 = vmatpush.msrb.mxu2 %v3307_v46 }
 0xaae   :  { %v5439_v35 = vpop.eup %3674  ;;  %v3018_v36 = vmul.f32 0.5, %v3017_v17  ;;  %3353 = vmatpush.msrb.mxu1 %v3296_v49 }
 0xaaf   :  { %v5441_v43 = vpop.eup %3676  ;;  %v2996_v1 = vmul.f32 %v5439_v35, %v5432_v23  ;;  %vm3002_vm13 = vweird.f32 %v5439_v35  ;;  %3379 = vmatpush.msrb.mxu2 %v3306_v53 }
 0xab0   :  { %v3019_v45 = vsub.f32 1.5, %v3018_v36  ;;  %v3006_v52 = vmul.f32 %v5441_v43, %v5434_v32  ;;  %v5450_v58 = vpop.eup %3678  ;;  %3354 = vmatpush.msrb.mxu1 %v3295_v42  ;;  %vm3012_vm14 = vweird.f32 %v5441_v43  ;;  %vm3003_vm2 = vmor %vm3001_vm15, %vm3002_vm13  ;;  %v3288_v42 = vld [vmem:[#allocation34 + $0x10] sm:$0xff] }
 0xab1   :  { %v2997_v60 = vmul.f32 %v5439_v35, %v2996_v1  ;;  %v3094_v47 = vmul.f32 8.0, %v5450_v58  ;;  %vm3013_vm9 = vmor %vm3011_vm8, %vm3012_vm14  ;;  %vm3098_vm10 = vweird.f32 %v5450_v58 }
 0xab2   :  { %v3020_v48 = vmul.f32 %v3673_v29, %v3019_v45  ;;  %v3007_v61 = vmul.f32 %v5441_v43, %v3006_v52  ;;  %3355 = vmatpush.msrb.mxu1 %v3294_v12  ;;  %v3290_v52 = vld [vmem:[#allocation34 + $0x20] sm:$0xff] }
 0xab3   :  { %v2998_v4 = vmul.f32 0.5, %v2997_v60 }
 0xab4   :  { %v3024_v28 = vsel %vm3023_vm12, %v3673_v29, %v3020_v48  ;;  %v3008_v10 = vmul.f32 0.5, %v3007_v61  ;;  %3356 = vmatpush.msrb.mxu1 %v3293_v16  ;;  %v3333_v29 = vld [vmem:[#allocation34 + $0x178] sm:$0xff]  ;;  %v3330_v48 = vld [vmem:[#allocation34 + $0x160] sm:$0xff] }
 0xab5   :  { %v3027_v51 = vmul.f32 %v3024_v28, %v5400_v41  ;;  %v3030_v7 = vmul.f32 %v3024_v28, %v5402_v15  ;;  %v2999_v9 = vsub.f32 1.5, %v2998_v4  ;;  %v3095_v41 = vsub.f32 1.0, %v3094_v47  ;;  %3388 = vmatpush.msrb.mxu3 %v3333_v29  ;;  %v3302_v29 = vld [vmem:[#allocation34 + $0x80] sm:$0xff] }
 0xab6   :  { %v3009_v25 = vsub.f32 1.5, %v3008_v10  ;;  %3357 = vmatpush.msrb.mxu1 %v3292_v30  ;;  %v3329_v10 = vld [vmem:[#allocation34 + $0x158] sm:$0xff] }
 0xab7   :  { %v3040_v13 = vmul.f32 %v3034_v2, %v3027_v51  ;;  %v3043_v14 = vmul.f32 %v3034_v2, %v3030_v7  ;;  %v3000_v37 = vmul.f32 %v5439_v35, %v2999_v9  ;;  %v3305_v2 = vld [vmem:[#allocation34 + $0x98] sm:$0xff]  ;;  %v3328_v7 = vld [vmem:[#allocation34 + $0x150] sm:$0xff]  ;;  %v3287_v9 = vld [vmem:[#allocation34 + $0x8] sm:$0xff] }
 0xab8   :  { %v3010_v15 = vmul.f32 %v5441_v43, %v3009_v25  ;;  %3358 = vmatpush.msrb.mxu1 %v3291_v22  ;;  %3380 = vmatpush.msrb.mxu2 %v3305_v2  ;;  %v3285_v30 = vld [vmem:[#allocation32 + $0x178] sm:$0xff] }
 0xab9   :  { %v5474_v39 = vadd.f32 %v3047_v0, %v3040_v13  ;;  %v5476_v44 = vadd.f32 %v3047_v0, %v3043_v14  ;;  %v3004_v23 = vsel %vm3003_vm2, %v5439_v35, %v3000_v37  ;;  %v3303_v13 = vld [vmem:[#allocation34 + $0x88] sm:$0xff] }
 0xaba   :  { %v3025_v32 = vmul.f32 %v3004_v23, %v5410_v5  ;;  %v3028_v62 = vmul.f32 %v3004_v23, %v5412_v31  ;;  %v3014_v21 = vsel %vm3013_vm9, %v5441_v43, %v3010_v15  ;;  %v3332_v5 = vld [vmem:[#allocation34 + $0x170] sm:$0xff]  ;;  %v3096_v31 = vmul.f32 %v5450_v58, %v3095_v41  ;;  %3359 = vmatpush.msrb.mxu1 %v3290_v52  ;;  %v3327_v14 = vld [vmem:[#allocation34 + $0x148] sm:$0xff] }
 0xabb   :  { %v3069_v17 = vrot.slane %v5474_v39, 4  ;;  %v3087_v18 = vrot.slane %v5476_v44, 4  ;;  %v3026_v33 = vmul.f32 %v3014_v21, %v5414_v50  ;;  %v3029_v34 = vmul.f32 %v3014_v21, %v5416_v40  ;;  %3389 = vmatpush.msrb.mxu3 %v3332_v5  ;;  %v3331_v50 = vld [vmem:[#allocation34 + $0x168] sm:$0xff]  ;;  %3381 = vmatpush.msrb.mxu2 %v3304_v56 }
 0xabc   :  { %v3038_v35 = vmul.f32 %v3032_v11, %v3025_v32  ;;  %v3041_v36 = vmul.f32 %v3032_v11, %v3028_v62  ;;  %v3097_v61 = vadd.f32 %v5450_v58, %v3096_v31  ;;  %3360 = vmatpush.msrb.mxu1 %v3289_v63  ;;  %v3326_v32 = vld [vmem:[#allocation34 + $0x140] sm:$0xff]  ;;  %v3268_v31 = vld [vmem:[#allocation32 + $0xf0] sm:$0xff] }
 0xabd   :  { %v3070_v38 = vadd.f32 %v3069_v17, %v5474_v39  ;;  %v3088_v43 = vadd.f32 %v3087_v18, %v5476_v44  ;;  %v3039_v1 = vmul.f32 %v3033_v19, %v3026_v33  ;;  %v3042_v57 = vmul.f32 %v3033_v19, %v3029_v34  ;;  %3390 = vmatpush.msrb.mxu3 %v3331_v50  ;;  %v3286_v19 = vld [vmem:[#allocation34] sm:$0xff]  ;;  %v3325_v33 = vld [vmem:[#allocation34 + $0x138] sm:$0xff]  ;;  %v3267_v50 = vld [vmem:[#allocation32 + $0xe8] sm:$0xff] }
 0xabe   :  { %v5493_v45 = vadd.f32 %v3045_v8, %v3038_v35  ;;  %v5495_v40 = vadd.f32 %v3045_v8, %v3041_v36  ;;  %3361 = vmatpush.msrb.mxu1 %v3288_v42  ;;  %v5514_v37 = vsel %vm3098_vm10, %v5450_v58, %v3097_v61  ;;  %3382 = vmatpush.msrb.mxu2 %v3303_v13  ;;  %v3322_v42 = vld [vmem:[#allocation34 + $0x120] sm:$0xff] }
 0xabf   :  { %v3071_v55 = vrot.slane %v3070_v38, 2  ;;  %v3089_v54 = vrot.slane %v3088_v43, 2  ;;  %v5497_v60 = vadd.f32 %v3046_v24, %v3039_v1  ;;  %v5499_v3 = vadd.f32 %v3046_v24, %v3042_v57  ;;  %3391 = vmatpush.msrb.mxu3 %v3330_v48  ;;  %v3269_v24 = vld [vmem:[#allocation32 + $0xf8] sm:$0xff]  ;;  %v3283_v48 = vld [vmem:[#allocation32 + $0x168] sm:$0xff] }
 0xac0   :  { %v3075_v49 = vrot.slane %v5495_v40, 4  ;;  %v3057_v27 = vrot.slane %v5493_v45, 4  ;;  %3362 = vmatpush.msrb.mxu1 %v3287_v9  ;;  %3383 = vmatpush.msrb.mxu2 %v3302_v29  ;;  %v3265_v9 = vld [vmem:[#allocation32 + $0xd8] sm:$0xff]  ;;  %v3263_v29 = vld [vmem:[#allocation32 + $0xc8] sm:$0xff] }
 0xac1   :  { %v3072_v4 = vadd.f32 %v3071_v55, %v3070_v38  ;;  %v3090_v28 = vadd.f32 %v3089_v54, %v3088_v43  ;;  %v3063_v0 = vrot.slane %v5497_v60, 4  ;;  %v3081_v47 = vrot.slane %v5499_v3, 4  ;;  %3392 = vmatpush.msrb.mxu3 %v3329_v10  ;;  %v3284_v38 = vld [vmem:[#allocation32 + $0x170] sm:$0xff] }
 0xac2   :  { %v3058_v6 = vadd.f32 %v3057_v27, %v5493_v45  ;;  %v3076_v51 = vadd.f32 %v3075_v49, %v5495_v40  ;;  %3363 = vmatpush.msrb.mxu1 %v3286_v19  ;;  %3460 = vmatpush.msra.mxu2 %v3285_v30  ;;  %v3324_v43 = vld [vmem:[#allocation34 + $0x130] sm:$0xff] }
 0xac3   :  { %v3073_v11 = vrot.slane %v3072_v4, 1  ;;  %v3091_v25 = vrot.slane %v3090_v28, 1  ;;  %v3064_v12 = vadd.f32 %v3063_v0, %v5497_v60  ;;  %v3082_v59 = vadd.f32 %v3081_v47, %v5499_v3  ;;  %3393 = vmatpush.msrb.mxu3 %v3328_v7 }
 0xac4   :  { %v3059_v41 = vrot.slane %v3058_v6, 2  ;;  %v3077_v15 = vrot.slane %v3076_v51, 2  ;;  %3440 = vmatpush.msra.mxu1 %v3269_v24  ;;  %3461 = vmatpush.msra.mxu2 %v3284_v38  ;;  %v3319_v24 = vld [vmem:[#allocation34 + $0x108] sm:$0xff] }
 0xac5   :  { %v3074_v16 = vadd.f32 %v3073_v11, %v3072_v4  ;;  %v3092_v26 = vadd.f32 %v3091_v25, %v3090_v28  ;;  %v3065_v23 = vrot.slane %v3064_v12, 2  ;;  %v3083_v8 = vrot.slane %v3082_v59, 2  ;;  %3394 = vmatpush.msrb.mxu3 %v3327_v14  ;;  %v3266_v4 = vld [vmem:[#allocation32 + $0xe0] sm:$0xff]  ;;  %v3281_v11 = vld [vmem:[#allocation32 + $0x158] sm:$0xff] }
 0xac6   :  { %v3060_v62 = vadd.f32 %v3059_v41, %v3058_v6  ;;  %v3078_v21 = vadd.f32 %v3077_v15, %v3076_v51  ;;  %3441 = vmatpush.msra.mxu1 %v3268_v31  ;;  %v3282_v28 = vld [vmem:[#allocation32 + $0x160] sm:$0xff]  ;;  %3462 = vmatpush.msra.mxu2 %v3283_v48  ;;  %v3264_v41 = vld [vmem:[#allocation32 + $0xd0] sm:$0xff] }
 0xac7   :  { %v5517_v58 = vmul.f32 %v5514_v37, %v3074_v16  ;;  %v5520_v20 = vmul.f32 %v5514_v37, %v3092_v26  ;;  %v3066_v17 = vadd.f32 %v3065_v23, %v3064_v12  ;;  %v3084_v18 = vadd.f32 %v3083_v8, %v3082_v59  ;;  %3395 = vmatpush.msrb.mxu3 %v3326_v32  ;;  %v3280_v15 = vld [vmem:[#allocation32 + $0x150] sm:$0xff]  ;;  %v3279_v32 = vld [vmem:[#allocation32 + $0x148] sm:$0xff] }
 0xac8   :  { %v3061_v34 = vrot.slane %v3060_v62, 1  ;;  %v3079_v5 = vrot.slane %v3078_v21, 1  ;;  %3442 = vmatpush.msra.mxu1 %v3267_v50  ;;  %3463 = vmatpush.msra.mxu2 %v3282_v28 }
 0xac9   :  { %v3108_v35 = vsub.f32 %v5474_v39, %v5517_v58  ;;  %v3111_v36 = vsub.f32 %v5476_v44, %v5520_v20  ;;  %v3067_v22 = vrot.slane %v3066_v17, 1  ;;  %v3085_v46 = vrot.slane %v3084_v18, 1  ;;  %3396 = vmatpush.msrb.mxu3 %v3325_v33  ;;  %v3323_v39 = vld [vmem:[#allocation34 + $0x128] sm:$0xff] }
 0xaca   :  { %v3062_v1 = vadd.f32 %v3061_v34, %v3060_v62  ;;  %v3080_v57 = vadd.f32 %v3079_v5, %v3078_v21  ;;  %3443 = vmatpush.msra.mxu1 %v3266_v4  ;;  %3464 = vmatpush.msra.mxu2 %v3281_v11  ;;  %v3262_v34 = vld [vmem:[#allocation32 + $0xc0] sm:$0xff] }
 0xacb   :  { %v3114_v52 = vmul.f32 %v3108_v35, %v3108_v35  ;;  %v3117_v53 = vmul.f32 %v3111_v36, %v3111_v36  ;;  %v3068_v55 = vadd.f32 %v3067_v22, %v3066_v17  ;;  %v3086_v54 = vadd.f32 %v3085_v46, %v3084_v18  ;;  %3397 = vmatpush.msrb.mxu3 %v3324_v43  ;;  %v3278_v5 = vld [vmem:[#allocation32 + $0x140] sm:$0xff] }
 0xacc   :  { %v3100_v61 = vmul.f32 %v5514_v37, %v3062_v1  ;;  %v3103_v44 = vmul.f32 %v5514_v37, %v3080_v57  ;;  %3444 = vmatpush.msra.mxu1 %v3265_v9  ;;  %3465 = vmatpush.msra.mxu2 %v3280_v15  ;;  %v3318_v36 = vld [vmem:[#allocation34 + $0x100] sm:$0xff]  ;;  %v3261_v1 = vld [vmem:[#allocation32 + $0xb8] sm:$0xff] }
 0xacd   :  { %v3130_v49 = vrot.slane %v3114_v52, 4  ;;  %v3148_v27 = vrot.slane %v3117_v53, 4  ;;  %v5529_v63 = vmul.f32 %v5514_v37, %v3068_v55  ;;  %v5532_v2 = vmul.f32 %v5514_v37, %v3086_v54  ;;  %3398 = vmatpush.msrb.mxu3 %v3323_v39  ;;  %v3277_v57 = vld [vmem:[#allocation32 + $0x138] sm:$0xff]  ;;  %v3260_v39 = vld [vmem:[#allocation32 + $0xb0] sm:$0xff]  ;;  %v3274_v9 = vld [vmem:[#allocation32 + $0x120] sm:$0xff] }
 0xace   :  { %v3106_v0 = vsub.f32 %v5493_v45, %v3100_v61  ;;  %v3109_v47 = vsub.f32 %v5495_v40, %v3103_v44  ;;  %v3414_v10 = vsel %vm3341_vm1, %v3103_v44, %v3100_v61  ;;  %v3321_v40 = vld [vmem:[#allocation34 + $0x118] sm:$0xff]  ;;  %3445 = vmatpush.msra.mxu1 %v3264_v41  ;;  %3466 = vmatpush.msra.mxu2 %v3279_v32  ;;  %v3276_v61 = vld [vmem:[#allocation32 + $0x130] sm:$0xff] }
 0xacf   :  { %v3131_v56 = vadd.f32 %v3130_v49, %v3114_v52  ;;  %v3149_v6 = vadd.f32 %v3148_v27, %v3117_v53  ;;  %v3107_v51 = vsub.f32 %v5497_v60, %v5529_v63  ;;  %v3110_v7 = vsub.f32 %v5499_v3, %v5532_v2  ;;  %3436 = vmatmul.f32.vlgmr.msra.gmra.mxu0 %v3414_v10  ;;  %v3320_v3 = vld [vmem:[#allocation34 + $0x110] sm:$0xff]  ;;  %v3275_v10 = vld [vmem:[#allocation32 + $0x128] sm:$0xff] }
 0xad0   :  { %v3112_v25 = vmul.f32 %v3106_v0, %v3106_v0  ;;  %v3115_v45 = vmul.f32 %v3109_v47, %v3109_v47  ;;  %3399 = vmatpush.msrb.mxu3 %v3322_v42  ;;  %3446 = vmatpush.msra.mxu1 %v3263_v29  ;;  %v3259_v47 = vld [vmem:[#allocation32 + $0xa8] sm:$0xff]  ;;  %v3270_v29 = vld [vmem:[#allocation32 + $0x100] sm:$0xff] }
 0xad1   :  { %v3132_v12 = vrot.slane %v3131_v56, 2  ;;  %v3150_v59 = vrot.slane %v3149_v6, 2  ;;  %v3113_v13 = vmul.f32 %v3107_v51, %v3107_v51  ;;  %v3116_v14 = vmul.f32 %v3110_v7, %v3110_v7  ;;  %3467 = vmatpush.msra.mxu2 %v3278_v5  ;;  %v3258_v7 = vld [vmem:[#allocation32 + $0xa0] sm:$0xff] }
 0xad2   :  { %v3118_v19 = vrot.slane %v3112_v25, 4  ;;  %v3136_v60 = vrot.slane %v3115_v45, 4  ;;  %3400 = vmatpush.msrb.mxu3 %v3321_v40  ;;  %3447 = vmatpush.msra.mxu1 %v3262_v34 }
 0xad3   :  { %v3133_v16 = vadd.f32 %v3132_v12, %v3131_v56  ;;  %v3151_v26 = vadd.f32 %v3150_v59, %v3149_v6  ;;  %v3124_v23 = vrot.slane %v3113_v13, 4  ;;  %v3142_v8 = vrot.slane %v3116_v14, 4  ;;  %3468 = vmatpush.msra.mxu2 %v3277_v57  ;;  %v3257_v12 = vld [vmem:[#allocation32 + $0x98] sm:$0xff] }
 0xad4   :  { %v3119_v62 = vadd.f32 %v3118_v19, %v3112_v25  ;;  %v3137_v21 = vadd.f32 %v3136_v60, %v3115_v45  ;;  %3401 = vmatpush.msrb.mxu3 %v3320_v3  ;;  %3448 = vmatpush.msra.mxu1 %v3261_v1  ;;  %v3273_v59 = vld [vmem:[#allocation32 + $0x118] sm:$0xff]  ;;  %v3256_v19 = vld [vmem:[#allocation32 + $0x90] sm:$0xff] }
 0xad5   :  { %v3134_v30 = vrot.slane %v3133_v16, 1  ;;  %v3152_v17 = vrot.slane %v3151_v26, 1  ;;  %v3125_v18 = vadd.f32 %v3124_v23, %v3113_v13  ;;  %v3143_v33 = vadd.f32 %v3142_v8, %v3116_v14  ;;  %3469 = vmatpush.msra.mxu2 %v3276_v61  ;;  %v3272_v60 = vld [vmem:[#allocation32 + $0x110] sm:$0xff] }
 0xad6   :  { %v3120_v31 = vrot.slane %v3119_v62, 2  ;;  %v3138_v35 = vrot.slane %v3137_v21, 2  ;;  %3402 = vmatpush.msrb.mxu3 %v3319_v24  ;;  %3449 = vmatpush.msra.mxu1 %v3260_v39 }
 0xad7   :  { %v3135_v22 = vadd.f32 %v3134_v30, %v3133_v16  ;;  %v3153_v46 = vadd.f32 %v3152_v17, %v3151_v26  ;;  %v3126_v38 = vrot.slane %v3125_v18, 2  ;;  %v3144_v43 = vrot.slane %v3143_v33, 2  ;;  %3470 = vmatpush.msra.mxu2 %v3275_v10  ;;  %v3255_v16 = vld [vmem:[#allocation32 + $0x88] sm:$0xff] }
 0xad8   :  { %v3121_v50 = vadd.f32 %v3120_v31, %v3119_v62  ;;  %v3139_v52 = vadd.f32 %v3138_v35, %v3137_v21  ;;  %3403 = vmatpush.msrb.mxu3 %v3318_v36  ;;  %3450 = vmatpush.msra.mxu1 %v3259_v47  ;;  %v3271_v26 = vld [vmem:[#allocation32 + $0x108] sm:$0xff] }
 0xad9   :  { %v3156_v53 = vmax.f32 %v3135_v22, 1e-10  ;;  %v3159_v55 = vmax.f32 %v3153_v46, 1e-10  ;;  %v3127_v54 = vadd.f32 %v3126_v38, %v3125_v18  ;;  %v3145_v48 = vadd.f32 %v3144_v43, %v3143_v33  ;;  %3471 = vmatpush.msra.mxu2 %v3274_v9 }
 0xada   :  { %v3122_v44 = vrot.slane %v3121_v50, 1  ;;  %v3140_v49 = vrot.slane %v3139_v52, 1  ;;  %3451 = vmatpush.msra.mxu1 %v3258_v7 }
 0xadb   :  { %v5542_v27 = vmul.f32 %v3156_v53, %v5514_v37  ;;  %v5545_v4 = vmul.f32 %v3159_v55, %v5514_v37  ;;  %v3128_v28 = vrot.slane %v3127_v54, 1  ;;  %v3146_v0 = vrot.slane %v3145_v48, 1  ;;  %3472 = vmatpush.msra.mxu2 %v3273_v59 }
 0xadc   :  { %v3123_v42 = vadd.f32 %v3122_v44, %v3121_v50  ;;  %v3141_v56 = vadd.f32 %v3140_v49, %v3139_v52  ;;  %3452 = vmatpush.msra.mxu1 %v3257_v12 }
 0xadd   :  { %v3129_v6 = vadd.f32 %v3128_v28, %v3127_v54  ;;  %v3147_v51 = vadd.f32 %v3146_v0, %v3145_v48  ;;  %3680 = vrsqrt.f32 %v5542_v27  ;;  %3473 = vmatpush.msra.mxu2 %v3272_v60  ;;  %vm3197_vm3 = vcmp.eq.f32.partialorder %v5542_v27, inf }
 0xade   :  { %v3154_v11 = vmax.f32 %v3123_v42, 1e-10  ;;  %v3157_v25 = vmax.f32 %v3141_v56, 1e-10  ;;  %3682 = vrsqrt.f32 %v5545_v4  ;;  %3453 = vmatpush.msra.mxu1 %v3256_v19  ;;  %vm3199_vm4 = vcmp.eq.f32.partialorder %v5542_v27, 0.0 }
 0xadf   :  { %v3155_v45 = vmax.f32 %v3129_v6, 1e-10  ;;  %v3158_v40 = vmax.f32 %v3147_v51, 1e-10  ;;  %3474 = vmatpush.msra.mxu2 %v3271_v26  ;;  %v3200_v36 = vand.u32 2147483648, %v5542_v27  ;;  %vm3233_vm6 = vcmp.eq.f32.partialorder %v5545_v4, inf }
 0xae0   :  { %v5550_v13 = vmul.f32 %v3154_v11, %v5514_v37  ;;  %v5553_v14 = vmul.f32 %v3157_v25, %v5514_v37  ;;  %3454 = vmatpush.msra.mxu1 %v3255_v16  ;;  %vm3235_vm7 = vcmp.eq.f32.partialorder %v5545_v4, 0.0  ;;  %v3236_v50 = vand.u32 2147483648, %v5545_v4 }
 0xae1   :  { %v5556_v41 = vmul.f32 %v3155_v45, %v5514_v37  ;;  %v5559_v15 = vmul.f32 %v3158_v40, %v5514_v37  ;;  %v3254_v37 = vld [vmem:[#allocation32 + $0x80] sm:$0xff]  ;;  %3475 = vmatpush.msra.mxu2 %v3270_v29 }
 0xae2   :  { %3684 = vrsqrt.f32 %v5550_v13  ;;  %3455 = vmatpush.msra.mxu1 %v3254_v37  ;;  %vm3173_vm5 = vcmp.eq.f32.partialorder %v5550_v13, inf  ;;  %vm3175_vm0 = vcmp.eq.f32.partialorder %v5550_v13, 0.0  ;;  %v3176_v56 = vand.u32 2147483648, %v5550_v13 }
 0xae3   :  { %v3681_v3 = vpop.eup %3680  ;;  %3686 = vrsqrt.f32 %v5553_v14  ;;  %vm3209_vm11 = vcmp.eq.f32.partialorder %v5553_v14, inf  ;;  %vm3211_vm12 = vcmp.eq.f32.partialorder %v5553_v14, 0.0  ;;  %v3212_v12 = vand.u32 2147483648, %v5553_v14 }
 0xae4   :  { %v3191_v23 = vmul.f32 %v3681_v3, %v5542_v27  ;;  %3688 = vrsqrt.f32 %v5556_v41  ;;  %v3683_v8 = vpop.eup %3682  ;;  %vm3185_vm13 = vcmp.eq.f32.partialorder %v5556_v41, inf  ;;  %vm3187_vm14 = vcmp.eq.f32.partialorder %v5556_v41, 0.0 }
 0xae5   :  { %3690 = vrsqrt.f32 %v5559_v15  ;;  %v3227_v62 = vmul.f32 %v3683_v8, %v5545_v4  ;;  %v3188_v16 = vand.u32 2147483648, %v5556_v41  ;;  %vm3221_vm15 = vcmp.eq.f32.partialorder %v5559_v15, inf }
 0xae6   :  { %v3192_v32 = vmul.f32 %v3681_v3, %v3191_v23  ;;  %v3224_v37 = vand.u32 2147483648, %v5559_v15  ;;  %vm3223_vm2 = vcmp.eq.f32.partialorder %v5559_v15, 0.0 }
 0xae7   :  { %v3228_v30 = vmul.f32 %v3683_v8, %v3227_v62 }
 0xae8   :  { %v3685_v21 = vpop.eup %3684  ;;  %v3193_v24 = vmul.f32 0.5, %v3192_v32 }
 0xae9   :  { %v3687_v17 = vpop.eup %3686  ;;  %v3167_v18 = vmul.f32 %v3685_v21, %v5550_v13  ;;  %v3229_v5 = vmul.f32 0.5, %v3228_v30 }
 0xaea   :  { %v3689_v33 = vpop.eup %3688  ;;  %v3194_v34 = vsub.f32 1.5, %v3193_v24  ;;  %v3203_v31 = vmul.f32 %v3687_v17, %v5553_v14 }
 0xaeb   :  { %v3691_v35 = vpop.eup %3690  ;;  %v3168_v22 = vmul.f32 %v3685_v21, %v3167_v18  ;;  %v3179_v46 = vmul.f32 %v3689_v33, %v5556_v41  ;;  %v3230_v43 = vsub.f32 1.5, %v3229_v5 }
 0xaec   :  { %v3195_v38 = vmul.f32 %v3681_v3, %v3194_v34  ;;  %v3204_v1 = vmul.f32 %v3687_v17, %v3203_v31  ;;  %v3215_v57 = vmul.f32 %v3691_v35, %v5559_v15 }
 0xaed   :  { %v3169_v52 = vmul.f32 0.5, %v3168_v22  ;;  %v3180_v53 = vmul.f32 %v3689_v33, %v3179_v46  ;;  %v3231_v54 = vmul.f32 %v3683_v8, %v3230_v43 }
 0xaee   :  { %v3196_v55 = vmul.f32 %v3195_v38, %v5542_v27  ;;  %v3205_v48 = vmul.f32 0.5, %v3204_v1  ;;  %v3216_v39 = vmul.f32 %v3691_v35, %v3215_v57 }
 0xaef   :  { %v3170_v61 = vsub.f32 1.5, %v3169_v52  ;;  %v3181_v44 = vmul.f32 0.5, %v3180_v53  ;;  %v3232_v28 = vmul.f32 %v3231_v54, %v5545_v4 }
 0xaf0   :  { %v3198_v49 = vsel %vm3197_vm3, %v5542_v27, %v3196_v55  ;;  %v3206_v0 = vsub.f32 1.5, %v3205_v48  ;;  %v3217_v47 = vmul.f32 0.5, %v3216_v39 }
 0xaf1   :  { %v3201_v10 = vsel %vm3199_vm4, %v3200_v36, %v3198_v49  ;;  %v3171_v42 = vmul.f32 %v3685_v21, %v3170_v61  ;;  %v3182_v6 = vsub.f32 1.5, %v3181_v44  ;;  %v3234_v51 = vsel %vm3233_vm6, %v5545_v4, %v3232_v28 }
 0xaf2   :  { %v3207_v7 = vmul.f32 %v3687_v17, %v3206_v0  ;;  %v3218_v9 = vsub.f32 1.5, %v3217_v47  ;;  %v3237_v11 = vsel %vm3235_vm7, %v3236_v50, %v3234_v51  ;;  %v3416_v21 = vsel %vm3341_vm1, %v5520_v20, %v5517_v58 }
 0xaf3   :  { %v3172_v25 = vmul.f32 %v3171_v42, %v5550_v13  ;;  %v3183_v27 = vmul.f32 %v3689_v33, %v3182_v6  ;;  %v3344_v45 = vsel %vm3341_vm1, %v3237_v11, %v3201_v10 }
 0xaf4   :  { %v3208_v40 = vmul.f32 %v3207_v7, %v5553_v14  ;;  %v3219_v59 = vmul.f32 %v3691_v35, %v3218_v9  ;;  %3404 = vmatmul.f32.vlgmr.msrb.gmra.mxu3 %v3344_v45  ;;  %v3647_v35 = vld [vmem:[%s4518_s5] ss:$0 sm:$0xff] }
 0xaf5   :  { %v3174_v19 = vsel %vm3173_vm5, %v5550_v13, %v3172_v25  ;;  %v3184_v4 = vmul.f32 %v3183_v27, %v5556_v41 }
 0xaf6   :  { %v3177_v60 = vsel %vm3175_vm0, %v3176_v56, %v3174_v19  ;;  %v3210_v3 = vsel %vm3209_vm11, %v5553_v14, %v3208_v40  ;;  %v3220_v26 = vmul.f32 %v3219_v59, %v5559_v15 }
 0xaf7   :  { %v3213_v23 = vsel %vm3211_vm12, %v3212_v12, %v3210_v3  ;;  %v3186_v8 = vsel %vm3185_vm13, %v5556_v41, %v3184_v4  ;;  %v3415_v41 = vsel %vm3341_vm1, %v5532_v2, %v5529_v63 }
 0xaf8   :  { %v3342_v29 = vsel %vm3341_vm1, %v3213_v23, %v3177_v60  ;;  %v3189_v32 = vsel %vm3187_vm14, %v3188_v16, %v3186_v8  ;;  %v3222_v13 = vsel %vm3221_vm15, %v5559_v15, %v3220_v26 }
 0xaf9   :  { %3364 = vmatmul.f32.vlgmr.msrb.gmra.mxu1 %v3342_v29  ;;  %v3225_v14 = vsel %vm3223_vm2, %v3224_v37, %v3222_v13 }
 0xafa   :  { %v3343_v62 = vsel %vm3341_vm1, %v3225_v14, %v3189_v32 }
 0xafb   :  { %3384 = vmatmul.f32.vlgmr.msrb.gmra.mxu2 %v3343_v62 }
 0xb01   :  { %3456 = vmatmul.f32.vlgmr.msra.gmra.mxu1 %v3415_v41 }
 0xb03   :  { %3476 = vmatmul.f32.vlgmr.msra.gmra.mxu2 %v3416_v21 }
 0xb4c   :  { %v3437_v33 = vpop.f32.mrf.mxu0 }
 0xb76   :  { %v3365_v24 = vpop.f32.mrf.mxu1 }
 0xb77   :  { %v3405_v17 = vpop.f32.mrf.mxu3 }
 0xb7e   :  { %v3385_v30 = vpop.f32.mrf.mxu2  ;;  %v3457_v5 = vpop.f32.mrf.mxu1 }
 0xb7f   :  { %v3386_v15 = vadd.f32 %v3385_v30, %v3365_v24 }
 0xb81   :  { %v3406_v18 = vadd.f32 %v3405_v17, %v3386_v15 }
 0xb83   :  { %v3438_v34 = vadd.f32 %v3437_v33, %v3406_v18 }
 0xb85   :  { %v3458_v31 = vadd.f32 %v3457_v5, %v3438_v34 }
 0xb86   :  { %v3477_v63 = vpop.f32.mrf.mxu2 }
 0xb87   :  { %v3478_v2 = vadd.f32 %v3477_v63, %v3458_v31 }
 0xb89   :  { %v3483_v36 = vadd.f32 %v3647_v35, %v3478_v2 }
 0xb8b   :  { %3484 = vst [vmem:[#allocation35] sm:$0x3] %v3483_v36 }
 0xb8c   :  { %4219 = shalt.err (!%p4216_p11)
}
 0xb8d   :  { %3495 = dma.vmem_to_hbm [thread:$0]  %s3491_s7, 32, %s3493_s10, [#allocation4]  }
 0xb8e   :  { %4242 = dma.done.wait [#allocation4], 32  }
 0xb8f   :  { %4243 = vsyncadd [#allocation4], 4294967264 }
 0xb90   :  { %3500 = vsyncpa [#allocation3], 1 }
 0xb91   :  { %3501 = vsyncpa [#allocation6], 1 }
 0xb92   :  { %3502 = vsyncpa [#allocation9], 1 }
 0xb93   :  { %3503 = vsyncpa [#allocation12], 1 }
 0xb94   :  { %3504 = vsyncpa [#allocation15], 1 }
 0xb95   :  { %3505 = vsyncpa [#allocation18], 1 }
 0xb96   :  { %3506 = vsyncpa [#allocation21], 1 }
 0xb97   :  { %3507 = vsyncpa [#allocation24], 1 }
 0xb98   :  { %3508 = vsyncpa [#allocation27], 1 }
 0xb99   :  { %3509 = vsyncpa [#allocation30], 1 }
 0xb9a   :  { %3510 = vsyncpa [#allocation33], 1 }
 0xb9b   :  { %3511 = vsyncpa [#allocation4], 1 }

</bundles_post_ra>
